<compile_context>
chip_gen: v6e
topology: v6e:2x2x1
jax: 0.10.0
libtpu: 0.0.40
codegen_flags: <defaults>
</compile_context>

<pallas_src>
import functools

import jax
import jax.numpy as jnp
from jax.experimental import pallas as pl
from jax.experimental.pallas import tpu as pltpu


# ---------------------------------------------------------------------------
# In-kernel helpers (2-D per-batch tiles; elementwise math in f32, matmul
# operands in bf16 with f32 accumulation on the MXU).
# ---------------------------------------------------------------------------
def _layer_norm(x, g, b, eps=1e-5):
    # x: (N, C); g, b: (1, C) — biased variance, matches torch.nn.LayerNorm.
    mu = jnp.mean(x, axis=-1, keepdims=True)
    var = jnp.mean((x - mu) ** 2, axis=-1, keepdims=True)
    return (x - mu) * jax.lax.rsqrt(var + eps) * g + b


def _linear(x_f32, w_ref, b_ref=None):
    # x: (N, Cin) f32; w_ref: (Cin, Cout) bf16; b_ref: (1, Cout) f32 or None.
    out = jnp.dot(x_f32.astype(jnp.bfloat16), w_ref[...],
                  preferred_element_type=jnp.float32)
    if b_ref is not None:
        out = out + b_ref[...]
    return out


def _gelu_exact(x):
    # torch.nn.GELU default = exact erf formulation.
    return 0.5 * x * (1.0 + jax.lax.erf(x * 0.7071067811865476))


def _split_heads(x, num_heads, head_dim):
    # (N, C) -> (H, N, hd); head h lives in channels [h*hd, (h+1)*hd), matching
    # the PyTorch reshape(B, N, H, hd) convention.
    return jnp.stack(
        [x[:, h * head_dim:(h + 1) * head_dim] for h in range(num_heads)],
        axis=0)


def _merge_heads(x_h):
    # (H, N, hd) -> (N, C)
    return jnp.concatenate([x_h[h] for h in range(x_h.shape[0])], axis=-1)


def _mha(q_tok, k_tok, v_tok, num_heads, scale):
    # q_tok: (Nq, C) f32; k_tok, v_tok: (Nk, C) f32  ->  (Nq, C) f32
    C = q_tok.shape[-1]
    hd = C // num_heads
    # Fold the scale into q (an (Nq, C) multiply instead of an (H, Nq, Nk) one).
    qh = _split_heads((q_tok * scale).astype(jnp.bfloat16), num_heads, hd)
    kh = _split_heads(k_tok.astype(jnp.bfloat16), num_heads, hd)
    vh = _split_heads(v_tok.astype(jnp.bfloat16), num_heads, hd)
    # Head-batched score / context matmuls (one batched contraction each).
    s = jnp.einsum('hqd,hkd->hqk', qh, kh, preferred_element_type=jnp.float32)
    s = s - jnp.max(s, axis=-1, keepdims=True)            # stable softmax (f32)
    p = jnp.exp(s)
    inv = pl.reciprocal(jnp.sum(p, axis=-1, keepdims=True), approx=True)
    p = (p * inv).astype(jnp.bfloat16)
    ctx = jnp.einsum('hqk,hkd->hqd', p, vh, preferred_element_type=jnp.float32)
    return _merge_heads(ctx)                               # (Nq, C) f32


# ---------------------------------------------------------------------------
# Fused HybridBlock kernel (one batch element per grid step)
# ---------------------------------------------------------------------------
def hybrid_block_kernel(num_heads,
                        q_ref, k_ref,
                        g1q_ref, b1q_ref, g1k_ref, b1k_ref,
                        wqkv_ref, wsp_ref, bsp_ref,
                        wcq_ref, wckv_ref, wcp_ref, bcp_ref,
                        g2_ref, b2_ref,
                        wf1_ref, bf1_ref, wf2_ref, bf2_ref,
                        out_ref):
    q_in = q_ref[...]                         # (Nq, C) f32
    k_in = k_ref[...]                         # (Nk, C) f32
    C = q_in.shape[-1]
    hd = C // num_heads
    scale = hd ** (-0.5)

    # norm1_q / norm1_k
    qn = _layer_norm(q_in, g1q_ref[...], b1q_ref[...])
    kn = _layer_norm(k_in, g1k_ref[...], b1k_ref[...])
    qn_b = qn.astype(jnp.bfloat16)
    kn_b = kn.astype(jnp.bfloat16)

    # ---- SelfAttention(qn): accumulate into residual immediately ----
    qkv = jnp.dot(qn_b, wqkv_ref[...], preferred_element_type=jnp.float32)   # (Nq, 3C)
    ctx_s = _mha(qkv[:, :C], qkv[:, C:2 * C], qkv[:, 2 * C:], num_heads, scale)
    x = q_in + _linear(ctx_s, wsp_ref, bsp_ref)

    # ---- CrossAttention(qn, kn) ----
    q_c = jnp.dot(qn_b, wcq_ref[...], preferred_element_type=jnp.float32)    # (Nq, C)
    kv = jnp.dot(kn_b, wckv_ref[...], preferred_element_type=jnp.float32)    # (Nk, 2C)
    ctx_c = _mha(q_c, kv[:, :C], kv[:, C:], num_heads, scale)
    x = x + _linear(ctx_c, wcp_ref, bcp_ref)

    # ---- MLP branch ----
    x2 = _layer_norm(x, g2_ref[...], b2_ref[...])
    h = _gelu_exact(_linear(x2, wf1_ref, bf1_ref))
    x = x + _linear(h, wf2_ref, bf2_ref)

    out_ref[...] = x


# ---------------------------------------------------------------------------
# Wrapper
# ---------------------------------------------------------------------------
def hybrid_block(query, key_tokens, params, num_heads):
    B, Nq, C = query.shape
    Nk = key_tokens.shape[1]
    hidden = params["w_fc1"].shape[1]
    H = num_heads

    weights = (
        params["g1q"], params["b1q"], params["g1k"], params["b1k"],
        params["w_qkv"], params["w_sproj"], params["b_sproj"],
        params["w_cq"], params["w_ckv"], params["w_cproj"], params["b_cproj"],
        params["g2"], params["b2"],
        params["w_fc1"], params["b_fc1"], params["w_fc2"], params["b_fc2"],
    )

    def stationary_spec(x):
        zeros = (0,) * x.ndim            # stays resident across all grid steps
        return pl.BlockSpec(x.shape, lambda b: zeros)

    in_specs = [
        pl.BlockSpec((None, Nq, C), lambda b: (b, 0, 0)),   # query: one batch row / step
        pl.BlockSpec((None, Nk, C), lambda b: (b, 0, 0)),   # key
    ] + [stationary_spec(w) for w in weights]

    # Advisory cost estimate for XLA scheduling.
    weight_bytes = sum(int(w.size) * w.dtype.itemsize for w in weights)
    act_bytes = 4 * B * (2 * Nq * C + Nk * C)
    matmul_flops = 2 * B * Nq * C * (3 * C + 3 * C + 2 * hidden) + 4 * B * Nk * C * C
    attn_flops = 4 * B * Nq * C * (Nq + Nk)
    transcendentals = B * H * Nq * (Nq + Nk) + B * Nq * hidden

    return pl.pallas_call(
        functools.partial(hybrid_block_kernel, num_heads),
        out_shape=jax.ShapeDtypeStruct((B, Nq, C), jnp.float32),
        grid_spec=pltpu.PrefetchScalarGridSpec(
            num_scalar_prefetch=0,
            grid=(B,),
            in_specs=in_specs,
            out_specs=pl.BlockSpec((None, Nq, C), lambda b: (b, 0, 0)),
        ),
        compiler_params=pltpu.CompilerParams(
            dimension_semantics=("parallel",),          # shards over 2 TCs on v7x
            vmem_limit_bytes=32 * 1024 * 1024,          # explicit; safe on v5e/v6e/v7x
        ),
        cost_estimate=pl.CostEstimate(
            flops=int(matmul_flops + attn_flops),
            transcendentals=int(transcendentals),
            bytes_accessed=int(weight_bytes + act_bytes),
        ),
    )(query, key_tokens, *weights)


# ---------------------------------------------------------------------------
# Parameters (weights bf16, LayerNorm params + biases f32) and a pure-JAX ref
# ---------------------------------------------------------------------------
def init_params(rng, dim, num_heads, mlp_ratio=4.0):
    hidden = int(dim * mlp_ratio)
    ks = jax.random.split(rng, 8)
    f32 = jnp.float32

    def w(k, shape):
        return (0.02 * jax.random.normal(k, shape, dtype=f32)).astype(jnp.bfloat16)

    return {
        "g1q": jnp.ones((1, dim), f32), "b1q": jnp.zeros((1, dim), f32),
        "g1k": jnp.ones((1, dim), f32), "b1k": jnp.zeros((1, dim), f32),
        "g2": jnp.ones((1, dim), f32), "b2": jnp.zeros((1, dim), f32),
        # SelfAttention (qkv_bias=False, proj has bias)
        "w_qkv": w(ks[0], (dim, 3 * dim)),
        "w_sproj": w(ks[1], (dim, dim)), "b_sproj": jnp.zeros((1, dim), f32),
        # CrossAttention (q/kv bias=False, proj has bias)
        "w_cq": w(ks[2], (dim, dim)),
        "w_ckv": w(ks[3], (dim, 2 * dim)),
        "w_cproj": w(ks[4], (dim, dim)), "b_cproj": jnp.zeros((1, dim), f32),
        # Mlp
        "w_fc1": w(ks[5], (dim, hidden)), "b_fc1": jnp.zeros((1, hidden), f32),
        "w_fc2": w(ks[6], (hidden, dim)), "b_fc2": jnp.zeros((1, dim), f32),
    }


def hybrid_block_reference(query, key_tokens, params, num_heads):
    """Pure-JAX f32 reference mirroring the PyTorch semantics."""
    p = {k: v.astype(jnp.float32) for k, v in params.items()}

    def ln(x, g, b, eps=1e-5):
        mu = x.mean(-1, keepdims=True)
        var = ((x - mu) ** 2).mean(-1, keepdims=True)
        return (x - mu) / jnp.sqrt(var + eps) * g + b

    def lin(x, w, b=None):
        y = jnp.einsum('bnc,cd->bnd', x, w)
        return y + b if b is not None else y

    def mha(q, k, v, H, scale):
        B, Nq, C = q.shape
        Nk = k.shape[1]
        hd = C // H
        qh = q.reshape(B, Nq, H, hd).transpose(0, 2, 1, 3)
        kh = k.reshape(B, Nk, H, hd).transpose(0, 2, 1, 3)
        vh = v.reshape(B, Nk, H, hd).transpose(0, 2, 1, 3)
        s = jnp.einsum('bhqd,bhkd->bhqk', qh, kh) * scale
        a = jax.nn.softmax(s, axis=-1)
        o = jnp.einsum('bhqk,bhkd->bhqd', a, vh)
        return o.transpose(0, 2, 1, 3).reshape(B, Nq, C)

    C = query.shape[-1]
    scale = (C // num_heads) ** (-0.5)
    qn = ln(query, p["g1q"], p["b1q"])
    kn = ln(key_tokens, p["g1k"], p["b1k"])
    qkv = lin(qn, p["w_qkv"])
    self_out = lin(mha(qkv[..., :C], qkv[..., C:2 * C], qkv[..., 2 * C:],
                       num_heads, scale), p["w_sproj"], p["b_sproj"])
    kv = lin(kn, p["w_ckv"])
    cross_out = lin(mha(lin(qn, p["w_cq"]), kv[..., :C], kv[..., C:],
                        num_heads, scale), p["w_cproj"], p["b_cproj"])
    x = query + self_out + cross_out
    h = lin(ln(x, p["g2"], p["b2"]), p["w_fc1"], p["b_fc1"])
    h = 0.5 * h * (1.0 + jax.lax.erf(h * 0.7071067811865476))
    return x + lin(h, p["w_fc2"], p["b_fc2"])


if __name__ == "__main__":
    # Lane-dense config: C, hidden, 3C, 2C all multiples of 128.
    B, Nq, Nk, dim, num_heads = 2, 64, 32, 128, 4

    rng = jax.random.PRNGKey(0)
    kq, kk, kp = jax.random.split(rng, 3)
    query = jax.random.normal(kq, (B, Nq, dim), dtype=jnp.float32)
    key_tokens = jax.random.normal(kk, (B, Nk, dim), dtype=jnp.float32)
    params = init_params(kp, dim, num_heads, mlp_ratio=4.0)

    out = hybrid_block(query, key_tokens, params, num_heads)
    out = jax.block_until_ready(out)

    assert out.shape == (B, Nq, dim) and out.dtype == jnp.float32
    assert bool(jnp.all(jnp.isfinite(out)))

    ref = hybrid_block_reference(query, key_tokens, params, num_heads)
    max_err = float(jnp.max(jnp.abs(out - ref)))
    # bf16 matmul operands + approx reciprocal -> loose tolerance vs f32 reference.
    assert max_err < 5e-2, f"max abs error vs reference: {max_err}"

    print("KERNEL_OK")
</pallas_src>

<mosaic_0001>
module attributes {stable_mosaic.version = 11 : i64} {
  func.func @hybrid_block_kernel(%arg0: i32, %arg1: memref<1x64x128xf32, #tpu.memory_space<vmem>>, %arg2: memref<1x32x128xf32, #tpu.memory_space<vmem>>, %arg3: memref<1x128xf32, #tpu.memory_space<vmem>>, %arg4: memref<1x128xf32, #tpu.memory_space<vmem>>, %arg5: memref<1x128xf32, #tpu.memory_space<vmem>>, %arg6: memref<1x128xf32, #tpu.memory_space<vmem>>, %arg7: memref<128x384xbf16, #tpu.memory_space<vmem>>, %arg8: memref<128x128xbf16, #tpu.memory_space<vmem>>, %arg9: memref<1x128xf32, #tpu.memory_space<vmem>>, %arg10: memref<128x128xbf16, #tpu.memory_space<vmem>>, %arg11: memref<128x256xbf16, #tpu.memory_space<vmem>>, %arg12: memref<128x128xbf16, #tpu.memory_space<vmem>>, %arg13: memref<1x128xf32, #tpu.memory_space<vmem>>, %arg14: memref<1x128xf32, #tpu.memory_space<vmem>>, %arg15: memref<1x128xf32, #tpu.memory_space<vmem>>, %arg16: memref<128x512xbf16, #tpu.memory_space<vmem>>, %arg17: memref<1x512xf32, #tpu.memory_space<vmem>>, %arg18: memref<512x128xbf16, #tpu.memory_space<vmem>>, %arg19: memref<1x128xf32, #tpu.memory_space<vmem>>, %arg20: memref<1x64x128xf32, #tpu.memory_space<vmem>>) attributes {dimension_semantics = [#tpu.dimension_semantics<parallel>], iteration_bounds = array<i64: 2>, scalar_prefetch = 0 : i64, scratch_operands = 0 : i64, tpu.core_type = #tpu.core_type<tc>, window_params = [{transform_indices = @transform_0, window_bounds = array<i64: 1, 64, 128>}, {transform_indices = @transform_1, window_bounds = array<i64: 1, 32, 128>}, {pipeline_mode = #tpu.pipeline_mode<synchronous>, transform_indices = @transform_2, window_bounds = array<i64: 1, 128>}, {pipeline_mode = #tpu.pipeline_mode<synchronous>, transform_indices = @transform_3, window_bounds = array<i64: 1, 128>}, {pipeline_mode = #tpu.pipeline_mode<synchronous>, transform_indices = @transform_4, window_bounds = array<i64: 1, 128>}, {pipeline_mode = #tpu.pipeline_mode<synchronous>, transform_indices = @transform_5, window_bounds = array<i64: 1, 128>}, {pipeline_mode = #tpu.pipeline_mode<synchronous>, transform_indices = @transform_6, window_bounds = array<i64: 128, 384>}, {pipeline_mode = #tpu.pipeline_mode<synchronous>, transform_indices = @transform_7, window_bounds = array<i64: 128, 128>}, {pipeline_mode = #tpu.pipeline_mode<synchronous>, transform_indices = @transform_8, window_bounds = array<i64: 1, 128>}, {pipeline_mode = #tpu.pipeline_mode<synchronous>, transform_indices = @transform_9, window_bounds = array<i64: 128, 128>}, {pipeline_mode = #tpu.pipeline_mode<synchronous>, transform_indices = @transform_10, window_bounds = array<i64: 128, 256>}, {pipeline_mode = #tpu.pipeline_mode<synchronous>, transform_indices = @transform_11, window_bounds = array<i64: 128, 128>}, {pipeline_mode = #tpu.pipeline_mode<synchronous>, transform_indices = @transform_12, window_bounds = array<i64: 1, 128>}, {pipeline_mode = #tpu.pipeline_mode<synchronous>, transform_indices = @transform_13, window_bounds = array<i64: 1, 128>}, {pipeline_mode = #tpu.pipeline_mode<synchronous>, transform_indices = @transform_14, window_bounds = array<i64: 1, 128>}, {pipeline_mode = #tpu.pipeline_mode<synchronous>, transform_indices = @transform_15, window_bounds = array<i64: 128, 512>}, {pipeline_mode = #tpu.pipeline_mode<synchronous>, transform_indices = @transform_16, window_bounds = array<i64: 1, 512>}, {pipeline_mode = #tpu.pipeline_mode<synchronous>, transform_indices = @transform_17, window_bounds = array<i64: 512, 128>}, {pipeline_mode = #tpu.pipeline_mode<synchronous>, transform_indices = @transform_18, window_bounds = array<i64: 1, 128>}, {transform_indices = @transform_19, window_bounds = array<i64: 1, 64, 128>}]} {
    %c0 = arith.constant 0 : index
    %c0_0 = arith.constant 0 : index
    %c0_1 = arith.constant 0 : index
    %0 = vector.load %arg1[%c0, %c0_0, %c0_1] : memref<1x64x128xf32, #tpu.memory_space<vmem>>, vector<1x64x128xf32>
    %1 = vector.shape_cast %0 : vector<1x64x128xf32> to vector<64x128xf32>
    %c0_2 = arith.constant 0 : index
    %c0_3 = arith.constant 0 : index
    %c0_4 = arith.constant 0 : index
    %2 = vector.load %arg2[%c0_2, %c0_3, %c0_4] : memref<1x32x128xf32, #tpu.memory_space<vmem>>, vector<1x32x128xf32>
    %3 = vector.shape_cast %2 : vector<1x32x128xf32> to vector<32x128xf32>
    %c0_5 = arith.constant 0 : index
    %c0_6 = arith.constant 0 : index
    %4 = vector.load %arg3[%c0_5, %c0_6] : memref<1x128xf32, #tpu.memory_space<vmem>>, vector<1x128xf32>
    %c0_7 = arith.constant 0 : index
    %c0_8 = arith.constant 0 : index
    %5 = vector.load %arg4[%c0_7, %c0_8] : memref<1x128xf32, #tpu.memory_space<vmem>>, vector<1x128xf32>
    %cst = arith.constant dense<0.000000e+00> : vector<64xf32>
    %6 = vector.multi_reduction <add>, %1, %cst [1] : vector<64x128xf32> to vector<64xf32>
    %7 = vector.shape_cast %6 : vector<64xf32> to vector<64x1xf32>
    %cst_9 = arith.constant 1.280000e+02 : f32
    %8 = vector.broadcast %cst_9 : f32 to vector<64x1xf32>
    %9 = arith.divf %7, %8 : vector<64x1xf32>
    %10 = vector.broadcast %9 : vector<64x1xf32> to vector<64x128xf32>
    %11 = arith.subf %1, %10 : vector<64x128xf32>
    %12 = arith.mulf %11, %11 : vector<64x128xf32>
    %cst_10 = arith.constant dense<0.000000e+00> : vector<64xf32>
    %13 = vector.multi_reduction <add>, %12, %cst_10 [1] : vector<64x128xf32> to vector<64xf32>
    %14 = vector.shape_cast %13 : vector<64xf32> to vector<64x1xf32>
    %cst_11 = arith.constant 1.280000e+02 : f32
    %15 = vector.broadcast %cst_11 : f32 to vector<64x1xf32>
    %16 = arith.divf %14, %15 : vector<64x1xf32>
    %17 = vector.broadcast %9 : vector<64x1xf32> to vector<64x128xf32>
    %18 = arith.subf %1, %17 : vector<64x128xf32>
    %cst_12 = arith.constant 9.99999974E-6 : f32
    %19 = vector.broadcast %cst_12 : f32 to vector<64x1xf32>
    %20 = arith.addf %16, %19 : vector<64x1xf32>
    %21 = math.rsqrt %20 : vector<64x1xf32>
    %22 = vector.broadcast %21 : vector<64x1xf32> to vector<64x128xf32>
    %23 = arith.mulf %18, %22 : vector<64x128xf32>
    %24 = vector.broadcast %4 : vector<1x128xf32> to vector<64x128xf32>
    %25 = arith.mulf %23, %24 : vector<64x128xf32>
    %26 = vector.broadcast %5 : vector<1x128xf32> to vector<64x128xf32>
    %27 = arith.addf %25, %26 : vector<64x128xf32>
    %c0_13 = arith.constant 0 : index
    %c0_14 = arith.constant 0 : index
    %28 = vector.load %arg5[%c0_13, %c0_14] : memref<1x128xf32, #tpu.memory_space<vmem>>, vector<1x128xf32>
    %c0_15 = arith.constant 0 : index
    %c0_16 = arith.constant 0 : index
    %29 = vector.load %arg6[%c0_15, %c0_16] : memref<1x128xf32, #tpu.memory_space<vmem>>, vector<1x128xf32>
    %cst_17 = arith.constant dense<0.000000e+00> : vector<32xf32>
    %30 = vector.multi_reduction <add>, %3, %cst_17 [1] : vector<32x128xf32> to vector<32xf32>
    %31 = vector.shape_cast %30 : vector<32xf32> to vector<32x1xf32>
    %cst_18 = arith.constant 1.280000e+02 : f32
    %32 = vector.broadcast %cst_18 : f32 to vector<32x1xf32>
    %33 = arith.divf %31, %32 : vector<32x1xf32>
    %34 = vector.broadcast %33 : vector<32x1xf32> to vector<32x128xf32>
    %35 = arith.subf %3, %34 : vector<32x128xf32>
    %36 = arith.mulf %35, %35 : vector<32x128xf32>
    %cst_19 = arith.constant dense<0.000000e+00> : vector<32xf32>
    %37 = vector.multi_reduction <add>, %36, %cst_19 [1] : vector<32x128xf32> to vector<32xf32>
    %38 = vector.shape_cast %37 : vector<32xf32> to vector<32x1xf32>
    %cst_20 = arith.constant 1.280000e+02 : f32
    %39 = vector.broadcast %cst_20 : f32 to vector<32x1xf32>
    %40 = arith.divf %38, %39 : vector<32x1xf32>
    %41 = vector.broadcast %33 : vector<32x1xf32> to vector<32x128xf32>
    %42 = arith.subf %3, %41 : vector<32x128xf32>
    %cst_21 = arith.constant 9.99999974E-6 : f32
    %43 = vector.broadcast %cst_21 : f32 to vector<32x1xf32>
    %44 = arith.addf %40, %43 : vector<32x1xf32>
    %45 = math.rsqrt %44 : vector<32x1xf32>
    %46 = vector.broadcast %45 : vector<32x1xf32> to vector<32x128xf32>
    %47 = arith.mulf %42, %46 : vector<32x128xf32>
    %48 = vector.broadcast %28 : vector<1x128xf32> to vector<32x128xf32>
    %49 = arith.mulf %47, %48 : vector<32x128xf32>
    %50 = vector.broadcast %29 : vector<1x128xf32> to vector<32x128xf32>
    %51 = arith.addf %49, %50 : vector<32x128xf32>
    %52 = arith.truncf %27 : vector<64x128xf32> to vector<64x128xbf16>
    %53 = arith.truncf %51 : vector<32x128xf32> to vector<32x128xbf16>
    %c0_22 = arith.constant 0 : index
    %c0_23 = arith.constant 0 : index
    %54 = vector.load %arg7[%c0_22, %c0_23] : memref<128x384xbf16, #tpu.memory_space<vmem>>, vector<128x384xbf16>
    %cst_24 = arith.constant dense<0.000000e+00> : vector<64x384xf32>
    %55 = tpu.matmul %52, %54, %cst_24 {dimension_numbers = #tpu.dot_dimension_numbers<[1], [0], [0], [1], [0, 0, 1, 1], [], []>} : vector<64x128xbf16>, vector<128x384xbf16>, vector<64x384xf32> -> vector<64x384xf32>
    %56 = vector.extract_strided_slice %55 {offsets = [0, 0], sizes = [64, 128], strides = [1, 1]} : vector<64x384xf32> to vector<64x128xf32>
    %57 = vector.extract_strided_slice %55 {offsets = [0, 128], sizes = [64, 128], strides = [1, 1]} : vector<64x384xf32> to vector<64x128xf32>
    %58 = vector.extract_strided_slice %55 {offsets = [0, 256], sizes = [64, 128], strides = [1, 1]} : vector<64x384xf32> to vector<64x128xf32>
    %cst_25 = arith.constant 0.176776692 : f32
    %59 = vector.broadcast %cst_25 : f32 to vector<64x128xf32>
    %60 = arith.mulf %56, %59 : vector<64x128xf32>
    %61 = arith.truncf %60 : vector<64x128xf32> to vector<64x128xbf16>
    %62 = vector.extract_strided_slice %61 {offsets = [0, 0], sizes = [64, 32], strides = [1, 1]} : vector<64x128xbf16> to vector<64x32xbf16>
    %63 = vector.extract_strided_slice %61 {offsets = [0, 32], sizes = [64, 32], strides = [1, 1]} : vector<64x128xbf16> to vector<64x32xbf16>
    %64 = vector.extract_strided_slice %61 {offsets = [0, 64], sizes = [64, 32], strides = [1, 1]} : vector<64x128xbf16> to vector<64x32xbf16>
    %65 = vector.extract_strided_slice %61 {offsets = [0, 96], sizes = [64, 32], strides = [1, 1]} : vector<64x128xbf16> to vector<64x32xbf16>
    %66 = vector.shape_cast %62 : vector<64x32xbf16> to vector<1x64x32xbf16>
    %67 = vector.shape_cast %63 : vector<64x32xbf16> to vector<1x64x32xbf16>
    %68 = vector.shape_cast %64 : vector<64x32xbf16> to vector<1x64x32xbf16>
    %69 = vector.shape_cast %65 : vector<64x32xbf16> to vector<1x64x32xbf16>
    %70 = tpu.concatenate %66, %67, %68, %69 in 0 : vector<1x64x32xbf16>, vector<1x64x32xbf16>, vector<1x64x32xbf16>, vector<1x64x32xbf16> -> vector<4x64x32xbf16>
    %71 = arith.truncf %57 : vector<64x128xf32> to vector<64x128xbf16>
    %72 = vector.extract_strided_slice %71 {offsets = [0, 0], sizes = [64, 32], strides = [1, 1]} : vector<64x128xbf16> to vector<64x32xbf16>
    %73 = vector.extract_strided_slice %71 {offsets = [0, 32], sizes = [64, 32], strides = [1, 1]} : vector<64x128xbf16> to vector<64x32xbf16>
    %74 = vector.extract_strided_slice %71 {offsets = [0, 64], sizes = [64, 32], strides = [1, 1]} : vector<64x128xbf16> to vector<64x32xbf16>
    %75 = vector.extract_strided_slice %71 {offsets = [0, 96], sizes = [64, 32], strides = [1, 1]} : vector<64x128xbf16> to vector<64x32xbf16>
    %76 = vector.shape_cast %72 : vector<64x32xbf16> to vector<1x64x32xbf16>
    %77 = vector.shape_cast %73 : vector<64x32xbf16> to vector<1x64x32xbf16>
    %78 = vector.shape_cast %74 : vector<64x32xbf16> to vector<1x64x32xbf16>
    %79 = vector.shape_cast %75 : vector<64x32xbf16> to vector<1x64x32xbf16>
    %80 = tpu.concatenate %76, %77, %78, %79 in 0 : vector<1x64x32xbf16>, vector<1x64x32xbf16>, vector<1x64x32xbf16>, vector<1x64x32xbf16> -> vector<4x64x32xbf16>
    %81 = arith.truncf %58 : vector<64x128xf32> to vector<64x128xbf16>
    %82 = vector.extract_strided_slice %81 {offsets = [0, 0], sizes = [64, 32], strides = [1, 1]} : vector<64x128xbf16> to vector<64x32xbf16>
    %83 = vector.extract_strided_slice %81 {offsets = [0, 32], sizes = [64, 32], strides = [1, 1]} : vector<64x128xbf16> to vector<64x32xbf16>
    %84 = vector.extract_strided_slice %81 {offsets = [0, 64], sizes = [64, 32], strides = [1, 1]} : vector<64x128xbf16> to vector<64x32xbf16>
    %85 = vector.extract_strided_slice %81 {offsets = [0, 96], sizes = [64, 32], strides = [1, 1]} : vector<64x128xbf16> to vector<64x32xbf16>
    %86 = vector.shape_cast %82 : vector<64x32xbf16> to vector<1x64x32xbf16>
    %87 = vector.shape_cast %83 : vector<64x32xbf16> to vector<1x64x32xbf16>
    %88 = vector.shape_cast %84 : vector<64x32xbf16> to vector<1x64x32xbf16>
    %89 = vector.shape_cast %85 : vector<64x32xbf16> to vector<1x64x32xbf16>
    %90 = tpu.concatenate %86, %87, %88, %89 in 0 : vector<1x64x32xbf16>, vector<1x64x32xbf16>, vector<1x64x32xbf16>, vector<1x64x32xbf16> -> vector<4x64x32xbf16>
    "tpu.trace_start"() <{level = 10 : i32, message = "hqd,hkd->hqk"}> : () -> ()
    %cst_26 = arith.constant dense<0.000000e+00> : vector<4x64x64xf32>
    %91 = tpu.matmul %70, %80, %cst_26 {dimension_numbers = #tpu.dot_dimension_numbers<[2], [2], [1], [1], [0, 0, 0, 1, 1, 1], [0], [0]>} : vector<4x64x32xbf16>, vector<4x64x32xbf16>, vector<4x64x64xf32> -> vector<4x64x64xf32>
    "tpu.trace_stop"() : () -> ()
    %cst_27 = arith.constant dense<0xFF800000> : vector<4x64xf32>
    %92 = vector.multi_reduction <maximumf>, %91, %cst_27 [2] : vector<4x64x64xf32> to vector<4x64xf32>
    %93 = vector.shape_cast %92 : vector<4x64xf32> to vector<4x64x1xf32>
    %94 = vector.broadcast %93 : vector<4x64x1xf32> to vector<4x64x64xf32>
    %95 = arith.subf %91, %94 : vector<4x64x64xf32>
    %96 = math.exp %95 : vector<4x64x64xf32>
    %cst_28 = arith.constant dense<0.000000e+00> : vector<4x64xf32>
    %97 = vector.multi_reduction <add>, %96, %cst_28 [2] : vector<4x64x64xf32> to vector<4x64xf32>
    %98 = vector.shape_cast %97 : vector<4x64xf32> to vector<4x64x1xf32>
    %99 = tpu.reciprocal %98 {approx = true} : vector<4x64x1xf32> -> vector<4x64x1xf32>
    %100 = vector.broadcast %99 : vector<4x64x1xf32> to vector<4x64x64xf32>
    %101 = arith.mulf %96, %100 : vector<4x64x64xf32>
    %102 = arith.truncf %101 : vector<4x64x64xf32> to vector<4x64x64xbf16>
    "tpu.trace_start"() <{level = 10 : i32, message = "hqk,hkd->hqd"}> : () -> ()
    %cst_29 = arith.constant dense<0.000000e+00> : vector<4x64x32xf32>
    %103 = tpu.matmul %102, %90, %cst_29 {dimension_numbers = #tpu.dot_dimension_numbers<[2], [1], [1], [2], [0, 0, 0, 1, 1, 2], [0], [0]>} : vector<4x64x64xbf16>, vector<4x64x32xbf16>, vector<4x64x32xf32> -> vector<4x64x32xf32>
    "tpu.trace_stop"() : () -> ()
    %104 = vector.extract_strided_slice %103 {offsets = [0, 0, 0], sizes = [1, 64, 32], strides = [1, 1, 1]} : vector<4x64x32xf32> to vector<1x64x32xf32>
    %105 = vector.shape_cast %104 : vector<1x64x32xf32> to vector<64x32xf32>
    %106 = vector.extract_strided_slice %103 {offsets = [1, 0, 0], sizes = [1, 64, 32], strides = [1, 1, 1]} : vector<4x64x32xf32> to vector<1x64x32xf32>
    %107 = vector.shape_cast %106 : vector<1x64x32xf32> to vector<64x32xf32>
    %108 = vector.extract_strided_slice %103 {offsets = [2, 0, 0], sizes = [1, 64, 32], strides = [1, 1, 1]} : vector<4x64x32xf32> to vector<1x64x32xf32>
    %109 = vector.shape_cast %108 : vector<1x64x32xf32> to vector<64x32xf32>
    %110 = vector.extract_strided_slice %103 {offsets = [3, 0, 0], sizes = [1, 64, 32], strides = [1, 1, 1]} : vector<4x64x32xf32> to vector<1x64x32xf32>
    %111 = vector.shape_cast %110 : vector<1x64x32xf32> to vector<64x32xf32>
    %112 = tpu.concatenate %105, %107, %109, %111 in 1 : vector<64x32xf32>, vector<64x32xf32>, vector<64x32xf32>, vector<64x32xf32> -> vector<64x128xf32>
    %113 = arith.truncf %112 : vector<64x128xf32> to vector<64x128xbf16>
    %c0_30 = arith.constant 0 : index
    %c0_31 = arith.constant 0 : index
    %114 = vector.load %arg8[%c0_30, %c0_31] : memref<128x128xbf16, #tpu.memory_space<vmem>>, vector<128x128xbf16>
    %cst_32 = arith.constant dense<0.000000e+00> : vector<64x128xf32>
    %115 = tpu.matmul %113, %114, %cst_32 {dimension_numbers = #tpu.dot_dimension_numbers<[1], [0], [0], [1], [0, 0, 1, 1], [], []>} : vector<64x128xbf16>, vector<128x128xbf16>, vector<64x128xf32> -> vector<64x128xf32>
    %c0_33 = arith.constant 0 : index
    %c0_34 = arith.constant 0 : index
    %116 = vector.load %arg9[%c0_33, %c0_34] : memref<1x128xf32, #tpu.memory_space<vmem>>, vector<1x128xf32>
    %117 = vector.broadcast %116 : vector<1x128xf32> to vector<64x128xf32>
    %118 = arith.addf %115, %117 : vector<64x128xf32>
    %119 = arith.addf %1, %118 : vector<64x128xf32>
    %c0_35 = arith.constant 0 : index
    %c0_36 = arith.constant 0 : index
    %120 = vector.load %arg10[%c0_35, %c0_36] : memref<128x128xbf16, #tpu.memory_space<vmem>>, vector<128x128xbf16>
    %cst_37 = arith.constant dense<0.000000e+00> : vector<64x128xf32>
    %121 = tpu.matmul %52, %120, %cst_37 {dimension_numbers = #tpu.dot_dimension_numbers<[1], [0], [0], [1], [0, 0, 1, 1], [], []>} : vector<64x128xbf16>, vector<128x128xbf16>, vector<64x128xf32> -> vector<64x128xf32>
    %c0_38 = arith.constant 0 : index
    %c0_39 = arith.constant 0 : index
    %122 = vector.load %arg11[%c0_38, %c0_39] : memref<128x256xbf16, #tpu.memory_space<vmem>>, vector<128x256xbf16>
    %cst_40 = arith.constant dense<0.000000e+00> : vector<32x256xf32>
    %123 = tpu.matmul %53, %122, %cst_40 {dimension_numbers = #tpu.dot_dimension_numbers<[1], [0], [0], [1], [0, 0, 1, 1], [], []>} : vector<32x128xbf16>, vector<128x256xbf16>, vector<32x256xf32> -> vector<32x256xf32>
    %124 = vector.extract_strided_slice %123 {offsets = [0, 0], sizes = [32, 128], strides = [1, 1]} : vector<32x256xf32> to vector<32x128xf32>
    %125 = vector.extract_strided_slice %123 {offsets = [0, 128], sizes = [32, 128], strides = [1, 1]} : vector<32x256xf32> to vector<32x128xf32>
    %cst_41 = arith.constant 0.176776692 : f32
    %126 = vector.broadcast %cst_41 : f32 to vector<64x128xf32>
    %127 = arith.mulf %121, %126 : vector<64x128xf32>
    %128 = arith.truncf %127 : vector<64x128xf32> to vector<64x128xbf16>
    %129 = vector.extract_strided_slice %128 {offsets = [0, 0], sizes = [64, 32], strides = [1, 1]} : vector<64x128xbf16> to vector<64x32xbf16>
    %130 = vector.extract_strided_slice %128 {offsets = [0, 32], sizes = [64, 32], strides = [1, 1]} : vector<64x128xbf16> to vector<64x32xbf16>
    %131 = vector.extract_strided_slice %128 {offsets = [0, 64], sizes = [64, 32], strides = [1, 1]} : vector<64x128xbf16> to vector<64x32xbf16>
    %132 = vector.extract_strided_slice %128 {offsets = [0, 96], sizes = [64, 32], strides = [1, 1]} : vector<64x128xbf16> to vector<64x32xbf16>
    %133 = vector.shape_cast %129 : vector<64x32xbf16> to vector<1x64x32xbf16>
    %134 = vector.shape_cast %130 : vector<64x32xbf16> to vector<1x64x32xbf16>
    %135 = vector.shape_cast %131 : vector<64x32xbf16> to vector<1x64x32xbf16>
    %136 = vector.shape_cast %132 : vector<64x32xbf16> to vector<1x64x32xbf16>
    %137 = tpu.concatenate %133, %134, %135, %136 in 0 : vector<1x64x32xbf16>, vector<1x64x32xbf16>, vector<1x64x32xbf16>, vector<1x64x32xbf16> -> vector<4x64x32xbf16>
    %138 = arith.truncf %124 : vector<32x128xf32> to vector<32x128xbf16>
    %139 = vector.extract_strided_slice %138 {offsets = [0, 0], sizes = [32, 32], strides = [1, 1]} : vector<32x128xbf16> to vector<32x32xbf16>
    %140 = vector.extract_strided_slice %138 {offsets = [0, 32], sizes = [32, 32], strides = [1, 1]} : vector<32x128xbf16> to vector<32x32xbf16>
    %141 = vector.extract_strided_slice %138 {offsets = [0, 64], sizes = [32, 32], strides = [1, 1]} : vector<32x128xbf16> to vector<32x32xbf16>
    %142 = vector.extract_strided_slice %138 {offsets = [0, 96], sizes = [32, 32], strides = [1, 1]} : vector<32x128xbf16> to vector<32x32xbf16>
    %143 = vector.shape_cast %139 : vector<32x32xbf16> to vector<1x32x32xbf16>
    %144 = vector.shape_cast %140 : vector<32x32xbf16> to vector<1x32x32xbf16>
    %145 = vector.shape_cast %141 : vector<32x32xbf16> to vector<1x32x32xbf16>
    %146 = vector.shape_cast %142 : vector<32x32xbf16> to vector<1x32x32xbf16>
    %147 = tpu.concatenate %143, %144, %145, %146 in 0 : vector<1x32x32xbf16>, vector<1x32x32xbf16>, vector<1x32x32xbf16>, vector<1x32x32xbf16> -> vector<4x32x32xbf16>
    %148 = arith.truncf %125 : vector<32x128xf32> to vector<32x128xbf16>
    %149 = vector.extract_strided_slice %148 {offsets = [0, 0], sizes = [32, 32], strides = [1, 1]} : vector<32x128xbf16> to vector<32x32xbf16>
    %150 = vector.extract_strided_slice %148 {offsets = [0, 32], sizes = [32, 32], strides = [1, 1]} : vector<32x128xbf16> to vector<32x32xbf16>
    %151 = vector.extract_strided_slice %148 {offsets = [0, 64], sizes = [32, 32], strides = [1, 1]} : vector<32x128xbf16> to vector<32x32xbf16>
    %152 = vector.extract_strided_slice %148 {offsets = [0, 96], sizes = [32, 32], strides = [1, 1]} : vector<32x128xbf16> to vector<32x32xbf16>
    %153 = vector.shape_cast %149 : vector<32x32xbf16> to vector<1x32x32xbf16>
    %154 = vector.shape_cast %150 : vector<32x32xbf16> to vector<1x32x32xbf16>
    %155 = vector.shape_cast %151 : vector<32x32xbf16> to vector<1x32x32xbf16>
    %156 = vector.shape_cast %152 : vector<32x32xbf16> to vector<1x32x32xbf16>
    %157 = tpu.concatenate %153, %154, %155, %156 in 0 : vector<1x32x32xbf16>, vector<1x32x32xbf16>, vector<1x32x32xbf16>, vector<1x32x32xbf16> -> vector<4x32x32xbf16>
    "tpu.trace_start"() <{level = 10 : i32, message = "hqd,hkd->hqk"}> : () -> ()
    %cst_42 = arith.constant dense<0.000000e+00> : vector<4x64x32xf32>
    %158 = tpu.matmul %137, %147, %cst_42 {dimension_numbers = #tpu.dot_dimension_numbers<[2], [2], [1], [1], [0, 0, 0, 1, 1, 1], [0], [0]>} : vector<4x64x32xbf16>, vector<4x32x32xbf16>, vector<4x64x32xf32> -> vector<4x64x32xf32>
    "tpu.trace_stop"() : () -> ()
    %cst_43 = arith.constant dense<0xFF800000> : vector<4x64xf32>
    %159 = vector.multi_reduction <maximumf>, %158, %cst_43 [2] : vector<4x64x32xf32> to vector<4x64xf32>
    %160 = vector.shape_cast %159 : vector<4x64xf32> to vector<4x64x1xf32>
    %161 = vector.broadcast %160 : vector<4x64x1xf32> to vector<4x64x32xf32>
    %162 = arith.subf %158, %161 : vector<4x64x32xf32>
    %163 = math.exp %162 : vector<4x64x32xf32>
    %cst_44 = arith.constant dense<0.000000e+00> : vector<4x64xf32>
    %164 = vector.multi_reduction <add>, %163, %cst_44 [2] : vector<4x64x32xf32> to vector<4x64xf32>
    %165 = vector.shape_cast %164 : vector<4x64xf32> to vector<4x64x1xf32>
    %166 = tpu.reciprocal %165 {approx = true} : vector<4x64x1xf32> -> vector<4x64x1xf32>
    %167 = vector.broadcast %166 : vector<4x64x1xf32> to vector<4x64x32xf32>
    %168 = arith.mulf %163, %167 : vector<4x64x32xf32>
    %169 = arith.truncf %168 : vector<4x64x32xf32> to vector<4x64x32xbf16>
    "tpu.trace_start"() <{level = 10 : i32, message = "hqk,hkd->hqd"}> : () -> ()
    %cst_45 = arith.constant dense<0.000000e+00> : vector<4x64x32xf32>
    %170 = tpu.matmul %169, %157, %cst_45 {dimension_numbers = #tpu.dot_dimension_numbers<[2], [1], [1], [2], [0, 0, 0, 1, 1, 2], [0], [0]>} : vector<4x64x32xbf16>, vector<4x32x32xbf16>, vector<4x64x32xf32> -> vector<4x64x32xf32>
    "tpu.trace_stop"() : () -> ()
    %171 = vector.extract_strided_slice %170 {offsets = [0, 0, 0], sizes = [1, 64, 32], strides = [1, 1, 1]} : vector<4x64x32xf32> to vector<1x64x32xf32>
    %172 = vector.shape_cast %171 : vector<1x64x32xf32> to vector<64x32xf32>
    %173 = vector.extract_strided_slice %170 {offsets = [1, 0, 0], sizes = [1, 64, 32], strides = [1, 1, 1]} : vector<4x64x32xf32> to vector<1x64x32xf32>
    %174 = vector.shape_cast %173 : vector<1x64x32xf32> to vector<64x32xf32>
    %175 = vector.extract_strided_slice %170 {offsets = [2, 0, 0], sizes = [1, 64, 32], strides = [1, 1, 1]} : vector<4x64x32xf32> to vector<1x64x32xf32>
    %176 = vector.shape_cast %175 : vector<1x64x32xf32> to vector<64x32xf32>
    %177 = vector.extract_strided_slice %170 {offsets = [3, 0, 0], sizes = [1, 64, 32], strides = [1, 1, 1]} : vector<4x64x32xf32> to vector<1x64x32xf32>
    %178 = vector.shape_cast %177 : vector<1x64x32xf32> to vector<64x32xf32>
    %179 = tpu.concatenate %172, %174, %176, %178 in 1 : vector<64x32xf32>, vector<64x32xf32>, vector<64x32xf32>, vector<64x32xf32> -> vector<64x128xf32>
    %180 = arith.truncf %179 : vector<64x128xf32> to vector<64x128xbf16>
    %c0_46 = arith.constant 0 : index
    %c0_47 = arith.constant 0 : index
    %181 = vector.load %arg12[%c0_46, %c0_47] : memref<128x128xbf16, #tpu.memory_space<vmem>>, vector<128x128xbf16>
    %cst_48 = arith.constant dense<0.000000e+00> : vector<64x128xf32>
    %182 = tpu.matmul %180, %181, %cst_48 {dimension_numbers = #tpu.dot_dimension_numbers<[1], [0], [0], [1], [0, 0, 1, 1], [], []>} : vector<64x128xbf16>, vector<128x128xbf16>, vector<64x128xf32> -> vector<64x128xf32>
    %c0_49 = arith.constant 0 : index
    %c0_50 = arith.constant 0 : index
    %183 = vector.load %arg13[%c0_49, %c0_50] : memref<1x128xf32, #tpu.memory_space<vmem>>, vector<1x128xf32>
    %184 = vector.broadcast %183 : vector<1x128xf32> to vector<64x128xf32>
    %185 = arith.addf %182, %184 : vector<64x128xf32>
    %186 = arith.addf %119, %185 : vector<64x128xf32>
    %c0_51 = arith.constant 0 : index
    %c0_52 = arith.constant 0 : index
    %187 = vector.load %arg14[%c0_51, %c0_52] : memref<1x128xf32, #tpu.memory_space<vmem>>, vector<1x128xf32>
    %c0_53 = arith.constant 0 : index
    %c0_54 = arith.constant 0 : index
    %188 = vector.load %arg15[%c0_53, %c0_54] : memref<1x128xf32, #tpu.memory_space<vmem>>, vector<1x128xf32>
    %cst_55 = arith.constant dense<0.000000e+00> : vector<64xf32>
    %189 = vector.multi_reduction <add>, %186, %cst_55 [1] : vector<64x128xf32> to vector<64xf32>
    %190 = vector.shape_cast %189 : vector<64xf32> to vector<64x1xf32>
    %cst_56 = arith.constant 1.280000e+02 : f32
    %191 = vector.broadcast %cst_56 : f32 to vector<64x1xf32>
    %192 = arith.divf %190, %191 : vector<64x1xf32>
    %193 = vector.broadcast %192 : vector<64x1xf32> to vector<64x128xf32>
    %194 = arith.subf %186, %193 : vector<64x128xf32>
    %195 = arith.mulf %194, %194 : vector<64x128xf32>
    %cst_57 = arith.constant dense<0.000000e+00> : vector<64xf32>
    %196 = vector.multi_reduction <add>, %195, %cst_57 [1] : vector<64x128xf32> to vector<64xf32>
    %197 = vector.shape_cast %196 : vector<64xf32> to vector<64x1xf32>
    %cst_58 = arith.constant 1.280000e+02 : f32
    %198 = vector.broadcast %cst_58 : f32 to vector<64x1xf32>
    %199 = arith.divf %197, %198 : vector<64x1xf32>
    %200 = vector.broadcast %192 : vector<64x1xf32> to vector<64x128xf32>
    %201 = arith.subf %186, %200 : vector<64x128xf32>
    %cst_59 = arith.constant 9.99999974E-6 : f32
    %202 = vector.broadcast %cst_59 : f32 to vector<64x1xf32>
    %203 = arith.addf %199, %202 : vector<64x1xf32>
    %204 = math.rsqrt %203 : vector<64x1xf32>
    %205 = vector.broadcast %204 : vector<64x1xf32> to vector<64x128xf32>
    %206 = arith.mulf %201, %205 : vector<64x128xf32>
    %207 = vector.broadcast %187 : vector<1x128xf32> to vector<64x128xf32>
    %208 = arith.mulf %206, %207 : vector<64x128xf32>
    %209 = vector.broadcast %188 : vector<1x128xf32> to vector<64x128xf32>
    %210 = arith.addf %208, %209 : vector<64x128xf32>
    %211 = arith.truncf %210 : vector<64x128xf32> to vector<64x128xbf16>
    %c0_60 = arith.constant 0 : index
    %c0_61 = arith.constant 0 : index
    %212 = vector.load %arg16[%c0_60, %c0_61] : memref<128x512xbf16, #tpu.memory_space<vmem>>, vector<128x512xbf16>
    %cst_62 = arith.constant dense<0.000000e+00> : vector<64x512xf32>
    %213 = tpu.matmul %211, %212, %cst_62 {dimension_numbers = #tpu.dot_dimension_numbers<[1], [0], [0], [1], [0, 0, 1, 1], [], []>} : vector<64x128xbf16>, vector<128x512xbf16>, vector<64x512xf32> -> vector<64x512xf32>
    %c0_63 = arith.constant 0 : index
    %c0_64 = arith.constant 0 : index
    %214 = vector.load %arg17[%c0_63, %c0_64] : memref<1x512xf32, #tpu.memory_space<vmem>>, vector<1x512xf32>
    %215 = vector.broadcast %214 : vector<1x512xf32> to vector<64x512xf32>
    %216 = arith.addf %213, %215 : vector<64x512xf32>
    %cst_65 = arith.constant 5.000000e-01 : f32
    %217 = vector.broadcast %cst_65 : f32 to vector<64x512xf32>
    %218 = arith.mulf %217, %216 : vector<64x512xf32>
    %cst_66 = arith.constant 0.707106769 : f32
    %219 = vector.broadcast %cst_66 : f32 to vector<64x512xf32>
    %220 = arith.mulf %216, %219 : vector<64x512xf32>
    %221 = math.erf %220 : vector<64x512xf32>
    %cst_67 = arith.constant 1.000000e+00 : f32
    %222 = vector.broadcast %cst_67 : f32 to vector<64x512xf32>
    %223 = arith.addf %222, %221 : vector<64x512xf32>
    %224 = arith.mulf %218, %223 : vector<64x512xf32>
    %225 = arith.truncf %224 : vector<64x512xf32> to vector<64x512xbf16>
    %c0_68 = arith.constant 0 : index
    %c0_69 = arith.constant 0 : index
    %226 = vector.load %arg18[%c0_68, %c0_69] : memref<512x128xbf16, #tpu.memory_space<vmem>>, vector<512x128xbf16>
    %cst_70 = arith.constant dense<0.000000e+00> : vector<64x128xf32>
    %227 = tpu.matmul %225, %226, %cst_70 {dimension_numbers = #tpu.dot_dimension_numbers<[1], [0], [0], [1], [0, 0, 1, 1], [], []>} : vector<64x512xbf16>, vector<512x128xbf16>, vector<64x128xf32> -> vector<64x128xf32>
    %c0_71 = arith.constant 0 : index
    %c0_72 = arith.constant 0 : index
    %228 = vector.load %arg19[%c0_71, %c0_72] : memref<1x128xf32, #tpu.memory_space<vmem>>, vector<1x128xf32>
    %229 = vector.broadcast %228 : vector<1x128xf32> to vector<64x128xf32>
    %230 = arith.addf %227, %229 : vector<64x128xf32>
    %231 = arith.addf %186, %230 : vector<64x128xf32>
    %c0_73 = arith.constant 0 : index
    %c0_74 = arith.constant 0 : index
    %c0_75 = arith.constant 0 : index
    %232 = vector.load %arg20[%c0_73, %c0_74, %c0_75] : memref<1x64x128xf32, #tpu.memory_space<vmem>>, vector<1x64x128xf32>
    %233 = vector.shape_cast %232 : vector<1x64x128xf32> to vector<64x128xf32>
    %234 = vector.shape_cast %231 : vector<64x128xf32> to vector<1x64x128xf32>
    tpu.vector_store %arg20[%c0_73, %c0_74, %c0_75], %234 {strides = array<i32>} : memref<1x64x128xf32, #tpu.memory_space<vmem>>, vector<1x64x128xf32>,
    return
  }
  func.func @transform_0(%arg0: i32) -> (i32, i32, i32) {
    %c0_i32 = arith.constant 0 : i32
    %c0_i32_0 = arith.constant 0 : i32
    %c0_i32_1 = arith.constant 0 : i32
    return %arg0, %c0_i32, %c0_i32_0 : i32, i32, i32
  }
  func.func @transform_1(%arg0: i32) -> (i32, i32, i32) {
    %c0_i32 = arith.constant 0 : i32
    %c0_i32_0 = arith.constant 0 : i32
    %c0_i32_1 = arith.constant 0 : i32
    return %arg0, %c0_i32, %c0_i32_0 : i32, i32, i32
  }
  func.func @transform_2(%arg0: i32) -> (i32, i32) {
    %c0_i32 = arith.constant 0 : i32
    %c0_i32_0 = arith.constant 0 : i32
    %c0_i32_1 = arith.constant 0 : i32
    return %c0_i32, %c0_i32_0 : i32, i32
  }
  func.func @transform_3(%arg0: i32) -> (i32, i32) {
    %c0_i32 = arith.constant 0 : i32
    %c0_i32_0 = arith.constant 0 : i32
    %c0_i32_1 = arith.constant 0 : i32
    return %c0_i32, %c0_i32_0 : i32, i32
  }
  func.func @transform_4(%arg0: i32) -> (i32, i32) {
    %c0_i32 = arith.constant 0 : i32
    %c0_i32_0 = arith.constant 0 : i32
    %c0_i32_1 = arith.constant 0 : i32
    return %c0_i32, %c0_i32_0 : i32, i32
  }
  func.func @transform_5(%arg0: i32) -> (i32, i32) {
    %c0_i32 = arith.constant 0 : i32
    %c0_i32_0 = arith.constant 0 : i32
    %c0_i32_1 = arith.constant 0 : i32
    return %c0_i32, %c0_i32_0 : i32, i32
  }
  func.func @transform_6(%arg0: i32) -> (i32, i32) {
    %c0_i32 = arith.constant 0 : i32
    %c0_i32_0 = arith.constant 0 : i32
    %c0_i32_1 = arith.constant 0 : i32
    return %c0_i32, %c0_i32_0 : i32, i32
  }
  func.func @transform_7(%arg0: i32) -> (i32, i32) {
    %c0_i32 = arith.constant 0 : i32
    %c0_i32_0 = arith.constant 0 : i32
    %c0_i32_1 = arith.constant 0 : i32
    return %c0_i32, %c0_i32_0 : i32, i32
  }
  func.func @transform_8(%arg0: i32) -> (i32, i32) {
    %c0_i32 = arith.constant 0 : i32
    %c0_i32_0 = arith.constant 0 : i32
    %c0_i32_1 = arith.constant 0 : i32
    return %c0_i32, %c0_i32_0 : i32, i32
  }
  func.func @transform_9(%arg0: i32) -> (i32, i32) {
    %c0_i32 = arith.constant 0 : i32
    %c0_i32_0 = arith.constant 0 : i32
    %c0_i32_1 = arith.constant 0 : i32
    return %c0_i32, %c0_i32_0 : i32, i32
  }
  func.func @transform_10(%arg0: i32) -> (i32, i32) {
    %c0_i32 = arith.constant 0 : i32
    %c0_i32_0 = arith.constant 0 : i32
    %c0_i32_1 = arith.constant 0 : i32
    return %c0_i32, %c0_i32_0 : i32, i32
  }
  func.func @transform_11(%arg0: i32) -> (i32, i32) {
    %c0_i32 = arith.constant 0 : i32
    %c0_i32_0 = arith.constant 0 : i32
    %c0_i32_1 = arith.constant 0 : i32
    return %c0_i32, %c0_i32_0 : i32, i32
  }
  func.func @transform_12(%arg0: i32) -> (i32, i32) {
    %c0_i32 = arith.constant 0 : i32
    %c0_i32_0 = arith.constant 0 : i32
    %c0_i32_1 = arith.constant 0 : i32
    return %c0_i32, %c0_i32_0 : i32, i32
  }
  func.func @transform_13(%arg0: i32) -> (i32, i32) {
    %c0_i32 = arith.constant 0 : i32
    %c0_i32_0 = arith.constant 0 : i32
    %c0_i32_1 = arith.constant 0 : i32
    return %c0_i32, %c0_i32_0 : i32, i32
  }
  func.func @transform_14(%arg0: i32) -> (i32, i32) {
    %c0_i32 = arith.constant 0 : i32
    %c0_i32_0 = arith.constant 0 : i32
    %c0_i32_1 = arith.constant 0 : i32
    return %c0_i32, %c0_i32_0 : i32, i32
  }
  func.func @transform_15(%arg0: i32) -> (i32, i32) {
    %c0_i32 = arith.constant 0 : i32
    %c0_i32_0 = arith.constant 0 : i32
    %c0_i32_1 = arith.constant 0 : i32
    return %c0_i32, %c0_i32_0 : i32, i32
  }
  func.func @transform_16(%arg0: i32) -> (i32, i32) {
    %c0_i32 = arith.constant 0 : i32
    %c0_i32_0 = arith.constant 0 : i32
    %c0_i32_1 = arith.constant 0 : i32
    return %c0_i32, %c0_i32_0 : i32, i32
  }
  func.func @transform_17(%arg0: i32) -> (i32, i32) {
    %c0_i32 = arith.constant 0 : i32
    %c0_i32_0 = arith.constant 0 : i32
    %c0_i32_1 = arith.constant 0 : i32
    return %c0_i32, %c0_i32_0 : i32, i32
  }
  func.func @transform_18(%arg0: i32) -> (i32, i32) {
    %c0_i32 = arith.constant 0 : i32
    %c0_i32_0 = arith.constant 0 : i32
    %c0_i32_1 = arith.constant 0 : i32
    return %c0_i32, %c0_i32_0 : i32, i32
  }
  func.func @transform_19(%arg0: i32) -> (i32, i32, i32) {
    %c0_i32 = arith.constant 0 : i32
    %c0_i32_0 = arith.constant 0 : i32
    %c0_i32_1 = arith.constant 0 : i32
    return %arg0, %c0_i32, %c0_i32_0 : i32, i32, i32
  }
}

</mosaic_0001>

<bundles_post_ra>
// kernel: tpu_custom_call.1
= control target key start
LH: loop header
LB: loop body
LE: loop exit
PB: predicated region body
PF: predicated region fallthrough
CT: control target
= control target key end

     0   :  { %s9435_s0 = inlined_call_operand.hbm [shape: f32[2,64,128], index: 0, kind: input, shape index: {}]   ;;  %s9436_s1 = inlined_call_operand.hbm [shape: f32[2,32,128], index: 1, kind: input, shape index: {}]   ;;  %s9437_s2 = inlined_call_operand.vmem [shape: f32[1,128], index: 2, kind: input, shape index: {}]   ;;  %s9438_s3 = inlined_call_operand.vmem [shape: f32[1,128], index: 3, kind: input, shape index: {}]   ;;  %s9439_s4 = inlined_call_operand.vmem [shape: f32[1,128], index: 4, kind: input, shape index: {}]   ;;  %s9440_s5 = inlined_call_operand.vmem [shape: f32[1,128], index: 5, kind: input, shape index: {}]   ;;  %s9441_s6 = inlined_call_operand.hbm [shape: bf16[128,384], index: 6, kind: input, shape index: {}]   ;;  %s9442_s7 = inlined_call_operand.hbm [shape: bf16[128,128], index: 7, kind: input, shape index: {}]   ;;  %s9443_s8 = inlined_call_operand.vmem [shape: f32[1,128], index: 8, kind: input, shape index: {}]   ;;  %s9444_s9 = inlined_call_operand.hbm [shape: bf16[128,128], index: 9, kind: input, shape index: {}]   ;;  %s9445_s10 = inlined_call_operand.hbm [shape: bf16[128,256], index: 10, kind: input, shape index: {}]   ;;  %s9446_s11 = inlined_call_operand.hbm [shape: bf16[128,128], index: 11, kind: input, shape index: {}]   ;;  %s9447_s12 = inlined_call_operand.vmem [shape: f32[1,128], index: 12, kind: input, shape index: {}]   ;;  %s9448_s13 = inlined_call_operand.vmem [shape: f32[1,128], index: 13, kind: input, shape index: {}]   ;;  %s9449_s14 = inlined_call_operand.vmem [shape: f32[1,128], index: 14, kind: input, shape index: {}]   ;;  %s9450_s15 = inlined_call_operand.hbm [shape: bf16[128,512], index: 15, kind: input, shape index: {}]   ;;  %s9451_s16 = inlined_call_operand.vmem [shape: f32[1,512], index: 16, kind: input, shape index: {}]   ;;  %s9452_s17 = inlined_call_operand.hbm [shape: bf16[512,128], index: 17, kind: input, shape index: {}]   ;;  %s9453_s18 = inlined_call_operand.vmem [shape: f32[1,128], index: 18, kind: input, shape index: {}]   ;;  %s9454_s19 = inlined_call_operand.hbm [shape: f32[2,64,128], index: 19, kind: output, shape index: {}]  }
   0x1   :  { %9474 = sst [smem:[#allocation29_spill]] %s9435_s0 }
   0x2   :  { %9475 = sst [smem:[#allocation30_spill]] %s9436_s1 }
   0x3   :  { %9476 = sst [smem:[#allocation31_spill]] %s9437_s2 }
   0x4   :  { %9477 = sst [smem:[#allocation32_spill]] %s9438_s3 }
   0x5   :  { %9478 = sst [smem:[#allocation33_spill]] %s9441_s6 }
   0x6   :  { %9479 = sst [smem:[#allocation34_spill]] %s9442_s7 }
   0x7   :  { %9480 = sst [smem:[#allocation35_spill]] %s9444_s9 }
   0x8   :  { %9481 = sst [smem:[#allocation36_spill]] %s9445_s10 }
   0x9   :  { %9482 = sst [smem:[#allocation37_spill]] %s9446_s11 }
   0xa   :  { %9483 = sst [smem:[#allocation38_spill]] %s9450_s15 }
   0xb   :  { %9484 = sst [smem:[#allocation39_spill]] %s9451_s16 }
   0xc   :  { %9485 = sst [smem:[#allocation40_spill]] %s9452_s17 }
   0xd   :  { %9486 = sst [smem:[#allocation41_spill]] %s9453_s18 }
   0xe   :  { %9487 = sst [smem:[#allocation42_spill]] %s9454_s19 }
   0xf   :  { %24 = vsyncpa [#allocation3], 0 }
  0x10   :  { %26 = vsyncpa [#allocation3 + $0x1], 0 }
  0x11   :  { %27 = vsyncpa [#allocation6], 0 }
  0x12   :  { %29 = vsyncpa [#allocation6 + $0x1], 0 }
  0x13   :  { %30 = vsyncpa [#allocation9], 0 }
  0x14   :  { %31 = vsyncpa [#allocation12], 0 }
  0x15   :  { %32 = vsyncpa [#allocation15], 0 }
  0x16   :  { %33 = vsyncpa [#allocation4], 0 }
  0x17   :  { %35 = vsyncpa [#allocation4 + $0x1], 0  ;;  %s7610_s0 = smov 0   ;;  %s7612_s30 = smov 0  }
  0x18   :  { %s7614_s20 = smov 0   ;;  %s7616_s21 = smov 0  }
  0x19 LB: > { %9488 = sst [smem:[#allocation25_spill]] %s7480_s20  ;;  %s7486_s1 = smov [#allocation7]   ;;  %s7484_s21 = sphi %s7616_s21, %s9532_s21   ;;  %s7480_s20 = sphi %s7614_s20, %s9534_s20   ;;  %s7476_s30 = sphi %s7612_s30, %s9536_s30   ;;  %s7472_s0 = sphi %s7610_s0, %s9535_s0  }
  0x1a   : > { %s505_s22 = sshll.u32 %s7486_s1, 4  ;;  %s7631_s2 = sadd.s32 4294967295, %s7484_s21   ;;  %s506_s22 = int_to_ptr.vmem [resolvable:$true] %s505_s22 }
  0x1b   : > { %p5559_p0 = scmp.ge.s32.totalorder %s7484_s21, 1  ;;  %p9466_p1 = scmp.eq.s32.totalorder %s7631_s2, 0 }
  0x1c   : > { %p481_p2 = scmp.lt.s32.totalorder %s7484_s21, 3  ;;  %s7487_s24 = smov [#allocation8]  }
  0x1d   : > { %s518_s25 = sshll.u32 %s7487_s24, 4  ;;  %s7488_s26 = smov [#allocation11]   ;;  %s7649_s25 = int_to_ptr.vmem [resolvable:$true] %s518_s25 }
  0x1e   : > { %p7636_p3 = pnand %p5559_p0, %p481_p2  ;;  %s7651_s27 = sshll.u32 %s7488_s26, 4  ;;  %s548_s27 = int_to_ptr.vmem [resolvable:$true] %s7651_s27 }
  0x1f   : > { %s7173_s29 = scalar_lea.vmem %s506_s22, 3072  ;;  %p7181_p11 = scmp.lt.s32.totalorder %s506_s22, %s506_s22 }
  0x20   : > { %p6412_p5 = pneg %p7636_p3  ;;  %p7174_p8 = scmp.ne.s32.totalorder %s506_s22, %s7173_s29 }
  0x21   : > { %p7182_p12 = scmp.lt.s32.totalorder %s7173_s29, %s7173_s29 }
  0x22   : > { %p7645_p6 = pnand %p6412_p5, %p9466_p1 }
  0x23   : > { %p7183_p13 = por %p7182_p12, %p7181_p11 }
  0x24   : > { %p7655_p7 = pneg %p7645_p6 }
  0x26   : > { %p7176_p9 = pnand %p7174_p8, %p7655_p7 }
  0x28   : > { %p7177_p10 = pneg %p7176_p9 }
  0x2a   : > { %p7184_p0 = pnand %p7183_p13, %p7177_p10 }
  0x2c   : > { %7187 = shalt.err (!%p7184_p0)
}
  0x2d   : > { %s7489_s1 = smov 192   ;;  %s7490_s24 = smov 12  }
  0x2e   : > { %s9492_s6 = sld [smem:[#allocation33_spill]]  ;;  %s7199_s18 = scalar_lea.vmem %s7649_s25, 1024 }
  0x2f   : > { %p7200_p2 = scmp.ne.s32.totalorder %s7649_s25, %s7199_s18  ;;  %p7207_p9 = scmp.lt.s32.totalorder %s7649_s25, %s7649_s25 }
  0x30   : > { %p7208_p10 = scmp.lt.s32.totalorder %s7199_s18, %s7199_s18 }
  0x31   : > { %p7202_p5 = pnand %p7200_p2, %p7655_p7 }
  0x32   : > { %p7209_p11 = por %p7208_p10, %p7207_p9 }
  0x33   : > { %p7203_p8 = pneg %p7202_p5 }
  0x34   : > { %6415 = dma.hbm_to_vmem [thread:$0]  (!%p7645_p6), %s9492_s6, 3072, %s506_s22, [#allocation6], %s7489_s1, %s7489_s1, %s7490_s24  }
  0x35   : > { %p7210_p12 = pnand %p7209_p11, %p7203_p8 }
  0x37   : > { %7213 = shalt.err (!%p7210_p12)
}
  0x38   : > { %s9458_s29 = smov 64   ;;  %s9460_s16 = smov 4  }
  0x39   : > { %s9493_s7 = sld [smem:[#allocation34_spill]]  ;;  %s7225_s1 = scalar_lea.vmem %s548_s27, 2048 }
  0x3a   : > { %p7226_p13 = scmp.ne.s32.totalorder %s548_s27, %s7225_s1  ;;  %p7233_p5 = scmp.lt.s32.totalorder %s548_s27, %s548_s27 }
  0x3b   : > { %p7234_p8 = scmp.lt.s32.totalorder %s7225_s1, %s7225_s1 }
  0x3c   : > { %p7228_p0 = pnand %p7226_p13, %p7655_p7 }
  0x3d   : > { %p7235_p9 = por %p7234_p8, %p7233_p5 }
  0x3e   : > { %p7229_p2 = pneg %p7228_p0 }
  0x3f   : > { %6418 = dma.hbm_to_vmem [thread:$0]  (!%p7645_p6), %s9493_s7, 1024, %s7649_s25, [#allocation9], %s9458_s29, %s9458_s29, %s9460_s16  }
  0x40   : > { %p7236_p10 = pnand %p7235_p9, %p7229_p2 }
  0x42   : > { %7239 = shalt.err (!%p7236_p10)
}
  0x43   : > { %s9462_s18 = smov 128   ;;  %s9464_s24 = smov 8  }
  0x44   : > { %s9494_s10 = sld [smem:[#allocation36_spill]]  ;;  %s7495_s19 = smov [#allocation14]  }
  0x45   : > { %s582_s22 = sshll.u32 %s7495_s19, 4  ;;  %s583_s22 = int_to_ptr.vmem [resolvable:$true] %s582_s22 }
  0x46   : > { %s7251_s29 = scalar_lea.vmem %s583_s22, 4096  ;;  %p7259_p0 = scmp.lt.s32.totalorder %s583_s22, %s583_s22 }
  0x47   : > { %p7252_p11 = scmp.ne.s32.totalorder %s583_s22, %s7251_s29  ;;  %p7260_p2 = scmp.lt.s32.totalorder %s7251_s29, %s7251_s29 }
  0x49   : > { %p7254_p12 = pnand %p7252_p11, %p7655_p7  ;;  %p7261_p5 = por %p7260_p2, %p7259_p0 }
  0x4a   : > { %6424 = dma.hbm_to_vmem [thread:$0]  (!%p7645_p6), %s9494_s10, 2048, %s548_s27, [#allocation12], %s9462_s18, %s9462_s18, %s9464_s24  }
  0x4b   : > { %p7255_p13 = pneg %p7254_p12 }
  0x4d   : > { %p7262_p8 = pnand %p7261_p5, %p7255_p13 }
  0x4f   : > { %7265 = shalt.err (!%p7262_p8)
}
  0x50   : > { %s7496_s1 = smov 256   ;;  %s7497_s16 = smov 16  }
  0x51   : > { %s9495_s15 = sld [smem:[#allocation38_spill]]  ;;  %s7498_s26 = smov [#allocation10]  }
  0x52   : > { %s534_s19 = sshll.u32 %s7498_s26, 4  ;;  %s7499_s18 = smov [#allocation13]   ;;  %s535_s19 = int_to_ptr.vmem [resolvable:$true] %s534_s19 }
  0x53   : > { %s560_s24 = sshll.u32 %s7499_s18, 4  ;;  %s7277_s6 = scalar_lea.vmem %s535_s19, 1024  ;;  %s561_s24 = int_to_ptr.vmem [resolvable:$true] %s560_s24 }
  0x54   : > { %p7278_p9 = scmp.ne.s32.totalorder %s535_s19, %s7277_s6  ;;  %p7285_p12 = scmp.lt.s32.totalorder %s535_s19, %s535_s19 }
  0x55   : > { %p7286_p13 = scmp.lt.s32.totalorder %s7277_s6, %s7277_s6 }
  0x56   : > { %p7280_p10 = pnand %p7278_p9, %p7655_p7 }
  0x57   : > { %6430 = dma.hbm_to_vmem [thread:$0]  (!%p7645_p6), %s9495_s15, 4096, %s583_s22, [#allocation15], %s7496_s1, %s7496_s1, %s7497_s16  }
  0x58   : > { %p7281_p11 = pneg %p7280_p10  ;;  %p7287_p0 = por %p7286_p13, %p7285_p12 }
  0x5a   : > { %p7288_p2 = pnand %p7287_p0, %p7281_p11 }
  0x5c   : > { %7291 = shalt.err (!%p7288_p2)
}
  0x5d   : > { %s9496_s29 = smov 4   ;;  %s9497_s16 = smov 64  }
  0x5e   : > { %s9498_s9 = sld [smem:[#allocation35_spill]]  ;;  %s7303_s18 = scalar_lea.vmem %s561_s24, 1024 }
  0x5f   : > { %p7304_p5 = scmp.ne.s32.totalorder %s561_s24, %s7303_s18  ;;  %p7311_p10 = scmp.lt.s32.totalorder %s561_s24, %s561_s24 }
  0x60   : > { %p7312_p4 = scmp.lt.s32.totalorder %s7303_s18, %s7303_s18 }
  0x61   : > { %p7306_p8 = pnand %p7304_p5, %p7655_p7 }
  0x62   : > { %p7313_p12 = por %p7312_p4, %p7311_p10 }
  0x63   : > { %p7307_p9 = pneg %p7306_p8 }
  0x64   : > { %6421 = dma.hbm_to_vmem [thread:$0]  (!%p7645_p6), %s9498_s9, 1024, %s535_s19, [#allocation9], %s9497_s16, %s9497_s16, %s9496_s29  }
  0x65   : > { %p7314_p11 = pnand %p7313_p12, %p7307_p9 }
  0x67   : > { %7317 = shalt.err (!%p7314_p11)
}
  0x68   : > { %s9499_s11 = sld [smem:[#allocation37_spill]]  ;;  %s7500_s27 = smov [#allocation16]  }
  0x69   : > { %s598_s26 = sshll.u32 %s7500_s27, 4  ;;  %s599_s26 = int_to_ptr.vmem [resolvable:$true] %s598_s26 }
  0x6a   : > { %s7329_s19 = scalar_lea.vmem %s599_s26, 4096  ;;  %p7337_p2 = scmp.lt.s32.totalorder %s599_s26, %s599_s26 }
  0x6b   : > { %p7330_p13 = scmp.ne.s32.totalorder %s599_s26, %s7329_s19  ;;  %p7338_p5 = scmp.lt.s32.totalorder %s7329_s19, %s7329_s19 }
  0x6d   : > { %p7332_p0 = pnand %p7330_p13, %p7655_p7  ;;  %p7339_p8 = por %p7338_p5, %p7337_p2 }
  0x6e   : > { %6427 = dma.hbm_to_vmem [thread:$0]  (!%p7645_p6), %s9499_s11, 1024, %s561_s24, [#allocation12], %s9497_s16, %s9497_s16, %s9496_s29  }
  0x6f   : > { %p7333_p4 = pneg %p7332_p0 }
  0x71   : > { %p7340_p9 = pnand %p7339_p8, %p7333_p4 }
  0x73   : > { %7343 = shalt.err (!%p7340_p9)
}
  0x74   : > { %s9500_s17 = sld [smem:[#allocation40_spill]]  ;;  %s5558_s3 = sadd.s32 4294967294, %s7484_s21  }
  0x75   : > { %s7731_s28 = sadd.s32 1, %s7484_s21   ;;  %s48_s1 = sadd.s32 1, %s7480_s20 }
  0x76   : > { %9501 = sst [smem:[#allocation26_spill]] %s7731_s28  ;;  %s45_s18 = ssub.s32 %s7484_s21, %s7731_s28 }
  0x77   : > { %p55_p7 = scmp.ne.s32.totalorder %s7480_s20, %s7476_s30  ;;  %p46_p10 = scmp.eq.s32.totalorder %s45_s18, 0 }
  0x78   : > { %p56_p12 = scmp.eq.s32.totalorder %s7484_s21, 0  ;;  %p61_p11 = scmp.ne.s32.totalorder %s7476_s30, %s7472_s0 }
  0x79   : > { %p468_p13 = scmp.eq.s32.totalorder %s7631_s2, 1  ;;  %p474_p2 = scmp.eq.s32.totalorder %s5558_s3, 1 }
  0x7a   : > { %6433 = dma.hbm_to_vmem [thread:$0]  (!%p7645_p6), %s9500_s17, 4096, %s599_s26, [#allocation15], %s9497_s16, %s9497_s16, %s9496_s29  }
  0x7b   : > { %s7743_s6 = scalar_select %p46_p10, %s7480_s20, %s48_s1  }
  0x7c   : > { %p57_p0 = por %p56_p12, %p55_p7  ;;  %p7747_p4 = por %p9466_p1, %p61_p11 }
  0x7d   : > { %9502 = sst [smem:[#allocation27_spill]] %s7743_s6  ;;  %p7751_p6 = por %p468_p13, %p55_p7 }
  0x7e   : > { %s9503_s29 = scalar_select %p7747_p4, 1, 0 }
  0x7f   : > { %s9504_s16 = scalar_select %p7751_p6, 1, 0 }
  0x80   : > { %p6452_p5 = scmp.lt.s32.totalorder %s7484_s21, 2  ;;  %s7757_s25 = sand.u32 1, %s7480_s20  }
  0x81   : > { %p7759_p8 = por %p474_p2, %p61_p11  ;;  %s5568_s26 = sshll.u32 %s7757_s25, 6 }
  0x82   : > { %s5791_s19 = sshll.u32 %s7484_s21, 10  ;;  %s9507_s1 = sld [smem:[#allocation29_spill]] }
  0x83   : > { %s9505_s27 = scalar_select %p7759_p8, 1, 0 }
  0x84   : > { %s619_s3 = scalar_lea.vmem [#allocation2], %s5568_s26  ;;  %p7770_p9 = pnand %p6452_p5, %p57_p0 }
  0x85   : > { %9506 = sst [smem:[#allocation28_spill]] %s9505_s27  ;;  %s626_s7 = sshll.u32 %s619_s3, 4  ;;  %s7774_s7 = int_to_ptr.vmem [resolvable:$true] %s626_s7 }
  0x86   : > { %p7346_p10 = pneg %p7770_p9 }
  0x88   : > { %s7768_s18 = scalar_lea.hbm %s9507_s1, %s5791_s19  ;;  %s7349_s22 = scalar_lea.hbm %s9507_s1, 2048 }
  0x89   : > { %s7344_s15 = scalar_lea.hbm %s7768_s18, 1024  ;;  %p7350_p13 = scmp.lt.s32.totalorder %s7768_s18, %s9507_s1 }
  0x8a   : > { %p7345_p7 = scmp.ne.s32.totalorder %s7768_s18, %s7344_s15  ;;  %p7351_p0 = scmp.lt.s32.totalorder %s7349_s22, %s7344_s15 }
  0x8c   : > { %p7347_p12 = pnand %p7346_p10, %p7345_p7  ;;  %p7352_p2 = por %p7351_p0, %p7350_p13 }
  0x8e   : > { %p7348_p11 = pneg %p7347_p12 }
  0x90   : > { %p7353_p5 = pnand %p7352_p2, %p7348_p11 }
  0x92   : > { %7356 = shalt.err (!%p7353_p5)
}
  0x93   : > { %s7357_s10 = scalar_lea.vmem %s7774_s7, 1024  ;;  %s7501_s26 = smov [#allocation2]  }
  0x94   : > { %p7358_p1 = scmp.ne.s32.totalorder %s7774_s7, %s7357_s10  ;;  %s7362_s19 = sshll.u32 %s7501_s26, 4  ;;  %s7363_s19 = int_to_ptr.vmem [resolvable:$false] %s7362_s19 }
  0x95   : > { %s7364_s11 = scalar_lea.vmem %s7363_s19, 2048  ;;  %p7365_p8 = scmp.lt.s32.totalorder %s7774_s7, %s7363_s19 }
  0x96   : > { %p7360_p7 = pnand %p7358_p1, %p7346_p10  ;;  %p7366_p6 = scmp.lt.s32.totalorder %s7364_s11, %s7357_s10 }
  0x98   : > { %p7361_p12 = pneg %p7360_p7  ;;  %p7367_p4 = por %p7366_p6, %p7365_p8 }
  0x9a   : > { %p7368_p13 = pnand %p7367_p4, %p7361_p12 }
  0x9c   : > { %7371 = shalt.err (!%p7368_p13)
}
  0x9d   : > { %s9509_s15 = smov 8   ;;  %s9510_s22 = smov 128  }
  0x9e   : > { %s9511_s24 = scalar_lea.sflag [#allocation3], %s7757_s25  ;;  %s5571_s3 = sshll.u32 %s7757_s25, 5 }
  0x9f   : > { %6437 = dma.hbm_to_vmem [thread:$0]  (!%p7770_p9), %s7768_s18, 1024, %s7774_s7, %s9511_s24, %s9510_s22, %s9510_s22, %s9509_s15  }
  0xa0   : > { %s5792_s26 = sshll.u32 %s7484_s21, 9  ;;  %s9512_s19 = sld [smem:[#allocation30_spill]] }
  0xa1   : > { %s640_s17 = scalar_lea.vmem [#allocation5], %s5571_s3  ;;  %s9513_s20 = sand.u32 1, %s7484_s21  }
  0xa2   : > { %s647_s6 = sshll.u32 %s640_s17, 4  ;;  %s637_s28 = scalar_lea.sflag [#allocation6], %s9513_s20  ;;  %s7814_s6 = int_to_ptr.vmem [resolvable:$true] %s647_s6 }
  0xa6   : > { %s7812_s1 = scalar_lea.hbm %s9512_s19, %s5792_s26  ;;  %s7377_s18 = scalar_lea.hbm %s9512_s19, 1024 }
  0xa7   : > { %s7372_s27 = scalar_lea.hbm %s7812_s1, 512  ;;  %p7378_p8 = scmp.lt.s32.totalorder %s7812_s1, %s9512_s19 }
  0xa8   : > { %p7373_p1 = scmp.ne.s32.totalorder %s7812_s1, %s7372_s27  ;;  %p7379_p11 = scmp.lt.s32.totalorder %s7377_s18, %s7372_s27 }
  0xaa   : > { %p7375_p4 = pnand %p7373_p1, %p7346_p10  ;;  %p7380_p0 = por %p7379_p11, %p7378_p8 }
  0xac   : > { %p7376_p6 = pneg %p7375_p4 }
  0xae   : > { %p7381_p2 = pnand %p7380_p0, %p7376_p6 }
  0xb0   : > { %7384 = shalt.err (!%p7381_p2)
}
  0xb1   : > { %s7385_s17 = scalar_lea.vmem %s7814_s6, 512  ;;  %s7502_s20 = smov [#allocation5]  }
  0xb2   : > { %p7386_p5 = scmp.ne.s32.totalorder %s7814_s6, %s7385_s17  ;;  %s7390_s3 = sshll.u32 %s7502_s20, 4  ;;  %s7391_s3 = int_to_ptr.vmem [resolvable:$false] %s7390_s3 }
  0xb3   : > { %s7392_s10 = scalar_lea.vmem %s7391_s3, 1024  ;;  %p7393_p13 = scmp.lt.s32.totalorder %s7814_s6, %s7391_s3 }
  0xb4   : > { %p7388_p7 = pnand %p7386_p5, %p7346_p10  ;;  %p7394_p1 = scmp.lt.s32.totalorder %s7392_s10, %s7385_s17 }
  0xb6   : > { %p7389_p12 = pneg %p7388_p7  ;;  %p7395_p4 = por %p7394_p1, %p7393_p13 }
  0xb8   : > { %p7396_p8 = pnand %p7395_p4, %p7389_p12 }
  0xba   : > { %7399 = shalt.err (!%p7396_p8)
}
  0xbb   : > { %6440 = dma.hbm_to_vmem [thread:$0]  (!%p7770_p9), %s7812_s1, 512, %s7814_s6, %s637_s28, %s9510_s22, %s9510_s22, %s9509_s15  }
  0xbc   : > { %659 = sbr.rel (%p7636_p3) target bundleno = 4145 (0x1031), region = 96  ;;  %s7846_s27 = sand.u32 (!%p7636_p3), 1, %s7476_s30  }
  0xbd   : > { %s5575_s11 = sshll.u32 (!%p7636_p3), %s7846_s27, 6  ;;  %s662_s7 = scalar_lea.sflag (!%p7636_p3), [#allocation3], %s7846_s27 }
  0xbe   : > { %s7852_s9 = scalar_lea.vmem (!%p7636_p3), [#allocation2], %s5575_s11  ;;  %p9514_p10 = scmp.ne.s32.totalorder (!%p7636_p3), %s9503_s29, 0 }
  0xc1   : > { %7443 = dma.done.wait (%p9514_p10), %s662_s7, 1024  }
  0xc2   : > { %7445 = vsyncadd (%p9514_p10), %s662_s7, 4294966272  ;;  %s670_s23 = sand.u32 1, %s7631_s2   ;;  %s5576_s28 = sshll.u32 %s7846_s27, 5 }
  0xc3   : > { %s671_s6 = scalar_lea.sflag [#allocation6], %s670_s23  ;;  %s7860_s1 = scalar_lea.vmem [#allocation5], %s5576_s28 }
  0xc4   : > { %7447 = dma.done.wait (%p9514_p10), %s671_s6, 512  }
  0xc5   : > { %7449 = vsyncadd (%p9514_p10), %s671_s6, 4294966784  ;;  %p9515_p3 = scmp.eq.s32.totalorder %s7631_s2, 0 }
  0xc7   : > { %7451 = dma.done.wait (%p9515_p3), [#allocation6], 3072   ;;  %p9516_p9 = pmov %p9515_p3 }
  0xc8   : > { %p9517_p6 = pmov %p9515_p3 }
  0xc9   : > { %7453 = vsyncadd (%p9516_p9), [#allocation6], 4294964224 }
  0xca   : > { %7455 = dma.done.wait (%p9517_p6), [#allocation9], 2048   ;;  %p9518_p11 = pmov %p9515_p3 }
  0xcb   : > { %p9519_p0 = pmov %p9515_p3 }
  0xcc   : > { %7457 = vsyncadd (%p9518_p11), [#allocation9], 4294965248 }
  0xcd   : > { %7459 = dma.done.wait (%p9519_p0), [#allocation12], 3072   ;;  %p9520_p2 = pmov %p9519_p0 }
  0xce   : > { %p9521_p5 = pmov %p9519_p0 }
  0xcf   : > { %7461 = vsyncadd (%p9520_p2), [#allocation12], 4294964224 }
  0xd0   : > { %7463 = dma.done.wait (%p9521_p5), [#allocation15], 8192   ;;  %p9522_p7 = pmov %p9519_p0 }
  0xd1   : > { %v763_v0 = vld [vmem:[%s7852_s9] sm:$0xff]  ;;  %v765_v1 = vld [vmem:[%s7852_s9 + $0x10] sm:$0xff]  ;;  %v764_v2 = vld [vmem:[%s7852_s9 + $0x8] sm:$0xff]  ;;  %v7503_v62 = vmov 0   ;;  %s9523_s22 = sld [smem:[#allocation31_spill]]  ;;  %vm1380_vm0 = vcmask 261120  }
  0xd2   : > { %7465 = vsyncadd (%p9522_p7), [#allocation15], 4294959104  ;;  %777 = vadd.xlane.f32.xlu0 %v763_v0  ;;  %781 = vadd.xlane.f32.xlu1 %v765_v1  ;;  %v766_v3 = vld [vmem:[%s7852_s9 + $0x18] sm:$0xff]  ;;  %v767_v4 = vld [vmem:[%s7852_s9 + $0x20] sm:$0xff]  ;;  %s9524_s24 = sld [smem:[#allocation32_spill]]  ;;  %s7504_s26 = smov 96  }
  0xd3   : > { %v768_v5 = vld [vmem:[%s7852_s9 + $0x28] sm:$0xff]  ;;  %v769_v6 = vld [vmem:[%s7852_s9 + $0x30] sm:$0xff]  ;;  %v770_v7 = vld [vmem:[%s7852_s9 + $0x38] sm:$0xff]  ;;  %1158 = vmatprep.mubr.bf16.mxu0 %v7503_v62  ;;  %s7505_s17 = smov 64   ;;  %s7506_s20 = smov 32   ;;  %vm1737_vm1 = vcmask 523264  }
  0xd4   : > { %v6634_v8 = vld [vmem:[#allocation7 + $0xac] ss:$12 sps:$4 sm:$0xff]   ;;  %v6636_v9 = vld [vmem:[#allocation7 + $0xa8] ss:$12 sps:$4 sm:$0xff]   ;;  %v6639_v42 = vld [vmem:[#allocation7 + $0xb0] ss:$12 sps:$4 sm:$0xff]  }
  0xd5   : > { %1126 = vmatprep.subr.bf16.mxu0 %v6634_v8  ;;  %v6637_v41 = vld [vmem:[#allocation7 + $0x94] ss:$12 sps:$4 sm:$0xff]   ;;  %v6640_v43 = vld [vmem:[#allocation7 + $0x90] ss:$12 sps:$4 sm:$0xff]   ;;  %6034 = vmatprep.subr.bf16.mxu1 %v6639_v42  ;;  %v6643_v46 = vld [vmem:[#allocation7 + $0x98] ss:$12 sps:$4 sm:$0xff]  }
  0xd6   : > { %779 = vadd.xlane.f32.xlu0 %v764_v2  ;;  %783 = vadd.xlane.f32.xlu1 %v766_v3  ;;  %v6641_v45 = vld [vmem:[#allocation7 + $0x7c] ss:$12 sps:$4 sm:$0xff]   ;;  %v6644_v47 = vld [vmem:[#allocation7 + $0x78] ss:$12 sps:$4 sm:$0xff]   ;;  %v6647_v49 = vld [vmem:[#allocation7 + $0x80] ss:$12 sps:$4 sm:$0xff]  }
  0xd7   : > { %1127 = vmatpush1.bf16.msra.mxu0 %v6636_v9  ;;  %6035 = vmatpush3.bf16.msra.mxu1 %v6639_v42  ;;  %v6645_v48 = vld [vmem:[#allocation7 + $0x64] ss:$12 sps:$4 sm:$0xff]   ;;  %v6648_v50 = vld [vmem:[#allocation7 + $0x60] ss:$12 sps:$4 sm:$0xff]   ;;  %v6651_v52 = vld [vmem:[#allocation7 + $0x68] ss:$12 sps:$4 sm:$0xff]  }
  0xd8   : > { %1128 = vmatprep.subr.bf16.mxu0 %v6637_v41  ;;  %6036 = vmatprep.subr.bf16.mxu1 %v6643_v46  ;;  %v6649_v51 = vld [vmem:[#allocation7 + $0x4c] ss:$12 sps:$4 sm:$0xff]   ;;  %v6652_v53 = vld [vmem:[#allocation7 + $0x48] ss:$12 sps:$4 sm:$0xff]   ;;  %v6655_v55 = vld [vmem:[#allocation7 + $0x50] ss:$12 sps:$4 sm:$0xff]  }
  0xd9   : > { %v6653_v54 = vld [vmem:[#allocation7 + $0x34] ss:$12 sps:$4 sm:$0xff]   ;;  %v6656_v56 = vld [vmem:[#allocation7 + $0x30] ss:$12 sps:$4 sm:$0xff]   ;;  %v6659_v58 = vld [vmem:[#allocation7 + $0x38] ss:$12 sps:$4 sm:$0xff]  }
  0xda   : > { %785 = vadd.xlane.f32.xlu0 %v767_v4  ;;  %787 = vadd.xlane.f32.xlu1 %v768_v5  ;;  %v6657_v57 = vld [vmem:[#allocation7 + $0x1c] ss:$12 sps:$4 sm:$0xff]   ;;  %v6660_v59 = vld [vmem:[#allocation7 + $0x18] ss:$12 sps:$4 sm:$0xff]   ;;  %v6663_v61 = vld [vmem:[#allocation7 + $0x20] ss:$12 sps:$4 sm:$0xff]  }
  0xdb   : > { %1129 = vmatpush1.bf16.msra.mxu0 %v6640_v43  ;;  %6037 = vmatpush3.bf16.msra.mxu1 %v6643_v46  ;;  %v6661_v60 = vld [vmem:[#allocation7 + $0x4] ss:$12 sps:$4 sm:$0xff]   ;;  %v6664_v63 = vld [vmem:[#allocation7] ss:$12 sps:$4 sm:$0xff]   ;;  %vm2526_vm2 = vcmask 785408   ;;  %s9526_s3 = sld [smem:[#allocation41_spill]] }
  0xdc   : > { %1130 = vmatprep.subr.bf16.mxu0 %v6641_v45  ;;  %6038 = vmatprep.subr.bf16.mxu1 %v6647_v49  ;;  %s9362_s10 = scalar_lea.vmem [#allocation17], %s5575_s11  ;;  %s5793_s11 = sshll.u32 %s7631_s2, 10 }
  0xdd   : > { %s5396_s7 = sshll.u32 %s9362_s10, 4  ;;  %s9527_s6 = sld [smem:[#allocation42_spill]]  ;;  %s9390_s7 = int_to_ptr.vmem [resolvable:$true] %s5396_s7 }
  0xde   : > { %789 = vadd.xlane.f32.xlu0 %v769_v6  ;;  %791 = vadd.xlane.f32.xlu1 %v770_v7  ;;  %s5383_s29 = scalar_lea.sflag [#allocation4], %s7846_s27  ;;  %p9528_p13 = scmp.ne.s32.totalorder %s9504_s16, 0 }
  0xdf   : > { %1131 = vmatpush1.bf16.msra.mxu0 %v6644_v47  ;;  %6039 = vmatpush3.bf16.msra.mxu1 %v6647_v49  ;;  %s7507_s2 = smov [#allocation17]  }
  0xe0   : > { %1132 = vmatprep.subr.bf16.mxu0 %v6645_v48  ;;  %6040 = vmatprep.subr.bf16.mxu1 %v6651_v52  ;;  %s7404_s15 = sshll.u32 %s7507_s2, 4  ;;  %s7405_s15 = int_to_ptr.vmem [resolvable:$false] %s7404_s15 }
  0xe1   : > { %p7407_p8 = scmp.lt.s32.totalorder %s9390_s7, %s7405_s15 }
  0xe3   : > { %1133 = vmatpush1.bf16.msra.mxu0 %v6648_v50  ;;  %6041 = vmatpush3.bf16.msra.mxu1 %v6651_v52 }
  0xe4   : > { %1134 = vmatprep.subr.bf16.mxu0 %v6649_v51  ;;  %6042 = vmatprep.subr.bf16.mxu1 %v6655_v55 }
  0xe7   : > { %1135 = vmatpush1.bf16.msra.mxu0 %v6652_v53  ;;  %6043 = vmatpush3.bf16.msra.mxu1 %v6655_v55 }
  0xe8   : > { %1136 = vmatprep.subr.bf16.mxu0 %v6653_v54  ;;  %6044 = vmatprep.subr.bf16.mxu1 %v6659_v58 }
  0xeb   : > { %1137 = vmatpush1.bf16.msra.mxu0 %v6656_v56  ;;  %6045 = vmatpush3.bf16.msra.mxu1 %v6659_v58 }
  0xec   : > { %1138 = vmatprep.subr.bf16.mxu0 %v6657_v57  ;;  %6046 = vmatprep.subr.bf16.mxu1 %v6663_v61 }
  0xef   : > { %1139 = vmatpush1.bf16.msra.mxu0 %v6660_v59  ;;  %6047 = vmatpush3.bf16.msra.mxu1 %v6663_v61 }
  0xf0   : > { %1140 = vmatprep.subr.bf16.mxu0 %v6661_v60 }
  0xf3   : > { %1141 = vmatpush1.bf16.msra.mxu0 %v6664_v63 }
 0x15b   : > { %v778_v10 = vpop.xlane.xlu0 %777  ;;  %v782_v11 = vpop.xlane.xlu1 %781 }
 0x15c   : > { %v794_v12 = vmul.f32 0.0078125, %v778_v10  ;;  %v796_v13 = vmul.f32 0.0078125, %v782_v11 }
 0x15e   : > { %v7890_v14 = vsub.f32 %v763_v0, %v794_v12  ;;  %v7892_v15 = vsub.f32 %v765_v1, %v796_v13  ;;  %v6665_v0 = vld [vmem:[#allocation7 + $0x8] ss:$12 sps:$4 sm:$0xff]  }
 0x15f   : > { %v780_v16 = vpop.xlane.xlu0 %779  ;;  %v784_v17 = vpop.xlane.xlu1 %783  ;;  %6048 = vmatprep.subr.bf16.mxu1 %v6665_v0 }
 0x160   : > { %v795_v18 = vmul.f32 0.0078125, %v780_v16  ;;  %v810_v19 = vmul.f32 %v7890_v14, %v7890_v14  ;;  %v797_v20 = vmul.f32 0.0078125, %v784_v17  ;;  %v812_v21 = vmul.f32 %v7892_v15, %v7892_v15  ;;  %6049 = vmatpush3.bf16.msra.mxu1 %v6665_v0 }
 0x162   : > { %818 = vadd.xlane.f32.xlu0 %v810_v19  ;;  %v7898_v22 = vsub.f32 %v764_v2, %v795_v18  ;;  %v7900_v23 = vsub.f32 %v766_v3, %v797_v20 }
 0x163   : > { %v786_v24 = vpop.xlane.xlu0 %785  ;;  %v788_v25 = vpop.xlane.xlu1 %787 }
 0x164   : > { %v798_v26 = vmul.f32 0.0078125, %v786_v24  ;;  %v811_v27 = vmul.f32 %v7898_v22, %v7898_v22  ;;  %v799_v28 = vmul.f32 0.0078125, %v788_v25  ;;  %v813_v29 = vmul.f32 %v7900_v23, %v7900_v23 }
 0x166   : > { %822 = vadd.xlane.f32.xlu0 %v812_v21  ;;  %820 = vadd.xlane.f32.xlu1 %v811_v27  ;;  %v7906_v30 = vsub.f32 %v767_v4, %v798_v26  ;;  %v7908_v31 = vsub.f32 %v768_v5, %v799_v28 }
 0x167   : > { %v790_v32 = vpop.xlane.xlu0 %789  ;;  %v792_v33 = vpop.xlane.xlu1 %791 }
 0x168   : > { %v800_v34 = vmul.f32 0.0078125, %v790_v32  ;;  %v814_v35 = vmul.f32 %v7906_v30, %v7906_v30  ;;  %v801_v36 = vmul.f32 0.0078125, %v792_v33  ;;  %v815_v37 = vmul.f32 %v7908_v31, %v7908_v31  ;;  %v5585_v33 = vld [vmem:[%s9523_s22] ss:$0 sm:$0xff]  ;;  %s7406_s22 = scalar_lea.vmem %s7405_s15, 2048 }
 0x16a   : > { %824 = vadd.xlane.f32.xlu1 %v813_v29  ;;  %826 = vadd.xlane.f32.xlu0 %v814_v35  ;;  %v7914_v38 = vsub.f32 %v769_v6, %v800_v34  ;;  %v7916_v39 = vsub.f32 %v770_v7, %v801_v36 }
 0x16c   : > { %v816_v40 = vmul.f32 %v7914_v38, %v7914_v38  ;;  %v817_v44 = vmul.f32 %v7916_v39, %v7916_v39 }
 0x16e   : > { %828 = vadd.xlane.f32.xlu1 %v815_v37  ;;  %830 = vadd.xlane.f32.xlu0 %v816_v40  ;;  %v5586_v40 = vld [vmem:[%s9524_s24] ss:$0 sm:$0xff] }
 0x172   : > { %832 = vadd.xlane.f32.xlu1 %v817_v44 }
 0x1eb   : > { %v819_v1 = vpop.xlane.xlu0 %818 }
 0x1ec   : > { %v834_v2 = vmul.f32 0.0078125, %v819_v1 }
 0x1ee   : > { %v842_v3 = vadd.f32 1e-05, %v834_v2 }
 0x1ef   : > { %v821_v4 = vpop.xlane.xlu1 %820  ;;  %v823_v5 = vpop.xlane.xlu0 %822 }
 0x1f0   : > { %6794 = vrsqrt.f32 %v842_v3  ;;  %v835_v6 = vmul.f32 0.0078125, %v821_v4  ;;  %v836_v7 = vmul.f32 0.0078125, %v823_v5 }
 0x1f2   : > { %v843_v8 = vadd.f32 1e-05, %v835_v6  ;;  %v844_v9 = vadd.f32 1e-05, %v836_v7 }
 0x1f3   : > { %v825_v10 = vpop.xlane.xlu1 %824  ;;  %v827_v11 = vpop.xlane.xlu0 %826 }
 0x1f4   : > { %6796 = vrsqrt.f32 %v843_v8  ;;  %v837_v12 = vmul.f32 0.0078125, %v825_v10  ;;  %v838_v13 = vmul.f32 0.0078125, %v827_v11 }
 0x1f5   : > { %6798 = vrsqrt.f32 %v844_v9 }
 0x1f6   : > { %v845_v16 = vadd.f32 1e-05, %v837_v12  ;;  %v846_v17 = vadd.f32 1e-05, %v838_v13 }
 0x1f7   : > { %v829_v18 = vpop.xlane.xlu1 %828  ;;  %v831_v19 = vpop.xlane.xlu0 %830 }
 0x1f8   : > { %6800 = vrsqrt.f32 %v845_v16  ;;  %v839_v20 = vmul.f32 0.0078125, %v829_v18  ;;  %v840_v21 = vmul.f32 0.0078125, %v831_v19 }
 0x1f9   : > { %6802 = vrsqrt.f32 %v846_v17 }
 0x1fa   : > { %v847_v24 = vadd.f32 1e-05, %v839_v20  ;;  %v848_v25 = vadd.f32 1e-05, %v840_v21 }
 0x1fb   : > { %v833_v26 = vpop.xlane.xlu1 %832 }
 0x1fc   : > { %6804 = vrsqrt.f32 %v847_v24  ;;  %v841_v27 = vmul.f32 0.0078125, %v833_v26 }
 0x1fd   : > { %v6795_v28 = vpop.eup %6794  ;;  %6806 = vrsqrt.f32 %v848_v25 }
 0x1fe   : > { %v849_v29 = vadd.f32 1e-05, %v841_v27  ;;  %v858_v32 = vmul.f32 %v6795_v28, %v7890_v14 }
 0x200   : > { %6808 = vrsqrt.f32 %v849_v29  ;;  %v872_v37 = vmul.f32 %v5585_v33, %v858_v32 }
 0x201   : > { %v6797_v34 = vpop.eup %6796 }
 0x202   : > { %v6799_v35 = vpop.eup %6798  ;;  %v859_v36 = vmul.f32 %v6797_v34, %v7898_v22  ;;  %v886_v45 = vadd.f32 %v5586_v40, %v872_v37 }
 0x203   : > { %v860_v41 = vmul.f32 %v6799_v35, %v7892_v15 }
 0x204   : > { %v873_v42 = vmul.f32 %v5585_v33, %v859_v36 }
 0x205   : > { %v6801_v43 = vpop.eup %6800  ;;  %v874_v44 = vmul.f32 %v5585_v33, %v860_v41 }
 0x206   : > { %v6803_v14 = vpop.eup %6802  ;;  %v887_v46 = vadd.f32 %v5586_v40, %v873_v42  ;;  %v861_v47 = vmul.f32 %v6801_v43, %v7900_v23 }
 0x207   : > { %v862_v48 = vmul.f32 %v6803_v14, %v7906_v30  ;;  %v888_v51 = vadd.f32 %v5586_v40, %v874_v44 }
 0x208   : > { %v7934_v49 = vpack.c.bf16 %v887_v46, %v886_v45  ;;  %v875_v22 = vmul.f32 %v5585_v33, %v861_v47 }
 0x209   : > { %v6805_v50 = vpop.eup %6804  ;;  %v876_v54 = vmul.f32 %v5585_v33, %v862_v48 }
 0x20a   : > { %v6807_v52 = vpop.eup %6806  ;;  %1159 = vmatmul.mubr.bf16.vlgmr.msra.gmra.mxu0 %v7934_v49  ;;  %6050 = vmatprep.mubr.bf16.mxu1 %v7934_v49  ;;  %v889_v15 = vadd.f32 %v5586_v40, %v875_v22  ;;  %v863_v53 = vmul.f32 %v6805_v50, %v7908_v31 }
 0x20b   : > { %1168 = vmatprep.mubr.bf16.mxu0 %v7503_v62  ;;  %v864_v23 = vmul.f32 %v6807_v52, %v7914_v38  ;;  %v890_v57 = vadd.f32 %v5586_v40, %v876_v54 }
 0x20c   : > { %v7941_v55 = vpack.c.bf16 %v889_v15, %v888_v51  ;;  %v877_v30 = vmul.f32 %v5585_v33, %v863_v53 }
 0x20d   : > { %v6809_v56 = vpop.eup %6808  ;;  %v878_v60 = vmul.f32 %v5585_v33, %v864_v23 }
 0x20e   : > { %6051 = vmatmul.mubr.bf16.vlgmr.msra.gmra.mxu1 %v7941_v55  ;;  %v891_v58 = vadd.f32 %v5586_v40, %v877_v30  ;;  %v865_v59 = vmul.f32 %v6809_v56, %v7916_v39 }
 0x20f   : > { %v892_v31 = vadd.f32 %v5586_v40, %v878_v60 }
 0x210   : > { %v7945_v61 = vpack.c.bf16 %v891_v58, %v890_v57  ;;  %v879_v63 = vmul.f32 %v5585_v33, %v865_v59 }
 0x212   : > { %1169 = vmatmul.mubr.bf16.gmra.mxu0 %v7941_v55  ;;  %6054 = vmatprep.mubr.bf16.mxu1 %v7945_v61  ;;  %v893_v38 = vadd.f32 %v5586_v40, %v879_v63 }
 0x213   : > { %1178 = vmatprep.mubr.bf16.mxu0 %v7503_v62 }
 0x214   : > { %v7950_v0 = vpack.c.bf16 %v893_v38, %v892_v31 }
 0x216   : > { %6055 = vmatmul.mubr.bf16.gmra.mxu1 %v7950_v0 }
 0x21a   : > { %1179 = vmatmul.mubr.bf16.gmra.mxu0 %v7945_v61 }
 0x21b   : > { %1188 = vmatprep.mubr.bf16.mxu0 %v7503_v62 }
 0x222   : > { %1189 = vmatmul.mubr.bf16.gmra.mxu0 %v7950_v0 }
 0x2ca   : > { %v1160_v39 = vpop.f32.mrf.mxu0 }
 0x2cb   : > { %v1264_v3 = vmul.f32 0.17677669, %v1160_v39 }
 0x2cc   : > { %v1162_v1 = vpop.f32.mrf.mxu0 }
 0x2ce   : > { %v1164_v2 = vpop.f32.mrf.mxu0  ;;  %v6052_v34 = vpop.f32.mrf.mxu1 }
 0x2cf   : > { %v1265_v4 = vmul.f32 0.17677669, %v1164_v2 }
 0x2d0   : > { %v1166_v5 = vpop.f32.mrf.mxu0  ;;  %v1233_v36 = vpop.f32.mrf.mxu1 }
 0x2d1   : > { %v7956_v6 = vpack.c.bf16 %v1265_v4, %v1264_v3  ;;  %v1304_v25 = vpack.c.bf16 %v1166_v5, %v1162_v1 }
 0x2d2   : > { %v1170_v7 = vpop.f32.mrf.mxu0  ;;  %v6053_v43 = vpop.f32.mrf.mxu1 }
 0x2d3   : > { %6066 = vmatprep.mubr.msk.bf16.mxu0 %vm1380_vm0, %v7956_v6  ;;  %v1266_v29 = vmul.f32 0.17677669, %v1170_v7  ;;  %v1394_v46 = vsel %vm1380_vm0, %v1304_v25, 0  ;;  %v8006_v15 = vpack.c.bf16 %v6053_v43, %v6052_v34 }
 0x2d4   : > { %v1172_v8 = vpop.f32.mrf.mxu0  ;;  %v1236_v45 = vpop.f32.mrf.mxu1 }
 0x2d5   : > { %v8012_v53 = vpack.c.bf16 %v1236_v45, %v1233_v36 }
 0x2d6   : > { %v1174_v9 = vpop.f32.mrf.mxu0  ;;  %v6056_v47 = vpop.f32.mrf.mxu1 }
 0x2d7   : > { %v1267_v28 = vmul.f32 0.17677669, %v1174_v9 }
 0x2d8   : > { %v1176_v10 = vpop.f32.mrf.mxu0  ;;  %v1249_v48 = vpop.f32.mrf.mxu1 }
 0x2d9   : > { %v1305_v20 = vpack.c.bf16 %v1176_v10, %v1172_v8  ;;  %v1273_v32 = vpack.c.bf16 %v1267_v28, %v1266_v29 }
 0x2da   : > { %v1180_v11 = vpop.f32.mrf.mxu0  ;;  %v6057_v22 = vpop.f32.mrf.mxu1 }
 0x2db   : > { %v1268_v37 = vmul.f32 0.17677669, %v1180_v11  ;;  %v1397_v40 = vsel %vm1380_vm0, %v1305_v20, 0  ;;  %v7998_v51 = vpack.c.bf16 %v6057_v22, %v6056_v47 }
 0x2dc   : > { %v1182_v12 = vpop.f32.mrf.mxu0  ;;  %v1252_v50 = vpop.f32.mrf.mxu1 }
 0x2dd   : > { %v8000_v52 = vpack.c.bf16 %v1252_v50, %v1249_v48 }
 0x2de   : > { %v1184_v13 = vpop.f32.mrf.mxu0 }
 0x2df   : > { %v1269_v35 = vmul.f32 0.17677669, %v1184_v13 }
 0x2e0   : > { %v1186_v16 = vpop.f32.mrf.mxu0 }
 0x2e1   : > { %v1306_v17 = vpack.c.bf16 %v1186_v16, %v1182_v12  ;;  %v1274_v41 = vpack.c.bf16 %v1269_v35, %v1268_v37 }
 0x2e2   : > { %v1190_v18 = vpop.f32.mrf.mxu0 }
 0x2e3   : > { %1316 = vrot.lane.b32.xlu1 %v1306_v17, %s7504_s26  ;;  %v1400_v33 = vsel %vm1380_vm0, %v1306_v17, 0  ;;  %v1270_v44 = vmul.f32 0.17677669, %v1190_v18 }
 0x2e4   : > { %v1192_v19 = vpop.f32.mrf.mxu0 }
 0x2e6   : > { %v1194_v21 = vpop.f32.mrf.mxu0 }
 0x2e7   : > { %1314 = vrot.lane.b32.xlu1 %v1305_v20, %s7504_s26  ;;  %v1271_v42 = vmul.f32 0.17677669, %v1194_v21 }
 0x2e8   : > { %v1196_v24 = vpop.f32.mrf.mxu0 }
 0x2e9   : > { %v1307_v26 = vpack.c.bf16 %v1196_v24, %v1192_v19  ;;  %v1275_v14 = vpack.c.bf16 %v1271_v42, %v1270_v44 }
 0x2eb   : > { %1312 = vrot.lane.b32.xlu1 %v1304_v25, %s7504_s26  ;;  %1318 = vrot.lane.b32.xlu0 %v1307_v26, %s7504_s26  ;;  %v1403_v27 = vsel %vm1380_vm0, %v1307_v26, 0 }
 0x2ec   : > { %6354 = vmatprep.subr.msk.bf16.mxu0 %vm1380_vm0, %v1307_v26 }
 0x2ed   : > { %6059 = vmatpush3.bf16.xpose.msra.mxu0 %v1403_v27 }
 0x2ee   : > { %6355 = vmatprep.subr.msk.bf16.mxu0 %vm1380_vm0, %v1306_v17 }
 0x2ef   : > { %1280 = vrot.lane.b32.xlu1 %v7956_v6, %s7504_s26  ;;  %1326 = vrot.lane.b32.xlu0 %v1307_v26, %s7505_s17 }
 0x2f3   : > { %1282 = vrot.lane.b32.xlu1 %v1273_v32, %s7504_s26  ;;  %1334 = vrot.lane.b32.xlu0 %v1307_v26, %s7506_s20 }
 0x2f5   : > { %6061 = vmatpush3.bf16.xpose.msra.mxu0 %v1400_v33 }
 0x2f6   : > { %6356 = vmatprep.subr.msk.bf16.mxu0 %vm1380_vm0, %v1305_v20 }
 0x2f7   : > { %1332 = vrot.lane.b32.xlu1 %v1306_v17, %s7506_s20  ;;  %1324 = vrot.lane.b32.xlu0 %v1306_v17, %s7505_s17 }
 0x2fb   : > { %1330 = vrot.lane.b32.xlu1 %v1305_v20, %s7506_s20  ;;  %1322 = vrot.lane.b32.xlu0 %v1305_v20, %s7505_s17 }
 0x2fd   : > { %6063 = vmatpush3.bf16.xpose.msra.mxu0 %v1397_v40 }
 0x2fe   : > { %6357 = vmatprep.subr.msk.bf16.mxu0 %vm1380_vm0, %v1304_v25 }
 0x2ff   : > { %1320 = vrot.lane.b32.xlu1 %v1304_v25, %s7505_s17  ;;  %1284 = vrot.lane.b32.xlu0 %v1274_v41, %s7504_s26 }
 0x303   : > { %1328 = vrot.lane.b32.xlu1 %v1304_v25, %s7506_s20  ;;  %1286 = vrot.lane.b32.xlu0 %v1275_v14, %s7504_s26 }
 0x305   : > { %6065 = vmatpush3.bf16.xpose.msra.mxu0 %v1394_v46 }
 0x307   : > { %1290 = vrot.lane.b32.xlu1 %v1273_v32, %s7505_s17  ;;  %1288 = vrot.lane.b32.xlu0 %v7956_v6, %s7505_s17 }
 0x30b   : > { %1298 = vrot.lane.b32.xlu1 %v1273_v32, %s7506_s20  ;;  %1296 = vrot.lane.b32.xlu0 %v7956_v6, %s7506_s20 }
 0x30c   : > { %6067 = vmatmul.mubr.msk.bf16.vlgmr.msra.gmra.mxu0 %vm1380_vm0, %v1273_v32 }
 0x30d   : > { %6070 = vmatprep.mubr.msk.bf16.mxu0 %vm1380_vm0, %v1274_v41 }
 0x30f   : > { %1294 = vrot.lane.b32.xlu1 %v1275_v14, %s7505_s17  ;;  %1292 = vrot.lane.b32.xlu0 %v1274_v41, %s7505_s17 }
 0x313   : > { %1302 = vrot.lane.b32.xlu1 %v1275_v14, %s7506_s20  ;;  %1300 = vrot.lane.b32.xlu0 %v1274_v41, %s7506_s20 }
 0x314   : > { %6071 = vmatmul.mubr.msk.bf16.gmra.mxu0 %vm1380_vm0, %v1275_v14 }
 0x317   : > { %1348 = vrot.lane.b32.xlu1 %v8000_v52, %s7504_s26  ;;  %1350 = vrot.lane.b32.xlu0 %v7998_v51, %s7504_s26 }
 0x31b   : > { %1346 = vrot.lane.b32.xlu1 %v8006_v15, %s7504_s26  ;;  %1362 = vrot.lane.b32.xlu0 %v7998_v51, %s7505_s17 }
 0x31f   : > { %1344 = vrot.lane.b32.xlu1 %v8012_v53, %s7504_s26 }
 0x323   : > { %1374 = vrot.lane.b32.xlu1 %v7998_v51, %s7506_s20 }
 0x327   : > { %1360 = vrot.lane.b32.xlu1 %v8000_v52, %s7505_s17 }
 0x32b   : > { %1372 = vrot.lane.b32.xlu1 %v8000_v52, %s7506_s20 }
 0x32f   : > { %1358 = vrot.lane.b32.xlu1 %v8006_v15, %s7505_s17 }
 0x355   : > { %v1317_v54 = vpop.permute.xlu1 %1316 }
 0x356   : > { %v1489_v38 = vsel %vm1380_vm0, %v1317_v54, 0 }
 0x359   : > { %v1315_v23 = vpop.permute.xlu1 %1314 }
 0x35a   : > { %v1486_v5 = vsel %vm1380_vm0, %v1315_v23, 0 }
 0x35d   : > { %v1313_v30 = vpop.permute.xlu1 %1312  ;;  %v1319_v56 = vpop.permute.xlu0 %1318 }
 0x35e   : > { %6358 = vmatprep.subr.msk.bf16.mxu1 %vm1380_vm0, %v1319_v56  ;;  %v1492_v57 = vsel %vm1380_vm0, %v1319_v56, 0  ;;  %v1483_v11 = vsel %vm1380_vm0, %v1313_v30, 0 }
 0x35f   : > { %6075 = vmatpush3.bf16.xpose.msra.mxu1 %v1492_v57 }
 0x360   : > { %6359 = vmatprep.subr.msk.bf16.mxu1 %vm1380_vm0, %v1317_v54 }
 0x361   : > { %v1281_v58 = vpop.permute.xlu1 %1280  ;;  %v1327_v59 = vpop.permute.xlu0 %1326 }
 0x362   : > { %6082 = vmatprep.mubr.msk.bf16.mxu1 %vm1380_vm0, %v1281_v58  ;;  %6362 = vmatprep.subr.msk.bf16.mxu0 %vm1380_vm0, %v1327_v59  ;;  %v1581_v60 = vsel %vm1380_vm0, %v1327_v59, 0 }
 0x363   : > { %6091 = vmatpush3.bf16.xpose.msra.mxu0 %v1581_v60 }
 0x365   : > { %v1283_v63 = vpop.permute.xlu1 %1282  ;;  %v1335_v31 = vpop.permute.xlu0 %1334 }
 0x366   : > { %v1670_v19 = vsel %vm1380_vm0, %v1335_v31, 0 }
 0x367   : > { %6077 = vmatpush3.bf16.xpose.msra.mxu1 %v1489_v38 }
 0x368   : > { %6360 = vmatprep.subr.msk.bf16.mxu1 %vm1380_vm0, %v1315_v23 }
 0x369   : > { %v1333_v39 = vpop.permute.xlu1 %1332  ;;  %v1325_v1 = vpop.permute.xlu0 %1324 }
 0x36a   : > { %6363 = vmatprep.subr.msk.bf16.mxu0 %vm1380_vm0, %v1325_v1  ;;  %v1578_v2 = vsel %vm1380_vm0, %v1325_v1, 0  ;;  %v1667_v26 = vsel %vm1380_vm0, %v1333_v39, 0 }
 0x36b   : > { %6093 = vmatpush3.bf16.xpose.msra.mxu0 %v1578_v2 }
 0x36d   : > { %v1331_v3 = vpop.permute.xlu1 %1330  ;;  %v1323_v4 = vpop.permute.xlu0 %1322 }
 0x36e   : > { %6364 = vmatprep.subr.msk.bf16.mxu0 %vm1380_vm0, %v1323_v4  ;;  %v1575_v8 = vsel %vm1380_vm0, %v1323_v4, 0  ;;  %v1664_v33 = vsel %vm1380_vm0, %v1331_v3, 0 }
 0x36f   : > { %6079 = vmatpush3.bf16.xpose.msra.mxu1 %v1486_v5 }
 0x370   : > { %6361 = vmatprep.subr.msk.bf16.mxu1 %vm1380_vm0, %v1313_v30 }
 0x371   : > { %v1321_v6 = vpop.permute.xlu1 %1320  ;;  %v1285_v7 = vpop.permute.xlu0 %1284 }
 0x372   : > { %v1572_v16 = vsel %vm1380_vm0, %v1321_v6, 0 }
 0x373   : > { %6095 = vmatpush3.bf16.xpose.msra.mxu0 %v1575_v8 }
 0x374   : > { %6365 = vmatprep.subr.msk.bf16.mxu0 %vm1380_vm0, %v1321_v6 }
 0x375   : > { %v1329_v9 = vpop.permute.xlu1 %1328  ;;  %v1287_v10 = vpop.permute.xlu0 %1286 }
 0x376   : > { %v1661_v36 = vsel %vm1380_vm0, %v1329_v9, 0 }
 0x377   : > { %6081 = vmatpush3.bf16.xpose.msra.mxu1 %v1483_v11 }
 0x378   : > { %6366 = vmatprep.subr.msk.bf16.mxu1 %vm1380_vm0, %v1335_v31 }
 0x379   : > { %v1291_v12 = vpop.permute.xlu1 %1290  ;;  %v1289_v13 = vpop.permute.xlu0 %1288 }
 0x37a   : > { %6098 = vmatprep.mubr.msk.bf16.mxu0 %vm1380_vm0, %v1289_v13 }
 0x37b   : > { %6097 = vmatpush3.bf16.xpose.msra.mxu0 %v1572_v16 }
 0x37d   : > { %v1299_v17 = vpop.permute.xlu1 %1298  ;;  %v1297_v18 = vpop.permute.xlu0 %1296 }
 0x37e   : > { %6083 = vmatmul.mubr.msk.bf16.vlgmr.msra.gmra.mxu1 %vm1380_vm0, %v1283_v63 }
 0x37f   : > { %6086 = vmatprep.mubr.msk.bf16.mxu1 %vm1380_vm0, %v1285_v7  ;;  %6107 = vmatpush3.bf16.xpose.msra.mxu1 %v1670_v19 }
 0x380   : > { %6367 = vmatprep.subr.msk.bf16.mxu1 %vm1380_vm0, %v1333_v39 }
 0x381   : > { %v1295_v20 = vpop.permute.xlu1 %1294  ;;  %v1293_v21 = vpop.permute.xlu0 %1292 }
 0x382   : > { %6099 = vmatmul.mubr.msk.bf16.vlgmr.msra.gmra.mxu0 %vm1380_vm0, %v1291_v12 }
 0x383   : > { %6102 = vmatprep.mubr.msk.bf16.mxu0 %vm1380_vm0, %v1293_v21 }
 0x385   : > { %v1303_v24 = vpop.permute.xlu1 %1302  ;;  %v1301_v25 = vpop.permute.xlu0 %1300 }
 0x386   : > { %6087 = vmatmul.mubr.msk.bf16.gmra.mxu1 %vm1380_vm0, %v1287_v10 }
 0x387   : > { %6109 = vmatpush3.bf16.xpose.msra.mxu1 %v1667_v26  ;;  %6114 = vmatprep.mubr.msk.bf16.mxu1 %vm1380_vm0, %v1297_v18 }
 0x388   : > { %6368 = vmatprep.subr.msk.bf16.mxu1 %vm1380_vm0, %v1331_v3 }
 0x389   : > { %v8053_v27 = vpop.permute.xlu1 %1348  ;;  %v8055_v28 = vpop.permute.xlu0 %1350 }
 0x38a   : > { %6103 = vmatmul.mubr.msk.bf16.gmra.mxu0 %vm1380_vm0, %v1295_v20 }
 0x38d   : > { %v8058_v29 = vpop.permute.xlu1 %1346  ;;  %v1363_v32 = vpop.permute.xlu0 %1362 }
 0x38e   : > { %6154 = vmatprep.subr.bf16.mxu0 %v1363_v32 }
 0x38f   : > { %6111 = vmatpush3.bf16.xpose.msra.mxu1 %v1664_v33  ;;  %6155 = vmatpush3.bf16.msra.mxu0 %v1363_v32 }
 0x390   : > { %6369 = vmatprep.subr.msk.bf16.mxu1 %vm1380_vm0, %v1329_v9 }
 0x391   : > { %v8062_v34 = vpop.permute.xlu1 %1344 }
 0x395   : > { %v8064_v35 = vpop.permute.xlu1 %1374 }
 0x397   : > { %6113 = vmatpush3.bf16.xpose.msra.mxu1 %v1661_v36 }
 0x398   : > { %6122 = vmatprep.subr.bf16.mxu1 %v7998_v51 }
 0x399   : > { %v1361_v37 = vpop.permute.xlu1 %1360 }
 0x39a   : > { %6156 = vmatprep.subr.bf16.mxu0 %v1361_v37 }
 0x39b   : > { %6157 = vmatpush3.bf16.msra.mxu0 %v1361_v37 }
 0x39d   : > { %v8068_v40 = vpop.permute.xlu1 %1372 }
 0x39e   : > { %6115 = vmatmul.mubr.msk.bf16.vlgmr.msra.gmra.mxu1 %vm1380_vm0, %v1299_v17 }
 0x39f   : > { %6118 = vmatprep.mubr.msk.bf16.mxu1 %vm1380_vm0, %v1301_v25  ;;  %6123 = vmatpush3.bf16.msra.mxu1 %v7998_v51 }
 0x3a0   : > { %6124 = vmatprep.subr.bf16.mxu1 %v8000_v52 }
 0x3a1   : > { %v1359_v41 = vpop.permute.xlu1 %1358 }
 0x3a2   : > { %6158 = vmatprep.subr.bf16.mxu0 %v1359_v41 }
 0x3a3   : > { %6125 = vmatpush3.bf16.msra.mxu1 %v8000_v52  ;;  %6159 = vmatpush3.bf16.msra.mxu0 %v1359_v41 }
 0x3a4   : > { %6126 = vmatprep.subr.bf16.mxu1 %v8006_v15 }
 0x3a6   : > { %6119 = vmatmul.mubr.msk.bf16.gmra.mxu1 %vm1380_vm0, %v1303_v24 }
 0x3a7   : > { %6127 = vmatpush3.bf16.msra.mxu1 %v8006_v15 }
 0x3a8   : > { %6128 = vmatprep.subr.bf16.mxu1 %v8012_v53 }
 0x3ab   : > { %6129 = vmatpush3.bf16.msra.mxu1 %v8012_v53 }
 0x3ac   : > { %6138 = vmatprep.subr.bf16.mxu1 %v8055_v28 }
 0x3cc   : > { %v8081_v42 = vpop.f32.mrf.mxu0 }
 0x3cd   : > { %v1744_v43 = vsel %vm1737_vm1, %v8081_v42, -inf }
 0x3ce   : > { %1745 = vmax.xlane.f32.xlu0 %v1744_v43  ;;  %v8085_v44 = vpop.f32.mrf.mxu0 }
 0x3cf   : > { %v1738_v45 = vsel %vm1737_vm1, %v8085_v44, -inf }
 0x3d0   : > { %v8087_v14 = vpop.f32.mrf.mxu0 }
 0x3d1   : > { %v1747_v22 = vsel %vm1737_vm1, %v8087_v14, -inf }
 0x3d2   : > { %1739 = vmax.xlane.f32.xlu0 %v1738_v45  ;;  %v8091_v46 = vpop.f32.mrf.mxu0 }
 0x3d3   : > { %v1741_v47 = vsel %vm1737_vm1, %v8091_v46, -inf }
 0x3d4   : > { %1742 = vmax.xlane.f32.xlu1 %v1741_v47  ;;  %v8095_v48 = vpop.f32.mrf.mxu0 }
 0x3d5   : > { %v1756_v52 = vsel %vm1737_vm1, %v8095_v48, -inf }
 0x3d6   : > { %1748 = vmax.xlane.f32.xlu0 %v1747_v22  ;;  %v8099_v50 = vpop.f32.mrf.mxu0 }
 0x3d7   : > { %v1750_v30 = vsel %vm1737_vm1, %v8099_v50, -inf }
 0x3d8   : > { %v8101_v51 = vpop.f32.mrf.mxu0 }
 0x3d9   : > { %v1759_v54 = vsel %vm1737_vm1, %v8101_v51, -inf }
 0x3da   : > { %1757 = vmax.xlane.f32.xlu0 %v1756_v52  ;;  %1760 = vmax.xlane.f32.xlu1 %v1759_v54  ;;  %v8107_v23 = vpop.f32.mrf.mxu0 }
 0x3db   : > { %v1753_v56 = vsel %vm1737_vm1, %v8107_v23, -inf }
 0x3de   : > { %1751 = vmax.xlane.f32.xlu0 %v1750_v30  ;;  %1754 = vmax.xlane.f32.xlu1 %v1753_v56 }
 0x43e   : > { %v8113_v57 = vpop.f32.mrf.mxu1 }
 0x43f   : > { %v1768_v58 = vsel %vm1737_vm1, %v8113_v57, -inf }
 0x440   : > { %v8117_v59 = vpop.f32.mrf.mxu1  ;;  %1769 = vmax.xlane.f32.xlu0 %v1768_v58 }
 0x441   : > { %v1762_v3 = vsel %vm1737_vm1, %v8117_v59, -inf }
 0x442   : > { %v8119_v60 = vpop.f32.mrf.mxu1  ;;  %v8121_v63 = vpop.f32.mrf.mxu0 }
 0x443   : > { %v1771_v31 = vsel %vm1737_vm1, %v8119_v60, -inf  ;;  %v1792_v38 = vsel %vm1737_vm1, %v8121_v63, -inf }
 0x444   : > { %v8127_v39 = vpop.f32.mrf.mxu1  ;;  %1772 = vmax.xlane.f32.xlu1 %v1771_v31  ;;  %1793 = vmax.xlane.f32.xlu0 %v1792_v38  ;;  %v8129_v1 = vpop.f32.mrf.mxu0 }
 0x445   : > { %v1786_v7 = vsel %vm1737_vm1, %v8129_v1, -inf  ;;  %v1765_v8 = vsel %vm1737_vm1, %v8127_v39, -inf }
 0x446   : > { %v8131_v2 = vpop.f32.mrf.mxu0  ;;  %v8137_v5 = vpop.f32.mrf.mxu1 }
 0x447   : > { %v1795_v4 = vsel %vm1737_vm1, %v8131_v2, -inf  ;;  %v1780_v11 = vsel %vm1737_vm1, %v8137_v5, -inf }
 0x448   : > { %1763 = vmax.xlane.f32.xlu0 %v1762_v3  ;;  %1796 = vmax.xlane.f32.xlu1 %v1795_v4  ;;  %v8139_v6 = vpop.f32.mrf.mxu0  ;;  %v8145_v9 = vpop.f32.mrf.mxu1 }
 0x449   : > { %v1789_v12 = vsel %vm1737_vm1, %v8139_v6, -inf  ;;  %v1774_v21 = vsel %vm1737_vm1, %v8145_v9, -inf }
 0x44a   : > { %v8147_v10 = vpop.f32.mrf.mxu0  ;;  %v8153_v13 = vpop.f32.mrf.mxu1 }
 0x44b   : > { %v1783_v17 = vsel %vm1737_vm1, %v8153_v13, -inf  ;;  %v1804_v18 = vsel %vm1737_vm1, %v8147_v10, -inf }
 0x44c   : > { %1787 = vmax.xlane.f32.xlu0 %v1786_v7  ;;  %1766 = vmax.xlane.f32.xlu1 %v1765_v8  ;;  %v8155_v16 = vpop.f32.mrf.mxu0  ;;  %v8167_v25 = vpop.f32.mrf.mxu1 }
 0x44d   : > { %v1798_v37 = vsel %vm1737_vm1, %v8155_v16, -inf  ;;  %v1777_v41 = vsel %vm1737_vm1, %v8167_v25, -inf }
 0x44e   : > { %v8161_v19 = vpop.f32.mrf.mxu0 }
 0x44f   : > { %v1807_v24 = vsel %vm1737_vm1, %v8161_v19, -inf }
 0x450   : > { %1781 = vmax.xlane.f32.xlu0 %v1780_v11  ;;  %1790 = vmax.xlane.f32.xlu1 %v1789_v12  ;;  %v8170_v32 = vpop.f32.mrf.mxu0 }
 0x454   : > { %1784 = vmax.xlane.f32.xlu1 %v1783_v17  ;;  %1805 = vmax.xlane.f32.xlu0 %v1804_v18 }
 0x457   : > { %v1746_v20 = vpop.xlane.xlu0 %1745 }
 0x458   : > { %v1836_v26 = vsub.f32 %v8081_v42, %v1746_v20  ;;  %1775 = vmax.xlane.f32.xlu0 %v1774_v21  ;;  %1808 = vmax.xlane.f32.xlu1 %v1807_v24  ;;  %v1801_v42 = vsel %vm1737_vm1, %v8170_v32, -inf }
 0x45a   : > { %v1870_v33 = vmul.f32 1.442695, %v1836_v26 }
 0x45b   : > { %v1740_v36 = vpop.xlane.xlu0 %1739 }
 0x45c   : > { %v1834_v43 = vsub.f32 %v8085_v44, %v1740_v36  ;;  %1799 = vmax.xlane.f32.xlu0 %v1798_v37  ;;  %1778 = vmax.xlane.f32.xlu1 %v1777_v41  ;;  %6810 = vpow2.f32 %v1870_v33 }
 0x45d   : > { %v1743_v45 = vpop.xlane.xlu1 %1742 }
 0x45e   : > { %v8177_v47 = vpop.f32.mrf.mxu1  ;;  %v1866_v22 = vmul.f32 1.442695, %v1834_v43  ;;  %v1835_v52 = vsub.f32 %v8091_v46, %v1743_v45 }
 0x45f   : > { %v1749_v54 = vpop.xlane.xlu0 %1748  ;;  %v1816_v30 = vsel %vm1737_vm1, %v8177_v47, -inf }
 0x460   : > { %v1837_v56 = vsub.f32 %v8087_v14, %v1749_v54  ;;  %v8185_v58 = vpop.f32.mrf.mxu1  ;;  %1817 = vmax.xlane.f32.xlu0 %v1816_v30  ;;  %1802 = vmax.xlane.f32.xlu1 %v1801_v42  ;;  %6812 = vpow2.f32 %v1866_v22  ;;  %v1868_v38 = vmul.f32 1.442695, %v1835_v52 }
 0x461   : > { %v1810_v46 = vsel %vm1737_vm1, %v8185_v58, -inf }
 0x462   : > { %v1872_v44 = vmul.f32 1.442695, %v1837_v56  ;;  %v8187_v31 = vpop.f32.mrf.mxu1 }
 0x463   : > { %v1758_v3 = vpop.xlane.xlu0 %1757  ;;  %v1761_v4 = vpop.xlane.xlu1 %1760  ;;  %v1819_v7 = vsel %vm1737_vm1, %v8187_v31, -inf }
 0x464   : > { %6814 = vpow2.f32 %v1872_v44  ;;  %v1840_v14 = vsub.f32 %v8095_v48, %v1758_v3  ;;  %v1841_v8 = vsub.f32 %v8101_v51, %v1761_v4  ;;  %v8195_v11 = vpop.f32.mrf.mxu1  ;;  %1811 = vmax.xlane.f32.xlu0 %v1810_v46  ;;  %1820 = vmax.xlane.f32.xlu1 %v1819_v7 }
 0x465   : > { %6816 = vpow2.f32 %v1868_v38  ;;  %v1813_v26 = vsel %vm1737_vm1, %v8195_v11, -inf }
 0x466   : > { %v1878_v12 = vmul.f32 1.442695, %v1840_v14  ;;  %v8197_v17 = vpop.f32.mrf.mxu1  ;;  %v1880_v18 = vmul.f32 1.442695, %v1841_v8 }
 0x467   : > { %v1752_v20 = vpop.xlane.xlu0 %1751  ;;  %v1755_v21 = vpop.xlane.xlu1 %1754  ;;  %v1828_v24 = vsel %vm1737_vm1, %v8197_v17, -inf }
 0x468   : > { %6818 = vpow2.f32 %v1878_v12  ;;  %v1838_v48 = vsub.f32 %v8099_v50, %v1752_v20  ;;  %v1839_v51 = vsub.f32 %v8107_v23, %v1755_v21  ;;  %v8205_v33 = vpop.f32.mrf.mxu1  ;;  %1829 = vmax.xlane.f32.xlu0 %v1828_v24  ;;  %1814 = vmax.xlane.f32.xlu1 %v1813_v26 }
 0x469   : > { %6820 = vpow2.f32 %v1880_v18  ;;  %v1822_v43 = vsel %vm1737_vm1, %v8205_v33, -inf  ;;  %v8213_v42 = vpop.eup %6810 }
 0x46a   : > { %v1874_v36 = vmul.f32 1.442695, %v1838_v48  ;;  %v8207_v37 = vpop.f32.mrf.mxu1  ;;  %v1876_v41 = vmul.f32 1.442695, %v1839_v51  ;;  %v1936_v23 = vsel %vm1737_vm1, %v8213_v42, 0.0 }
 0x46b   : > { %v1831_v45 = vsel %vm1737_vm1, %v8207_v37, -inf }
 0x46c   : > { %6822 = vpow2.f32 %v1874_v36  ;;  %v8215_v50 = vpop.f32.mrf.mxu1  ;;  %1823 = vmax.xlane.f32.xlu0 %v1822_v43  ;;  %1832 = vmax.xlane.f32.xlu1 %v1831_v45 }
 0x46d   : > { %6824 = vpow2.f32 %v1876_v41  ;;  %v1825_v22 = vsel %vm1737_vm1, %v8215_v50, -inf  ;;  %v8221_v52 = vpop.eup %6812 }
 0x46e   : > { %v1930_v30 = vsel %vm1737_vm1, %v8221_v52, 0.0 }
 0x470   : > { %1937 = vadd.xlane.f32.xlu0 %v1936_v23  ;;  %1826 = vmax.xlane.f32.xlu1 %v1825_v22 }
 0x471   : > { %v8223_v54 = vpop.eup %6814 }
 0x472   : > { %v1939_v56 = vsel %vm1737_vm1, %v8223_v54, 0.0  ;;  %v8229_v44 = vpop.eup %6816 }
 0x473   : > { %v1933_v4 = vsel %vm1737_vm1, %v8229_v44, 0.0 }
 0x474   : > { %1931 = vadd.xlane.f32.xlu0 %v1930_v30  ;;  %1940 = vadd.xlane.f32.xlu1 %v1939_v56 }
 0x475   : > { %v8231_v38 = vpop.eup %6818 }
 0x476   : > { %v1948_v3 = vsel %vm1737_vm1, %v8231_v38, 0.0  ;;  %v8237_v46 = vpop.eup %6820 }
 0x477   : > { %v1951_v8 = vsel %vm1737_vm1, %v8237_v46, 0.0 }
 0x478   : > { %1949 = vadd.xlane.f32.xlu0 %v1948_v3  ;;  %1934 = vadd.xlane.f32.xlu1 %v1933_v4 }
 0x479   : > { %v8239_v7 = vpop.eup %6822 }
 0x47a   : > { %v1942_v14 = vsel %vm1737_vm1, %v8239_v7, 0.0  ;;  %v8245_v12 = vpop.eup %6824 }
 0x47b   : > { %v1945_v18 = vsel %vm1737_vm1, %v8245_v12, 0.0 }
 0x47c   : > { %1943 = vadd.xlane.f32.xlu0 %v1942_v14  ;;  %1952 = vadd.xlane.f32.xlu1 %v1951_v8 }
 0x480   : > { %1946 = vadd.xlane.f32.xlu1 %v1945_v18 }
 0x4c9   : > { %v1770_v20 = vpop.xlane.xlu0 %1769 }
 0x4ca   : > { %v1844_v21 = vsub.f32 %v8113_v57, %v1770_v20 }
 0x4cc   : > { %v1886_v24 = vmul.f32 1.442695, %v1844_v21 }
 0x4cd   : > { %v1773_v26 = vpop.xlane.xlu1 %1772  ;;  %v1794_v48 = vpop.xlane.xlu0 %1793 }
 0x4ce   : > { %6826 = vpow2.f32 %v1886_v24  ;;  %v1852_v51 = vsub.f32 %v8121_v63, %v1794_v48  ;;  %v1845_v23 = vsub.f32 %v8119_v60, %v1773_v26 }
 0x4d0   : > { %v1902_v36 = vmul.f32 1.442695, %v1852_v51  ;;  %v1888_v3 = vmul.f32 1.442695, %v1845_v23 }
 0x4d1   : > { %v1764_v41 = vpop.xlane.xlu0 %1763  ;;  %v1797_v43 = vpop.xlane.xlu1 %1796 }
 0x4d2   : > { %v1842_v45 = vsub.f32 %v8117_v59, %v1764_v41  ;;  %6828 = vpow2.f32 %v1902_v36  ;;  %v1853_v4 = vsub.f32 %v8131_v2, %v1797_v43 }
 0x4d4   : > { %v1882_v22 = vmul.f32 1.442695, %v1842_v45  ;;  %v1904_v60 = vmul.f32 1.442695, %v1853_v4 }
 0x4d5   : > { %v1788_v30 = vpop.xlane.xlu0 %1787  ;;  %v1767_v56 = vpop.xlane.xlu1 %1766 }
 0x4d6   : > { %6830 = vpow2.f32 %v1882_v22  ;;  %v1850_v57 = vsub.f32 %v8129_v1, %v1788_v30  ;;  %v1843_v59 = vsub.f32 %v8127_v39, %v1767_v56 }
 0x4d8   : > { %v1898_v14 = vmul.f32 1.442695, %v1850_v57  ;;  %v1884_v2 = vmul.f32 1.442695, %v1843_v59 }
 0x4d9   : > { %v1782_v8 = vpop.xlane.xlu0 %1781  ;;  %v1791_v63 = vpop.xlane.xlu1 %1790 }
 0x4da   : > { %6832 = vpow2.f32 %v1898_v14  ;;  %v1848_v18 = vsub.f32 %v8137_v5, %v1782_v8  ;;  %v1851_v5 = vsub.f32 %v8139_v6, %v1791_v63 }
 0x4db   : > { %v8256_v20 = vpop.eup %6826  ;;  %6834 = vpow2.f32 %v1888_v3 }
 0x4dc   : > { %v1894_v21 = vmul.f32 1.442695, %v1848_v18  ;;  %v1960_v24 = vsel %vm1737_vm1, %v8256_v20, 0.0  ;;  %v1900_v45 = vmul.f32 1.442695, %v1851_v5 }
 0x4dd   : > { %v1785_v1 = vpop.xlane.xlu1 %1784  ;;  %v1806_v26 = vpop.xlane.xlu0 %1805  ;;  %1961 = vadd.xlane.f32.xlu0 %v1960_v24 }
 0x4de   : > { %6836 = vpow2.f32 %v1894_v21  ;;  %v1849_v3 = vsub.f32 %v8153_v13, %v1785_v1  ;;  %v1856_v5 = vsub.f32 %v8147_v10, %v1806_v26 }
 0x4df   : > { %v8261_v48 = vpop.eup %6828  ;;  %6838 = vpow2.f32 %v1904_v60 }
 0x4e0   : > { %v1984_v39 = vsel %vm1737_vm1, %v8261_v48, 0.0  ;;  %6840 = vpow2.f32 %v1884_v2 }
 0x4e1   : > { %v1776_v51 = vpop.xlane.xlu0 %1775  ;;  %v1809_v36 = vpop.xlane.xlu1 %1808  ;;  %1985 = vadd.xlane.f32.xlu1 %v1984_v39 }
 0x4e2   : > { %v1846_v41 = vsub.f32 %v8145_v9, %v1776_v51 }
 0x4e3   : > { %v8267_v43 = vpop.eup %6830 }
 0x4e4   : > { %v1890_v23 = vmul.f32 1.442695, %v1846_v41  ;;  %v1954_v22 = vsel %vm1737_vm1, %v8267_v43, 0.0 }
 0x4e5   : > { %1955 = vadd.xlane.f32.xlu0 %v1954_v22  ;;  %v1800_v30 = vpop.xlane.xlu0 %1799  ;;  %v1779_v56 = vpop.xlane.xlu1 %1778  ;;  %v1857_v22 = vsub.f32 %v8161_v19, %v1809_v36 }
 0x4e6   : > { %6842 = vpow2.f32 %v1890_v23  ;;  %v1854_v6 = vsub.f32 %v8155_v16, %v1800_v30  ;;  %v1896_v16 = vmul.f32 1.442695, %v1849_v3  ;;  %v1847_v21 = vsub.f32 %v8167_v25, %v1779_v56 }
 0x4e7   : > { %v8272_v57 = vpop.eup %6832  ;;  %6844 = vpow2.f32 %v1900_v45  ;;  %v1910_v23 = vmul.f32 1.442695, %v1856_v5  ;;  %v1912_v19 = vmul.f32 1.442695, %v1857_v22 }
 0x4e8   : > { %v8275_v9 = vpop.eup %6834  ;;  %v1906_v4 = vmul.f32 1.442695, %v1854_v6  ;;  %v1978_v14 = vsel %vm1737_vm1, %v8272_v57, 0.0  ;;  %v1892_v41 = vmul.f32 1.442695, %v1847_v21 }
 0x4e9   : > { %v1818_v8 = vpop.xlane.xlu0 %1817  ;;  %1979 = vadd.xlane.f32.xlu1 %v1978_v14  ;;  %v1803_v63 = vpop.xlane.xlu1 %1802  ;;  %v1963_v13 = vsel %vm1737_vm1, %v8275_v9, 0.0 }
 0x4ea   : > { %v1860_v18 = vsub.f32 %v8177_v47, %v1818_v8  ;;  %v1855_v59 = vsub.f32 %v8170_v32, %v1803_v63  ;;  %6846 = vpow2.f32 %v1906_v4 }
 0x4eb   : > { %v8281_v60 = vpop.eup %6836 }
 0x4ec   : > { %v1908_v24 = vmul.f32 1.442695, %v1855_v59  ;;  %v1972_v1 = vsel %vm1737_vm1, %v8281_v60, 0.0  ;;  %v8288_v2 = vpop.eup %6838  ;;  %v1918_v47 = vmul.f32 1.442695, %v1860_v18 }
 0x4ed   : > { %1973 = vadd.xlane.f32.xlu0 %v1972_v1  ;;  %v1812_v32 = vpop.xlane.xlu0 %1811  ;;  %1964 = vadd.xlane.f32.xlu1 %v1963_v13  ;;  %v1821_v51 = vpop.xlane.xlu1 %1820  ;;  %v1987_v45 = vsel %vm1737_vm1, %v8288_v2, 0.0 }
 0x4ee   : > { %6848 = vpow2.f32 %v1908_v24  ;;  %v8291_v39 = vpop.eup %6840  ;;  %v1858_v25 = vsub.f32 %v8185_v58, %v1812_v32  ;;  %v1861_v3 = vsub.f32 %v8187_v31, %v1821_v51 }
 0x4ef   : > { %6850 = vpow2.f32 %v1896_v16  ;;  %v1957_v56 = vsel %vm1737_vm1, %v8291_v39, 0.0 }
 0x4f0   : > { %6852 = vpow2.f32 %v1918_v47  ;;  %v1914_v6 = vmul.f32 1.442695, %v1858_v25  ;;  %v1920_v31 = vmul.f32 1.442695, %v1861_v3 }
 0x4f1   : > { %v1830_v10 = vpop.xlane.xlu0 %1829  ;;  %1988 = vadd.xlane.f32.xlu1 %v1987_v45  ;;  %v1815_v26 = vpop.xlane.xlu1 %1814  ;;  %6854 = vpow2.f32 %v1892_v41 }
 0x4f2   : > { %6856 = vpow2.f32 %v1910_v23  ;;  %v1864_v36 = vsub.f32 %v8197_v17, %v1830_v10  ;;  %v1859_v63 = vsub.f32 %v8195_v11, %v1815_v26 }
 0x4f3   : > { %v8297_v30 = vpop.eup %6842  ;;  %6858 = vpow2.f32 %v1914_v6 }
 0x4f4   : > { %v1966_v58 = vsel %vm1737_vm1, %v8297_v30, 0.0  ;;  %v8304_v4 = vpop.eup %6844  ;;  %6860 = vpow2.f32 %v1912_v19  ;;  %v1926_v13 = vmul.f32 1.442695, %v1864_v36  ;;  %v1916_v24 = vmul.f32 1.442695, %v1859_v63 }
 0x4f5   : > { %1967 = vadd.xlane.f32.xlu0 %v1966_v58  ;;  %v1824_v14 = vpop.xlane.xlu0 %1823  ;;  %1958 = vadd.xlane.f32.xlu1 %v1957_v56  ;;  %v8307_v8 = vpop.xlane.xlu1 %1832  ;;  %v1981_v59 = vsel %vm1737_vm1, %v8304_v4, 0.0  ;;  %6862 = vpow2.f32 %v1920_v31 }
 0x4f6   : > { %v1862_v18 = vsub.f32 %v8205_v33, %v1824_v14  ;;  %6864 = vpow2.f32 %v1926_v13 }
 0x4f7   : > { %v8313_v16 = vpop.eup %6846  ;;  %6866 = vpow2.f32 %v1916_v24 }
 0x4f8   : > { %v1922_v1 = vmul.f32 1.442695, %v1862_v18  ;;  %v1990_v11 = vsel %vm1737_vm1, %v8313_v16, 0.0 }
 0x4f9   : > { %v1938_v21 = vpop.xlane.xlu0 %1937  ;;  %1982 = vadd.xlane.f32.xlu1 %v1981_v59  ;;  %v8315_v17 = vpop.xlane.xlu1 %1826 }
 0x4fa   : > { %6868 = vpow2.f32 %v1922_v1 }
 0x4fb   : > { %v8317_v5 = vpop.eup %6848 }
 0x4fc   : > { %v8321_v33 = vpop.eup %6850  ;;  %v1993_v32 = vsel %vm1737_vm1, %v8317_v5, 0.0 }
 0x4fd   : > { %v1932_v47 = vpop.xlane.xlu0 %1931  ;;  %1991 = vadd.xlane.f32.xlu1 %v1990_v11  ;;  %v1941_v51 = vpop.xlane.xlu1 %1940  ;;  %1994 = vadd.xlane.f32.xlu0 %v1993_v32  ;;  %v1975_v25 = vsel %vm1737_vm1, %v8321_v33, 0.0 }
 0x4fe   : > { %v8325_v41 = vpop.eup %6852  ;;  %6870 = vrcp.f32 %v1941_v51 }
 0x4ff   : > { %v8329_v45 = vpop.eup %6854  ;;  %6872 = vrcp.f32 %v1932_v47  ;;  %v2008_v22 = vsel %vm1737_vm1, %v8325_v41, 0.0 }
 0x500   : > { %v8333_v26 = vpop.eup %6856  ;;  %6874 = vrcp.f32 %v1938_v21  ;;  %v1969_v56 = vsel %vm1737_vm1, %v8329_v45, 0.0 }
 0x501   : > { %v1950_v23 = vpop.xlane.xlu0 %1949  ;;  %1976 = vadd.xlane.f32.xlu1 %v1975_v25  ;;  %v1935_v10 = vpop.xlane.xlu1 %1934  ;;  %2009 = vadd.xlane.f32.xlu0 %v2008_v22  ;;  %v1996_v58 = vsel %vm1737_vm1, %v8333_v26, 0.0 }
 0x502   : > { %6876 = vrcp.f32 %v1935_v10  ;;  %v8337_v6 = vpop.eup %6858 }
 0x503   : > { %v8341_v36 = vpop.eup %6860  ;;  %v2002_v14 = vsel %vm1737_vm1, %v8337_v6, 0.0 }
 0x504   : > { %v8345_v63 = vpop.eup %6862  ;;  %v1999_v18 = vsel %vm1737_vm1, %v8341_v36, 0.0 }
 0x505   : > { %v1944_v3 = vpop.xlane.xlu0 %1943  ;;  %1970 = vadd.xlane.f32.xlu1 %v1969_v56  ;;  %v1953_v19 = vpop.xlane.xlu1 %1952  ;;  %1997 = vadd.xlane.f32.xlu0 %v1996_v58  ;;  %v2011_v24 = vsel %vm1737_vm1, %v8345_v63, 0.0 }
 0x506   : > { %6878 = vrcp.f32 %v1944_v3  ;;  %v8349_v59 = vpop.eup %6864 }
 0x507   : > { %6880 = vrcp.f32 %v1953_v19  ;;  %v8351_v13 = vpop.eup %6866  ;;  %v2020_v11 = vsel %vm1737_vm1, %v8349_v59, 0.0 }
 0x508   : > { %6882 = vrcp.f32 %v1950_v23  ;;  %v8353_v21 = vpop.eup %6868  ;;  %v2005_v23 = vsel %vm1737_vm1, %v8351_v13, 0.0 }
 0x509   : > { %2003 = vadd.xlane.f32.xlu1 %v2002_v14  ;;  %v1947_v31 = vpop.xlane.xlu1 %1946  ;;  %2000 = vadd.xlane.f32.xlu0 %v1999_v18  ;;  %v2014_v22 = vsel %vm1737_vm1, %v8353_v21, 0.0 }
 0x50a   : > { %6884 = vrcp.f32 %v1947_v31 }
 0x50b   : > { %v6871_v1 = vpop.eup %6870 }
 0x50c   : > { %v6873_v47 = vpop.eup %6872  ;;  %v2061_v25 = vmul.f32 %v6871_v1, %v8223_v54 }
 0x50d   : > { %2012 = vadd.xlane.f32.xlu1 %v2011_v24  ;;  %2021 = vadd.xlane.f32.xlu0 %v2020_v11  ;;  %v6875_v32 = vpop.eup %6874  ;;  %v2058_v10 = vmul.f32 %v6873_v47, %v8221_v52  ;;  %v8406_v47 = vld [vmem:[%s7860_s1] sm:$0xff] }
 0x50e   : > { %v2060_v3 = vmul.f32 %v6875_v32, %v8213_v42 }
 0x50f   : > { %v6877_v51 = vpop.eup %6876 }
 0x510   : > { %v2059_v56 = vmul.f32 %v6877_v51, %v8229_v44  ;;  %v2091_v14 = vpack.c.bf16 %v2061_v25, %v2060_v3 }
 0x511   : > { %2006 = vadd.xlane.f32.xlu1 %v2005_v23  ;;  %2015 = vadd.xlane.f32.xlu0 %v2014_v22 }
 0x512   : > { %v2090_v58 = vpack.c.bf16 %v2059_v56, %v2058_v10 }
 0x513   : > { %v6879_v19 = vpop.eup %6878 }
 0x514   : > { %v6881_v18 = vpop.eup %6880  ;;  %6130 = vmatprep.mubr.msk.bf16.mxu1 %vm1737_vm1, %v2090_v58  ;;  %v2062_v52 = vmul.f32 %v6879_v19, %v8239_v7  ;;  %v8414_v58 = vld [vmem:[%s7860_s1 + $0x18] sm:$0xff] }
 0x515   : > { %v6883_v54 = vpop.eup %6882  ;;  %6131 = vmatmul.mubr.msk.bf16.vlgmr.msra.gmra.mxu1 %vm1737_vm1, %v2091_v14  ;;  %v2065_v42 = vmul.f32 %v6881_v18, %v8237_v46 }
 0x516   : > { %6139 = vmatpush3.bf16.msra.mxu1 %v8055_v28  ;;  %v2064_v1 = vmul.f32 %v6883_v54, %v8231_v38  ;;  %v1863_v28 = vsub.f32 %v8215_v50, %v8315_v17 }
 0x517   : > { %v6885_v31 = vpop.eup %6884  ;;  %6140 = vmatprep.subr.bf16.mxu1 %v8053_v27 }
 0x518   : > { %v2063_v44 = vmul.f32 %v6885_v31, %v8245_v12  ;;  %v2093_v11 = vpack.c.bf16 %v2065_v42, %v2064_v1  ;;  %v1924_v38 = vmul.f32 1.442695, %v1863_v28 }
 0x51a   : > { %v2092_v24 = vpack.c.bf16 %v2063_v44, %v2062_v52  ;;  %6141 = vmatpush3.bf16.msra.mxu1 %v8053_v27  ;;  %v1865_v27 = vsub.f32 %v8207_v37, %v8307_v8  ;;  %v8400_v37 = vld [vmem:[%s7860_s1 + $0x8] sm:$0xff] }
 0x51b   : > { %6142 = vmatprep.subr.bf16.mxu1 %v8058_v29 }
 0x51c   : > { %6134 = vmatprep.mubr.msk.bf16.mxu1 %vm1737_vm1, %v2092_v24 }
 0x51d   : > { %6135 = vmatmul.mubr.msk.bf16.gmra.mxu1 %vm1737_vm1, %v2093_v11 }
 0x51e   : > { %6143 = vmatpush3.bf16.msra.mxu1 %v8058_v29  ;;  %v1928_v29 = vmul.f32 1.442695, %v1865_v27 }
 0x51f   : > { %6144 = vmatprep.subr.bf16.mxu1 %v8062_v34 }
 0x520   : > { %6886 = vpow2.f32 %v1928_v29 }
 0x521   : > { %6888 = vpow2.f32 %v1924_v38 }
 0x522   : > { %1370 = vrot.lane.b32.xlu1 %v8006_v15, %s7506_s20  ;;  %6145 = vmatpush3.bf16.msra.mxu1 %v8062_v34 }
 0x523   : > { %6170 = vmatprep.subr.bf16.mxu1 %v8064_v35 }
 0x527   : > { %1356 = vrot.lane.b32.xlu0 %v8012_v53, %s7505_s17 }
 0x52d   : > { %v8391_v15 = vpop.eup %6886 }
 0x52e   : > { %v8393_v46 = vpop.eup %6888  ;;  %v2023_v34 = vsel %vm1737_vm1, %v8391_v15, 0.0 }
 0x52f   : > { %v2017_v7 = vsel %vm1737_vm1, %v8393_v46, 0.0 }
 0x546   : > { %2024 = vadd.xlane.f32.xlu1 %v2023_v34  ;;  %2018 = vadd.xlane.f32.xlu0 %v2017_v7 }
 0x54a   : > { %898 = vadd.xlane.f32.xlu1 %v8400_v37 }
 0x55c   : > { %1368 = vrot.lane.b32.xlu0 %v8012_v53, %s7506_s20  ;;  %v8410_v53 = vld [vmem:[%s7860_s1 + $0x10] sm:$0xff]  ;;  %s9388_s1 = scalar_lea.hbm %s9527_s6, %s5793_s11 }
 0x55d   : > { %900 = vadd.xlane.f32.xlu1 %v8410_v53 }
 0x561   : > { %902 = vadd.xlane.f32.xlu1 %v8414_v58 }
 0x566   : > { %v1962_v17 = vpop.xlane.xlu0 %1961 }
 0x56a   : > { %v1986_v50 = vpop.xlane.xlu1 %1985 }
 0x56e   : > { %v1956_v51 = vpop.xlane.xlu0 %1955 }
 0x572   : > { %v1980_v12 = vpop.xlane.xlu1 %1979 }
 0x576   : > { %v1965_v8 = vpop.xlane.xlu1 %1964  ;;  %v1974_v23 = vpop.xlane.xlu0 %1973 }
 0x577   : > { %6890 = vrcp.f32 %v1965_v8 }
 0x578   : > { %6892 = vrcp.f32 %v1956_v51 }
 0x579   : > { %6894 = vrcp.f32 %v1962_v17 }
 0x57a   : > { %v1989_v32 = vpop.xlane.xlu1 %1988 }
 0x57b   : > { %896 = vadd.xlane.f32.xlu0 %v8406_v47 }
 0x57e   : > { %v1959_v25 = vpop.xlane.xlu1 %1958  ;;  %v1968_v10 = vpop.xlane.xlu0 %1967 }
 0x57f   : > { %6896 = vrcp.f32 %v1959_v25 }
 0x580   : > { %6898 = vrcp.f32 %v1980_v12 }
 0x582   : > { %v1983_v22 = vpop.xlane.xlu1 %1982 }
 0x583   : > { %6900 = vrcp.f32 %v1983_v22 }
 0x584   : > { %6902 = vrcp.f32 %v1974_v23  ;;  %v6891_v19 = vpop.eup %6890 }
 0x585   : > { %6904 = vrcp.f32 %v1989_v32  ;;  %v6893_v18 = vpop.eup %6892  ;;  %v2069_v44 = vmul.f32 %v6891_v19, %v8275_v9 }
 0x586   : > { %v1992_v56 = vpop.xlane.xlu1 %1991  ;;  %v1995_v3 = vpop.xlane.xlu0 %1994  ;;  %6906 = vrcp.f32 %v1968_v10  ;;  %v2066_v1 = vmul.f32 %v6893_v18, %v8267_v43 }
 0x587   : > { %v6895_v31 = vpop.eup %6894 }
 0x588   : > { %v2068_v27 = vmul.f32 %v6895_v31, %v8256_v20 }
 0x58a   : > { %v1977_v14 = vpop.xlane.xlu1 %1976  ;;  %v8417_v54 = vpop.xlane.xlu0 %2009  ;;  %v2095_v34 = vpack.c.bf16 %v2069_v44, %v2068_v27 }
 0x58b   : > { %6908 = vrcp.f32 %v1977_v14 }
 0x58c   : > { %v6897_v52 = vpop.eup %6896  ;;  %6910 = vrcp.f32 %v1992_v56 }
 0x58d   : > { %v6899_v42 = vpop.eup %6898  ;;  %6912 = vrcp.f32 %v1995_v3  ;;  %v2067_v11 = vmul.f32 %v6897_v52, %v8291_v39 }
 0x58e   : > { %v1971_v24 = vpop.xlane.xlu1 %1970  ;;  %v1998_v28 = vpop.xlane.xlu0 %1997  ;;  %v2074_v7 = vmul.f32 %v6899_v42, %v8272_v57 }
 0x58f   : > { %6914 = vrcp.f32 %v1971_v24  ;;  %v2094_v38 = vpack.c.bf16 %v2067_v11, %v2066_v1 }
 0x590   : > { %v6901_v29 = vpop.eup %6900  ;;  %6916 = vrcp.f32 %v1986_v50 }
 0x591   : > { %v2075_v9 = vmul.f32 %v6901_v29, %v8304_v4  ;;  %6146 = vmatprep.mubr.msk.bf16.mxu1 %vm1737_vm1, %v2094_v38  ;;  %v6903_v20 = vpop.eup %6902 }
 0x592   : > { %v2004_v12 = vpop.xlane.xlu1 %2003  ;;  %v2001_v8 = vpop.xlane.xlu0 %2000  ;;  %6147 = vmatmul.mubr.msk.bf16.vlgmr.msra.gmra.mxu1 %vm1737_vm1, %v2095_v34 }
 0x593   : > { %v2098_v43 = vpack.c.bf16 %v2075_v9, %v2074_v7  ;;  %6171 = vmatpush3.bf16.msra.mxu1 %v8064_v35  ;;  %6918 = vrcp.f32 %v2001_v8  ;;  %v6905_v50 = vpop.eup %6904  ;;  %v6668_v8 = vld [vmem:[#allocation10 + $0x28] sm:$0xff]  }
 0x594   : > { %6172 = vmatprep.subr.bf16.mxu1 %v8068_v40  ;;  %v6907_v17 = vpop.eup %6906  ;;  %6920 = vrcp.f32 %v1998_v28  ;;  %v2077_v19 = vmul.f32 %v6905_v50, %v8288_v2 }
 0x595   : > { %6162 = vmatprep.mubr.msk.bf16.mxu0 %vm1737_vm1, %v2098_v43  ;;  %6922 = vrcp.f32 %v2004_v12  ;;  %v2070_v56 = vmul.f32 %v6907_v17, %v8297_v30  ;;  %v6667_v12 = vld [vmem:[#allocation10 + $0x30] sm:$0xff]   ;;  %v6669_v17 = vld [vmem:[#allocation10 + $0x20] sm:$0xff]  }
 0x596   : > { %v2013_v39 = vpop.xlane.xlu1 %2012  ;;  %v2022_v57 = vpop.xlane.xlu0 %2021 }
 0x597   : > { %6173 = vmatpush3.bf16.msra.mxu1 %v8068_v40  ;;  %v2072_v40 = vmul.f32 %v6903_v20, %v8281_v60 }
 0x598   : > { %v6909_v4 = vpop.eup %6908 }
 0x599   : > { %v6911_v32 = vpop.eup %6910  ;;  %v2073_v22 = vmul.f32 %v6909_v4, %v8321_v33 }
 0x59a   : > { %v2007_v51 = vpop.xlane.xlu1 %2006  ;;  %v6913_v25 = vpop.eup %6912  ;;  %v2078_v52 = vmul.f32 %v6911_v32, %v8313_v16 }
 0x59b   : > { %v2016_v23 = vpop.xlane.xlu0 %2015  ;;  %6924 = vrcp.f32 %v2007_v51  ;;  %v2079_v44 = vmul.f32 %v6913_v25, %v8317_v5  ;;  %v2097_v33 = vpack.c.bf16 %v2073_v22, %v2072_v40  ;;  %v6670_v51 = vld [vmem:[#allocation10 + $0x18] sm:$0xff]  }
 0x59c   : > { %v6915_v35 = vpop.eup %6914  ;;  %6926 = vrcp.f32 %v2013_v39 }
 0x59d   : > { %v6917_v10 = vpop.eup %6916  ;;  %v2071_v3 = vmul.f32 %v6915_v35, %v8329_v45  ;;  %v2100_v60 = vpack.c.bf16 %v2079_v44, %v2078_v52  ;;  %6928 = vrcp.f32 %v8417_v54 }
 0x59e   : > { %v1371_v14 = vpop.permute.xlu1 %1370  ;;  %v2076_v42 = vmul.f32 %v6917_v10, %v8261_v48  ;;  %6930 = vrcp.f32 %v2022_v57 }
 0x59f   : > { %v1357_v18 = vpop.permute.xlu0 %1356  ;;  %6174 = vmatprep.subr.bf16.mxu1 %v1371_v14  ;;  %v2096_v31 = vpack.c.bf16 %v2071_v3, %v2070_v56  ;;  %6932 = vrcp.f32 %v2016_v23 }
 0x5a0   : > { %6160 = vmatprep.subr.bf16.mxu0 %v1357_v18  ;;  %6175 = vmatpush3.bf16.msra.mxu1 %v1371_v14  ;;  %v2099_v2 = vpack.c.bf16 %v2077_v19, %v2076_v42  ;;  %v6919_v30 = vpop.eup %6918 }
 0x5a1   : > { %6161 = vmatpush3.bf16.msra.mxu0 %v1357_v18  ;;  %6150 = vmatprep.mubr.msk.bf16.mxu1 %vm1737_vm1, %v2096_v31  ;;  %v6921_v45 = vpop.eup %6920  ;;  %v2081_v5 = vmul.f32 %v6919_v30, %v8341_v36 }
 0x5a2   : > { %6151 = vmatmul.mubr.msk.bf16.gmra.mxu1 %vm1737_vm1, %v2097_v33  ;;  %v6923_v16 = vpop.eup %6922  ;;  %v2080_v24 = vmul.f32 %v6921_v45, %v8333_v26  ;;  %v6674_v33 = vld [vmem:[#allocation8 + $0x38] sm:$0xff]  }
 0x5a3   : > { %v2082_v1 = vmul.f32 %v6923_v16, %v8337_v6  ;;  %6186 = vmatprep.subr.bf16.mxu0 %v6674_v33  ;;  %v6676_v16 = vld [vmem:[#allocation8 + $0x28] sm:$0xff]  }
 0x5a4   : > { %6163 = vmatmul.mubr.msk.bf16.vlgmr.msra.gmra.mxu0 %vm1737_vm1, %v2099_v2  ;;  %v2101_v27 = vpack.c.bf16 %v2081_v5, %v2080_v24  ;;  %v6675_v2 = vld [vmem:[#allocation8 + $0x30] sm:$0xff]   ;;  %v6677_v24 = vld [vmem:[#allocation8 + $0x20] sm:$0xff]  }
 0x5a5   : > { %6166 = vmatprep.mubr.msk.bf16.mxu0 %vm1737_vm1, %v2100_v60  ;;  %6187 = vmatpush3.bf16.msra.mxu0 %v6674_v33 }
 0x5a6   : > { %6188 = vmatprep.subr.bf16.mxu0 %v6675_v2 }
 0x5a8   : > { %v6925_v48 = vpop.eup %6924 }
 0x5a9   : > { %v2083_v11 = vmul.f32 %v6925_v48, %v8351_v13  ;;  %v6927_v36 = vpop.eup %6926  ;;  %v6666_v13 = vld [vmem:[#allocation10 + $0x38] sm:$0xff]   ;;  %6189 = vmatpush3.bf16.msra.mxu0 %v6675_v2 }
 0x5aa   : > { %v6929_v26 = vpop.eup %6928  ;;  %v2085_v6 = vmul.f32 %v6927_v36, %v8345_v63  ;;  %6190 = vmatprep.subr.bf16.mxu0 %v6676_v16  ;;  %v6680_v36 = vld [vmem:[#allocation8 + $0x8] sm:$0xff]  }
 0x5ab   : > { %v2102_v28 = vpack.c.bf16 %v2083_v11, %v2082_v1  ;;  %v2084_v7 = vmul.f32 %v6929_v26, %v8325_v41  ;;  %v6931_v54 = vpop.eup %6930  ;;  %v6678_v11 = vld [vmem:[#allocation8 + $0x18] sm:$0xff]   ;;  %v6681_v26 = vld [vmem:[#allocation8] sm:$0xff]  }
 0x5ac   : > { %6167 = vmatmul.mubr.msk.bf16.gmra.mxu0 %vm1737_vm1, %v2101_v27  ;;  %v6933_v43 = vpop.eup %6932  ;;  %v2088_v63 = vmul.f32 %v6931_v54, %v8349_v59  ;;  %v6671_v59 = vld [vmem:[#allocation10 + $0x10] sm:$0xff]  }
 0x5ad   : > { %6178 = vmatprep.mubr.msk.bf16.mxu1 %vm1737_vm1, %v2102_v28  ;;  %v2103_v9 = vpack.c.bf16 %v2085_v6, %v2084_v7  ;;  %v2086_v41 = vmul.f32 %v6933_v43, %v8353_v21  ;;  %v6672_v21 = vld [vmem:[#allocation10 + $0x8] sm:$0xff]   ;;  %6191 = vmatpush3.bf16.msra.mxu0 %v6676_v16  ;;  %v6679_v27 = vld [vmem:[#allocation8 + $0x10] sm:$0xff]  }
 0x5ae   : > { %6192 = vmatprep.subr.bf16.mxu0 %v6677_v24 }
 0x5b1   : > { %6193 = vmatpush3.bf16.msra.mxu0 %v6677_v24 }
 0x5b2   : > { %6194 = vmatprep.subr.bf16.mxu0 %v6678_v11 }
 0x5b5   : > { %6195 = vmatpush3.bf16.msra.mxu0 %v6678_v11 }
 0x5b6   : > { %6196 = vmatprep.subr.bf16.mxu0 %v6679_v27 }
 0x5b9   : > { %6197 = vmatpush3.bf16.msra.mxu0 %v6679_v27 }
 0x5ba   : > { %6198 = vmatprep.subr.bf16.mxu0 %v6680_v36 }
 0x5bd   : > { %6199 = vmatpush3.bf16.msra.mxu0 %v6680_v36 }
 0x5be   : > { %6200 = vmatprep.subr.bf16.mxu0 %v6681_v26 }
 0x5c1   : > { %6201 = vmatpush3.bf16.msra.mxu0 %v6681_v26 }
 0x5cf   : > { %v2025_v29 = vpop.xlane.xlu1 %2024  ;;  %v2019_v38 = vpop.xlane.xlu0 %2018 }
 0x5d0   : > { %6934 = vrcp.f32 %v2025_v29 }
 0x5d1   : > { %6936 = vrcp.f32 %v2019_v38 }
 0x5d3   : > { %v1369_v34 = vpop.permute.xlu0 %1368 }
 0x5d4   : > { %6176 = vmatprep.subr.bf16.mxu1 %v1369_v34 }
 0x5d5   : > { %6177 = vmatpush3.bf16.msra.mxu1 %v1369_v34 }
 0x5d6   : > { %6210 = vmatprep.subr.bf16.mxu1 %v6666_v13 }
 0x5d8   : > { %6179 = vmatmul.mubr.msk.bf16.vlgmr.msra.gmra.mxu1 %vm1737_vm1, %v2103_v9 }
 0x5d9   : > { %6211 = vmatpush3.bf16.msra.mxu1 %v6666_v13 }
 0x5da   : > { %6212 = vmatprep.subr.bf16.mxu1 %v6667_v12 }
 0x5dd   : > { %v6935_v20 = vpop.eup %6934  ;;  %6213 = vmatpush3.bf16.msra.mxu1 %v6667_v12 }
 0x5de   : > { %v6937_v39 = vpop.eup %6936  ;;  %v2089_v50 = vmul.f32 %v6935_v20, %v8391_v15  ;;  %6214 = vmatprep.subr.bf16.mxu1 %v6668_v8  ;;  %v6673_v15 = vld [vmem:[#allocation10] sm:$0xff]  }
 0x5df   : > { %v2087_v57 = vmul.f32 %v6937_v39, %v8393_v46  ;;  %v899_v46 = vpop.xlane.xlu1 %898 }
 0x5e0   : > { %v2105_v4 = vpack.c.bf16 %v2089_v50, %v2088_v63 }
 0x5e1   : > { %v2104_v32 = vpack.c.bf16 %v2087_v57, %v2086_v41  ;;  %6215 = vmatpush3.bf16.msra.mxu1 %v6668_v8 }
 0x5e2   : > { %6216 = vmatprep.subr.bf16.mxu1 %v6669_v17 }
 0x5e3   : > { %6182 = vmatprep.mubr.msk.bf16.mxu1 %vm1737_vm1, %v2104_v32 }
 0x5e4   : > { %6183 = vmatmul.mubr.msk.bf16.gmra.mxu1 %vm1737_vm1, %v2105_v4 }
 0x5e5   : > { %6226 = vmatprep.mubr.bf16.mxu1 %v7934_v49  ;;  %6217 = vmatpush3.bf16.msra.mxu1 %v6669_v17  ;;  %v905_v49 = vmul.f32 0.0078125, %v899_v46 }
 0x5e6   : > { %6218 = vmatprep.subr.bf16.mxu1 %v6670_v51  ;;  %v901_v43 = vpop.xlane.xlu1 %900 }
 0x5e7   : > { %v8467_v22 = vsub.f32 %v8400_v37, %v905_v49 }
 0x5e9   : > { %6219 = vmatpush3.bf16.msra.mxu1 %v6670_v51  ;;  %v906_v51 = vmul.f32 0.0078125, %v901_v43 }
 0x5ea   : > { %6220 = vmatprep.subr.bf16.mxu1 %v6671_v59  ;;  %v903_v39 = vpop.xlane.xlu1 %902 }
 0x5eb   : > { %v907_v63 = vmul.f32 0.0078125, %v903_v39  ;;  %v8501_v49 = vsub.f32 %v8410_v53, %v906_v51 }
 0x5ed   : > { %6221 = vmatpush3.bf16.msra.mxu1 %v6671_v59  ;;  %v8496_v41 = vsub.f32 %v8414_v58, %v907_v63 }
 0x5ee   : > { %6222 = vmatprep.subr.bf16.mxu1 %v6672_v21 }
 0x5ef   : > { %v915_v32 = vmul.f32 %v8496_v41, %v8496_v41 }
 0x5f1   : > { %6223 = vmatpush3.bf16.msra.mxu1 %v6672_v21 }
 0x5f2   : > { %6224 = vmatprep.subr.bf16.mxu1 %v6673_v15 }
 0x5f5   : > { %6225 = vmatpush3.bf16.msra.mxu1 %v6673_v15 }
 0x5f8   : > { %6227 = vmatmul.mubr.bf16.vlgmr.msra.gmra.mxu1 %v7941_v55  ;;  %v913_v55 = vmul.f32 %v8467_v22, %v8467_v22 }
 0x5f9   : > { %6230 = vmatprep.mubr.bf16.mxu1 %v7945_v61  ;;  %v8473_v61 = vpop.f32.mrf.mxu1 }
 0x600   : > { %6231 = vmatmul.mubr.bf16.gmra.mxu1 %v7950_v0  ;;  %v8475_v0 = vpop.f32.mrf.mxu1 }
 0x602   : > { %v8477_v56 = vpop.f32.mrf.mxu1 }
 0x604   : > { %v897_v25 = vpop.xlane.xlu0 %896  ;;  %v8479_v3 = vpop.f32.mrf.mxu1 }
 0x605   : > { %v904_v23 = vmul.f32 0.0078125, %v897_v25 }
 0x607   : > { %v8464_v35 = vsub.f32 %v8406_v47, %v904_v23  ;;  %v8481_v47 = vpop.f32.mrf.mxu1 }
 0x609   : > { %v912_v10 = vmul.f32 %v8464_v35, %v8464_v35  ;;  %v8483_v37 = vpop.f32.mrf.mxu1 }
 0x60b   : > { %916 = vadd.xlane.f32.xlu1 %v912_v10  ;;  %v8485_v19 = vpop.f32.mrf.mxu1 }
 0x60d   : > { %v8487_v14 = vpop.f32.mrf.mxu1 }
 0x60f   : > { %918 = vadd.xlane.f32.xlu1 %v913_v55  ;;  %v914_v55 = vmul.f32 %v8501_v49, %v8501_v49 }
 0x652   : > { %v6148_v40 = vpop.f32.mrf.mxu1 }
 0x654   : > { %v2229_v18 = vpop.f32.mrf.mxu1 }
 0x656   : > { %v6149_v31 = vpop.f32.mrf.mxu1 }
 0x657   : > { %v6514_v52 = vpack.i.bf16 %v6149_v31, %v6148_v40  ;;  %v6684_v40 = vld [vmem:[#allocation11 + $0x74] ss:$8 sps:$4 sm:$0xff]  }
 0x658   : > { %v2232_v45 = vpop.f32.mrf.mxu1  ;;  %2908 = vmatprep.subr.bf16.mxu0 %v6684_v40  ;;  %v6694_v40 = vld [vmem:[#allocation11 + $0x30] ss:$8 sps:$4 sm:$0xff]  }
 0x659   : > { %6515 = vrot.lane.b32.xlu0 %v6514_v52, %s7506_s20  ;;  %v6524_v5 = vpack.i.bf16 %v2232_v45, %v2229_v18 }
 0x662   : > { %v6152_v28 = vpop.f32.mrf.mxu1 }
 0x664   : > { %v6164_v44 = vpop.f32.mrf.mxu0  ;;  %v2245_v29 = vpop.f32.mrf.mxu1 }
 0x666   : > { %v2306_v42 = vpop.f32.mrf.mxu0  ;;  %v6153_v38 = vpop.f32.mrf.mxu1 }
 0x668   : > { %v6165_v30 = vpop.f32.mrf.mxu0  ;;  %v2248_v6 = vpop.f32.mrf.mxu1 }
 0x669   : > { %v6519_v60 = vpack.i.bf16 %v6165_v30, %v6164_v44  ;;  %v6544_v53 = vpack.i.bf16 %v2248_v6, %v2245_v29  ;;  %v6549_v44 = vpack.i.bf16 %v6153_v38, %v6152_v28 }
 0x66a   : > { %v2309_v48 = vpop.f32.mrf.mxu0 }
 0x66b   : > { %6520 = vrot.lane.b32.xlu1 %v6519_v60, %s7505_s17  ;;  %v6529_v1 = vpack.i.bf16 %v2309_v48, %v2306_v42 }
 0x66c   : > { %v6168_v18 = vpop.f32.mrf.mxu0 }
 0x66e   : > { %v2322_v31 = vpop.f32.mrf.mxu0 }
 0x66f   : > { %6525 = vrot.lane.b32.xlu1 %v6524_v5, %s7506_s20 }
 0x670   : > { %v6169_v52 = vpop.f32.mrf.mxu0 }
 0x671   : > { %v6559_v33 = vpack.i.bf16 %v6169_v52, %v6168_v18  ;;  %v6699_v18 = vld [vmem:[#allocation11 + $0x24] ss:$8 sps:$4 sm:$0xff]   ;;  %v6702_v52 = vld [vmem:[#allocation11 + $0x14] ss:$8 sps:$4 sm:$0xff]  }
 0x672   : > { %v2325_v42 = vpop.f32.mrf.mxu0 }
 0x673   : > { %6530 = vrot.lane.b32.xlu1 %v6529_v1, %s7505_s17  ;;  %v6554_v2 = vpack.i.bf16 %v2325_v42, %v2322_v31  ;;  %v6697_v31 = vld [vmem:[#allocation11 + $0x20] ss:$8 sps:$4 sm:$0xff]  }
 0x674   : > { %v6703_v42 = vld [vmem:[#allocation11] ss:$8 sps:$4 sm:$0xff]  }
 0x694   : > { %v8517_v45 = vpop.xlane.xlu1 %916 }
 0x698   : > { %v6180_v13 = vpop.f32.mrf.mxu1  ;;  %v8519_v16 = vpop.xlane.xlu1 %918 }
 0x69a   : > { %v2383_v34 = vpop.f32.mrf.mxu1 }
 0x69c   : > { %v6181_v7 = vpop.f32.mrf.mxu1 }
 0x69d   : > { %v6534_v9 = vpack.i.bf16 %v6181_v7, %v6180_v13 }
 0x69e   : > { %v2386_v12 = vpop.f32.mrf.mxu1 }
 0x69f   : > { %v6539_v54 = vpack.i.bf16 %v2386_v12, %v2383_v34  ;;  %6535 = vrot.lane.b32.xlu0 %v6534_v9, %s7504_s26 }
 0x6a1   : > { %6540 = vrot.lane.b32.xlu1 %v6539_v54, %s7504_s26 }
 0x6a4   : > { %v6184_v8 = vpop.f32.mrf.mxu1 }
 0x6a6   : > { %v2399_v20 = vpop.f32.mrf.mxu1 }
 0x6a8   : > { %v6185_v50 = vpop.f32.mrf.mxu1 }
 0x6a9   : > { %v6569_v30 = vpack.i.bf16 %v6185_v50, %v6184_v8 }
 0x6aa   : > { %v2402_v57 = vpop.f32.mrf.mxu1 }
 0x6ab   : > { %v6564_v60 = vpack.i.bf16 %v2402_v57, %v2399_v20 }
 0x6b8   : > { %v6228_v17 = vpop.f32.mrf.mxu1 }
 0x6b9   : > { %v2963_v21 = vmul.f32 0.17677669, %v6228_v17 }
 0x6ba   : > { %v2781_v4 = vpop.f32.mrf.mxu1 }
 0x6bb   : > { %v2961_v25 = vmul.f32 0.17677669, %v2781_v4 }
 0x6bc   : > { %v6229_v59 = vpop.f32.mrf.mxu1 }
 0x6bd   : > { %v2964_v15 = vmul.f32 0.17677669, %v6229_v59  ;;  %v6682_v59 = vld [vmem:[#allocation11 + $0x70] ss:$8 sps:$4 sm:$0xff]  }
 0x6be   : > { %v2784_v46 = vpop.f32.mrf.mxu1  ;;  %922 = vadd.xlane.f32.xlu0 %v915_v32 }
 0x6bf   : > { %v8503_v23 = vpack.c.bf16 %v2964_v15, %v2963_v21  ;;  %v2962_v58 = vmul.f32 0.17677669, %v2784_v46  ;;  %v6687_v21 = vld [vmem:[#allocation11 + $0x64] ss:$8 sps:$4 sm:$0xff]   ;;  %v6690_v15 = vld [vmem:[#allocation11 + $0x54] ss:$8 sps:$4 sm:$0xff]  }
 0x6c0   : > { %v6688_v46 = vld [vmem:[#allocation11 + $0x50] ss:$8 sps:$4 sm:$0xff]  }
 0x6c1   : > { %v8505_v10 = vpack.c.bf16 %v2962_v58, %v2961_v25  ;;  %v6693_v25 = vld [vmem:[#allocation11 + $0x44] ss:$8 sps:$4 sm:$0xff]   ;;  %v6691_v58 = vld [vmem:[#allocation11 + $0x40] ss:$8 sps:$4 sm:$0xff]  }
 0x6c3   : > { %6238 = vmatprep.mubr.msk.bf16.mxu1 %vm1380_vm0, %v8505_v10 }
 0x6c5   : > { %920 = vadd.xlane.f32.xlu1 %v914_v55  ;;  %v6696_v55 = vld [vmem:[#allocation11 + $0x34] ss:$8 sps:$4 sm:$0xff]  }
 0x6cb   : > { %v6516_v24 = vpop.permute.xlu0 %6515 }
 0x6cc   : > { %v6518_v1 = vunpack.i.h.bf16 %v6516_v24  ;;  %v6517_v11 = vunpack.i.l.bf16 %v6516_v24 }
 0x6ce   : > { %v2513_v34 = vsel %vm1380_vm0, %v8477_v56, %v6518_v1  ;;  %v2512_v7 = vsel %vm1380_vm0, %v8473_v61, %v6517_v11 }
 0x6d4   : > { %6545 = vrot.lane.b32.xlu0 %v6544_v53, %s7506_s20  ;;  %v6700_v53 = vld [vmem:[#allocation11 + $0x10] ss:$8 sps:$4 sm:$0xff]  }
 0x6d6   : > { %6550 = vrot.lane.b32.xlu1 %v6549_v44, %s7506_s20  ;;  %v6705_v44 = vld [vmem:[#allocation11 + $0x4] ss:$8 sps:$4 sm:$0xff]  }
 0x6d8   : > { %6560 = vrot.lane.b32.xlu0 %v6559_v33, %s7505_s17  ;;  %v925_v33 = vmul.f32 0.0078125, %v8519_v16 }
 0x6da   : > { %6555 = vrot.lane.b32.xlu1 %v6554_v2, %s7505_s17  ;;  %v924_v2 = vmul.f32 0.0078125, %v8517_v45 }
 0x6dc   : > { %6570 = vrot.lane.b32.xlu0 %v6569_v30, %s7504_s26  ;;  %v929_v30 = vadd.f32 1e-05, %v925_v33 }
 0x6dd   : > { %v6521_v5 = vpop.permute.xlu1 %6520 }
 0x6de   : > { %6565 = vrot.lane.b32.xlu1 %v6564_v60, %s7504_s26  ;;  %v6523_v28 = vunpack.i.h.bf16 %v6521_v5  ;;  %v6522_v29 = vunpack.i.l.bf16 %v6521_v5  ;;  %v928_v5 = vadd.f32 1e-05, %v924_v2  ;;  %6938 = vrsqrt.f32 %v929_v30 }
 0x6e0   : > { %v2521_v54 = vsel %vm1737_vm1, %v2513_v34, %v6523_v28  ;;  %v2520_v8 = vsel %vm1737_vm1, %v2512_v7, %v6522_v29  ;;  %6940 = vrsqrt.f32 %v928_v5 }
 0x6e1   : > { %v6526_v48 = vpop.permute.xlu1 %6525 }
 0x6e2   : > { %v6528_v36 = vunpack.i.h.bf16 %v6526_v48  ;;  %v6527_v38 = vunpack.i.l.bf16 %v6526_v48 }
 0x6e4   : > { %v2511_v20 = vsel %vm1380_vm0, %v8479_v3, %v6528_v36  ;;  %v2510_v39 = vsel %vm1380_vm0, %v8475_v0, %v6527_v38  ;;  %v6685_v0 = vld [vmem:[#allocation11 + $0x60] ss:$8 sps:$4 sm:$0xff]  }
 0x6e5   : > { %v6531_v27 = vpop.permute.xlu1 %6530 }
 0x6e6   : > { %v6533_v26 = vunpack.i.h.bf16 %v6531_v27  ;;  %v6532_v6 = vunpack.i.l.bf16 %v6531_v27 }
 0x6e8   : > { %v2518_v61 = vsel %vm1737_vm1, %v2510_v39, %v6532_v6  ;;  %v2519_v17 = vsel %vm1737_vm1, %v2511_v20, %v6533_v26 }
 0x6eb   : > { %v6939_v34 = vpop.eup %6938 }
 0x711   : > { %v6536_v13 = vpop.permute.xlu0 %6535 }
 0x712   : > { %v6538_v9 = vunpack.i.h.bf16 %v6536_v13  ;;  %v6537_v12 = vunpack.i.l.bf16 %v6536_v13 }
 0x713   : > { %v6541_v43 = vpop.permute.xlu1 %6540 }
 0x714   : > { %v6543_v63 = vunpack.i.h.bf16 %v6541_v43  ;;  %v6542_v50 = vunpack.i.l.bf16 %v6541_v43  ;;  %v2529_v56 = vsel %vm2526_vm2, %v2520_v8, %v6537_v12  ;;  %v2530_v57 = vsel %vm2526_vm2, %v2521_v54, %v6538_v9 }
 0x715   : > { %v2536_v3 = vpack.c.bf16 %v2530_v57, %v2529_v56  ;;  %v6941_v56 = vpop.eup %6940 }
 0x716   : > { %v2527_v4 = vsel %vm2526_vm2, %v2518_v61, %v6542_v50  ;;  %v2528_v32 = vsel %vm2526_vm2, %v2519_v17, %v6543_v63 }
 0x717   : > { %v2535_v51 = vpack.c.bf16 %v2528_v32, %v2527_v4 }
 0x719   : > { %6202 = vmatprep.mubr.bf16.mxu0 %v2535_v51 }
 0x71a   : > { %6203 = vmatmul.mubr.bf16.vlgmr.msra.gmra.mxu0 %v2536_v3 }
 0x71b   : > { %2909 = vmatpush1.bf16.msra.mxu0 %v6682_v59 }
 0x71c   : > { %2910 = vmatprep.subr.bf16.mxu0 %v6687_v21  ;;  %v936_v21 = vmul.f32 %v6941_v56, %v8464_v35  ;;  %v5588_v35 = vld [vmem:[%s9440_s5] ss:$0 sm:$0xff] }
 0x71f   : > { %2911 = vmatpush1.bf16.msra.mxu0 %v6685_v0 }
 0x720   : > { %2912 = vmatprep.subr.bf16.mxu0 %v6690_v15 }
 0x723   : > { %2913 = vmatpush1.bf16.msra.mxu0 %v6688_v46 }
 0x724   : > { %2914 = vmatprep.subr.bf16.mxu0 %v6693_v25 }
 0x727   : > { %2915 = vmatpush1.bf16.msra.mxu0 %v6691_v58 }
 0x728   : > { %2916 = vmatprep.subr.bf16.mxu0 %v6696_v55 }
 0x72b   : > { %2917 = vmatpush1.bf16.msra.mxu0 %v6694_v40 }
 0x72c   : > { %2918 = vmatprep.subr.bf16.mxu0 %v6699_v18 }
 0x72f   : > { %2919 = vmatpush1.bf16.msra.mxu0 %v6697_v31 }
 0x730   : > { %2920 = vmatprep.subr.bf16.mxu0 %v6702_v52 }
 0x733   : > { %2921 = vmatpush1.bf16.msra.mxu0 %v6700_v53 }
 0x734   : > { %2922 = vmatprep.subr.bf16.mxu0 %v6705_v44 }
 0x737   : > { %2923 = vmatpush1.bf16.msra.mxu0 %v6703_v42 }
 0x747   : > { %v923_v60 = vpop.xlane.xlu0 %922 }
 0x748   : > { %v927_v24 = vmul.f32 0.0078125, %v923_v60 }
 0x74a   : > { %v931_v28 = vadd.f32 1e-05, %v927_v24 }
 0x74b   : > { %v6546_v48 = vpop.permute.xlu0 %6545 }
 0x74c   : > { %v6548_v7 = vunpack.i.h.bf16 %v6546_v48  ;;  %v6547_v9 = vunpack.i.l.bf16 %v6546_v48 }
 0x74e   : > { %v921_v1 = vpop.xlane.xlu1 %920  ;;  %v2514_v61 = vsel %vm1380_vm0, %v8483_v37, %v6547_v9  ;;  %v5587_v37 = vld [vmem:[%s9439_s4] ss:$0 sm:$0xff] }
 0x74f   : > { %v926_v11 = vmul.f32 0.0078125, %v921_v1  ;;  %v6561_v27 = vpop.permute.xlu0 %6560  ;;  %v946_v58 = vmul.f32 %v5587_v37, %v936_v21 }
 0x750   : > { %v6563_v12 = vunpack.i.h.bf16 %v6561_v27  ;;  %v6562_v54 = vunpack.i.l.bf16 %v6561_v27 }
 0x751   : > { %v930_v29 = vadd.f32 1e-05, %v926_v11  ;;  %v956_v31 = vadd.f32 %v5588_v35, %v946_v58 }
 0x752   : > { %v6551_v36 = vpop.permute.xlu1 %6550 }
 0x753   : > { %6942 = vrsqrt.f32 %v930_v29  ;;  %v6553_v38 = vunpack.i.h.bf16 %v6551_v36  ;;  %v6552_v26 = vunpack.i.l.bf16 %v6551_v36  ;;  %v6571_v16 = vpop.permute.xlu0 %6570 }
 0x754   : > { %6944 = vrsqrt.f32 %v931_v28  ;;  %v6573_v8 = vunpack.i.h.bf16 %v6571_v16  ;;  %v6572_v43 = vunpack.i.l.bf16 %v6571_v16 }
 0x755   : > { %v2517_v45 = vsel %vm1380_vm0, %v8485_v19, %v6553_v38  ;;  %v2516_v6 = vsel %vm1380_vm0, %v8481_v47, %v6552_v26  ;;  %v937_v19 = vmul.f32 %v6939_v34, %v8467_v22  ;;  %v2515_v47 = vsel %vm1380_vm0, %v8487_v14, %v6548_v7  ;;  %v6232_v38 = vpop.f32.mrf.mxu1 }
 0x756   : > { %v6556_v13 = vpop.permute.xlu1 %6555  ;;  %v2524_v63 = vsel %vm1737_vm1, %v2516_v6, %v6562_v54  ;;  %v2525_v50 = vsel %vm1737_vm1, %v2517_v45, %v6563_v12 }
 0x757   : > { %v6558_v20 = vunpack.i.h.bf16 %v6556_v13  ;;  %v6557_v39 = vunpack.i.l.bf16 %v6556_v13  ;;  %v2533_v59 = vsel %vm2526_vm2, %v2524_v63, %v6572_v43  ;;  %v2534_v3 = vsel %vm2526_vm2, %v2525_v50, %v6573_v8  ;;  %v2797_v45 = vpop.f32.mrf.mxu1 }
 0x758   : > { %v2538_v15 = vpack.c.bf16 %v2534_v3, %v2533_v59  ;;  %v947_v46 = vmul.f32 %v5587_v37, %v937_v19  ;;  %v2965_v8 = vmul.f32 0.17677669, %v2797_v45  ;;  %v2967_v63 = vmul.f32 0.17677669, %v6232_v38 }
 0x759   : > { %v2522_v32 = vsel %vm1737_vm1, %v2514_v61, %v6557_v39  ;;  %v2523_v51 = vsel %vm1737_vm1, %v2515_v47, %v6558_v20  ;;  %v6233_v7 = vpop.f32.mrf.mxu1 }
 0x75a   : > { %v6566_v57 = vpop.permute.xlu1 %6565  ;;  %v957_v40 = vadd.f32 %v5588_v35, %v947_v46  ;;  %v2968_v20 = vmul.f32 0.17677669, %v6233_v7 }
 0x75b   : > { %v6568_v17 = vunpack.i.h.bf16 %v6566_v57  ;;  %v6567_v4 = vunpack.i.l.bf16 %v6566_v57  ;;  %v2800_v12 = vpop.f32.mrf.mxu1 }
 0x75c   : > { %v964_v53 = vpack.c.bf16 %v957_v40, %v956_v31  ;;  %v2966_v54 = vmul.f32 0.17677669, %v2800_v12  ;;  %v2972_v50 = vpack.c.bf16 %v2968_v20, %v2967_v63 }
 0x75d   : > { %v2531_v22 = vsel %vm2526_vm2, %v2522_v32, %v6567_v4  ;;  %v2532_v0 = vsel %vm2526_vm2, %v2523_v51, %v6568_v17 }
 0x75e   : > { %v2537_v14 = vpack.c.bf16 %v2532_v0, %v2531_v22  ;;  %v2971_v39 = vpack.c.bf16 %v2966_v54, %v2965_v8 }
 0x760   : > { %v6943_v25 = vpop.eup %6942  ;;  %6206 = vmatprep.mubr.bf16.mxu0 %v2537_v14 }
 0x761   : > { %6207 = vmatmul.mubr.bf16.gmra.mxu0 %v2538_v15  ;;  %v6945_v55 = vpop.eup %6944  ;;  %v938_v18 = vmul.f32 %v6943_v25, %v8501_v49 }
 0x762   : > { %2940 = vmatprep.mubr.bf16.mxu0 %v7503_v62  ;;  %v939_v52 = vmul.f32 %v6945_v55, %v8496_v41 }
 0x763   : > { %v948_v44 = vmul.f32 %v5587_v37, %v938_v18 }
 0x764   : > { %v949_v42 = vmul.f32 %v5587_v37, %v939_v52 }
 0x765   : > { %v958_v33 = vadd.f32 %v5588_v35, %v948_v44 }
 0x766   : > { %v959_v2 = vadd.f32 %v5588_v35, %v949_v42 }
 0x768   : > { %v965_v30 = vpack.c.bf16 %v959_v2, %v958_v33 }
 0x769   : > { %2941 = vmatmul.mubr.bf16.vlgmr.msra.gmra.mxu0 %v964_v53 }
 0x76a   : > { %2950 = vmatprep.mubr.bf16.mxu0 %v7503_v62 }
 0x771   : > { %2951 = vmatmul.mubr.bf16.gmra.mxu0 %v965_v30 }
 0x7da   : > { %v8567_v60 = vpop.f32.mrf.mxu0 }
 0x7dc   : > { %v8569_v5 = vpop.f32.mrf.mxu0 }
 0x7de   : > { %v8571_v48 = vpop.f32.mrf.mxu0 }
 0x7e0   : > { %v8573_v49 = vpop.f32.mrf.mxu0 }
 0x821   : > { %v8575_v24 = vpop.f32.mrf.mxu0 }
 0x823   : > { %v8577_v41 = vpop.f32.mrf.mxu0 }
 0x825   : > { %v8579_v1 = vpop.f32.mrf.mxu0 }
 0x827   : > { %v8581_v11 = vpop.f32.mrf.mxu0 }
 0x829   : > { %v2942_v27 = vpop.f32.mrf.mxu0 }
 0x82b   : > { %v2944_v28 = vpop.f32.mrf.mxu0 }
 0x82d   : > { %v2946_v29 = vpop.f32.mrf.mxu0 }
 0x82e   : > { %v3001_v36 = vpack.c.bf16 %v2946_v29, %v2942_v27 }
 0x82f   : > { %v2948_v26 = vpop.f32.mrf.mxu0 }
 0x830   : > { %3005 = vrot.lane.b32.xlu0 %v3001_v36, %s7504_s26  ;;  %v3052_v43 = vsel %vm1380_vm0, %v3001_v36, 0 }
 0x831   : > { %v2952_v16 = vpop.f32.mrf.mxu0 }
 0x833   : > { %v2954_v6 = vpop.f32.mrf.mxu0 }
 0x835   : > { %v2956_v13 = vpop.f32.mrf.mxu0 }
 0x836   : > { %v3002_v34 = vpack.c.bf16 %v2956_v13, %v2952_v16 }
 0x837   : > { %v2958_v56 = vpop.f32.mrf.mxu0 }
 0x838   : > { %3011 = vrot.lane.b32.xlu0 %v3002_v34, %s7505_s17  ;;  %3007 = vrot.lane.b32.xlu1 %v3002_v34, %s7504_s26  ;;  %v3055_v9 = vsel %vm1380_vm0, %v3002_v34, 0  ;;  %v8614_v19 = vpack.c.bf16 %v2958_v56, %v2954_v6 }
 0x839   : > { %6370 = vmatprep.subr.msk.bf16.mxu1 %vm1380_vm0, %v3002_v34 }
 0x83a   : > { %6235 = vmatpush3.bf16.xpose.msra.mxu1 %v3055_v9 }
 0x83b   : > { %6371 = vmatprep.subr.msk.bf16.mxu1 %vm1380_vm0, %v3001_v36 }
 0x83c   : > { %3015 = vrot.lane.b32.xlu0 %v3002_v34, %s7506_s20  ;;  %2977 = vrot.lane.b32.xlu1 %v8505_v10, %s7504_s26 }
 0x840   : > { %3009 = vrot.lane.b32.xlu0 %v3001_v36, %s7505_s17  ;;  %2979 = vrot.lane.b32.xlu1 %v8503_v23, %s7504_s26 }
 0x842   : > { %6237 = vmatpush3.bf16.xpose.msra.mxu1 %v3052_v43 }
 0x844   : > { %3013 = vrot.lane.b32.xlu0 %v3001_v36, %s7506_s20  ;;  %2981 = vrot.lane.b32.xlu1 %v2971_v39, %s7504_s26 }
 0x848   : > { %2987 = vrot.lane.b32.xlu0 %v8503_v23, %s7505_s17  ;;  %2983 = vrot.lane.b32.xlu1 %v2972_v50, %s7504_s26 }
 0x849   : > { %6239 = vmatmul.mubr.msk.bf16.vlgmr.msra.gmra.mxu1 %vm1380_vm0, %v8503_v23 }
 0x84a   : > { %6242 = vmatprep.mubr.msk.bf16.mxu1 %vm1380_vm0, %v2971_v39 }
 0x84c   : > { %2995 = vrot.lane.b32.xlu0 %v8503_v23, %s7506_s20  ;;  %2985 = vrot.lane.b32.xlu1 %v8505_v10, %s7505_s17  ;;  %v8619_v23 = vpack.c.bf16 %v2948_v26, %v2944_v28 }
 0x850   : > { %2991 = vrot.lane.b32.xlu0 %v2972_v50, %s7505_s17  ;;  %2993 = vrot.lane.b32.xlu1 %v8505_v10, %s7506_s20 }
 0x851   : > { %6243 = vmatmul.mubr.msk.bf16.gmra.mxu1 %vm1380_vm0, %v2972_v50 }
 0x854   : > { %2999 = vrot.lane.b32.xlu0 %v2972_v50, %s7506_s20  ;;  %2989 = vrot.lane.b32.xlu1 %v2971_v39, %s7505_s17 }
 0x858   : > { %2997 = vrot.lane.b32.xlu1 %v2971_v39, %s7506_s20  ;;  %3023 = vrot.lane.b32.xlu0 %v8614_v19, %s7504_s26 }
 0x85c   : > { %3021 = vrot.lane.b32.xlu1 %v8619_v23, %s7504_s26 }
 0x8a2   : > { %v3006_v10 = vpop.permute.xlu0 %3005 }
 0x8a3   : > { %v3135_v3 = vsel %vm1380_vm0, %v3006_v10, 0 }
 0x8aa   : > { %v3012_v57 = vpop.permute.xlu0 %3011  ;;  %v3008_v47 = vpop.permute.xlu1 %3007 }
 0x8ab   : > { %6372 = vmatprep.subr.msk.bf16.mxu1 %vm1380_vm0, %v3008_v47  ;;  %6374 = vmatprep.subr.msk.bf16.mxu0 %vm1380_vm0, %v3012_v57  ;;  %v3138_v61 = vsel %vm1380_vm0, %v3008_v47, 0  ;;  %v3221_v17 = vsel %vm1380_vm0, %v3012_v57, 0 }
 0x8ac   : > { %6247 = vmatpush3.bf16.xpose.msra.mxu1 %v3138_v61  ;;  %6259 = vmatpush3.bf16.xpose.msra.mxu0 %v3221_v17 }
 0x8ad   : > { %6373 = vmatprep.subr.msk.bf16.mxu1 %vm1380_vm0, %v3006_v10 }
 0x8ae   : > { %v3016_v4 = vpop.permute.xlu0 %3015  ;;  %v2978_v32 = vpop.permute.xlu1 %2977 }
 0x8af   : > { %6250 = vmatprep.mubr.msk.bf16.mxu1 %vm1380_vm0, %v2978_v32  ;;  %v3304_v15 = vsel %vm1380_vm0, %v3016_v4, 0 }
 0x8b2   : > { %v3010_v51 = vpop.permute.xlu0 %3009  ;;  %v2980_v59 = vpop.permute.xlu1 %2979 }
 0x8b3   : > { %6375 = vmatprep.subr.msk.bf16.mxu0 %vm1380_vm0, %v3010_v51  ;;  %v3218_v21 = vsel %vm1380_vm0, %v3010_v51, 0 }
 0x8b4   : > { %6249 = vmatpush3.bf16.xpose.msra.mxu1 %v3135_v3  ;;  %6261 = vmatpush3.bf16.xpose.msra.mxu0 %v3218_v21 }
 0x8b5   : > { %6376 = vmatprep.subr.msk.bf16.mxu1 %vm1380_vm0, %v3016_v4  ;;  %6282 = vmatprep.subr.bf16.mxu0 %v8614_v19 }
 0x8b6   : > { %v3014_v22 = vpop.permute.xlu0 %3013  ;;  %v2982_v0 = vpop.permute.xlu1 %2981 }
 0x8b7   : > { %v3301_v35 = vsel %vm1380_vm0, %v3014_v22, 0 }
 0x8ba   : > { %v2988_v14 = vpop.permute.xlu0 %2987  ;;  %v2984_v37 = vpop.permute.xlu1 %2983 }
 0x8bb   : > { %6251 = vmatmul.mubr.msk.bf16.vlgmr.msra.gmra.mxu1 %vm1380_vm0, %v2980_v59 }
 0x8bc   : > { %6254 = vmatprep.mubr.msk.bf16.mxu1 %vm1380_vm0, %v2982_v0  ;;  %6271 = vmatpush3.bf16.xpose.msra.mxu1 %v3304_v15 }
 0x8bd   : > { %6377 = vmatprep.subr.msk.bf16.mxu1 %vm1380_vm0, %v3014_v22 }
 0x8be   : > { %v2996_v46 = vpop.permute.xlu0 %2995  ;;  %v2986_v25 = vpop.permute.xlu1 %2985 }
 0x8bf   : > { %6262 = vmatprep.mubr.msk.bf16.mxu0 %vm1380_vm0, %v2986_v25 }
 0x8c0   : > { %6263 = vmatmul.mubr.msk.bf16.vlgmr.msra.gmra.mxu0 %vm1380_vm0, %v2988_v14 }
 0x8c1   : > { %6283 = vmatpush3.bf16.msra.mxu0 %v8614_v19 }
 0x8c2   : > { %6284 = vmatprep.subr.bf16.mxu0 %v8619_v23  ;;  %v2992_v58 = vpop.permute.xlu0 %2991  ;;  %v2994_v55 = vpop.permute.xlu1 %2993 }
 0x8c3   : > { %6255 = vmatmul.mubr.msk.bf16.gmra.mxu1 %vm1380_vm0, %v2984_v37 }
 0x8c4   : > { %6273 = vmatpush3.bf16.xpose.msra.mxu1 %v3301_v35  ;;  %6274 = vmatprep.mubr.msk.bf16.mxu1 %vm1380_vm0, %v2994_v55 }
 0x8c5   : > { %6285 = vmatpush3.bf16.msra.mxu0 %v8619_v23 }
 0x8c6   : > { %v3000_v40 = vpop.permute.xlu0 %2999  ;;  %v2990_v18 = vpop.permute.xlu1 %2989 }
 0x8c7   : > { %6266 = vmatprep.mubr.msk.bf16.mxu0 %vm1380_vm0, %v2990_v18 }
 0x8c8   : > { %6267 = vmatmul.mubr.msk.bf16.gmra.mxu0 %vm1380_vm0, %v2992_v58 }
 0x8ca   : > { %v2998_v31 = vpop.permute.xlu1 %2997  ;;  %v3024_v52 = vpop.permute.xlu0 %3023 }
 0x8cb   : > { %6275 = vmatmul.mubr.msk.bf16.vlgmr.msra.gmra.mxu1 %vm1380_vm0, %v2996_v46  ;;  %6294 = vmatprep.subr.bf16.mxu1 %v3024_v52 }
 0x8cc   : > { %6278 = vmatprep.mubr.msk.bf16.mxu1 %vm1380_vm0, %v2998_v31  ;;  %6295 = vmatpush3.bf16.msra.mxu1 %v3024_v52 }
 0x8ce   : > { %v3022_v53 = vpop.permute.xlu1 %3021 }
 0x8cf   : > { %6296 = vmatprep.subr.bf16.mxu1 %v3022_v53 }
 0x8d0   : > { %6297 = vmatpush3.bf16.msra.mxu1 %v3022_v53 }
 0x8d3   : > { %6279 = vmatmul.mubr.msk.bf16.gmra.mxu1 %vm1380_vm0, %v3000_v40 }
 0x909   : > { %v8651_v44 = vpop.f32.mrf.mxu1 }
 0x90a   : > { %v3377_v42 = vsel %vm1380_vm0, %v8651_v44, -inf }
 0x90b   : > { %v8655_v33 = vpop.f32.mrf.mxu1  ;;  %3378 = vmax.xlane.f32.xlu0 %v3377_v42 }
 0x90c   : > { %v3371_v2 = vsel %vm1380_vm0, %v8655_v33, -inf }
 0x90d   : > { %3372 = vmax.xlane.f32.xlu1 %v3371_v2  ;;  %v8659_v30 = vpop.f32.mrf.mxu1 }
 0x90e   : > { %v3380_v28 = vsel %vm1380_vm0, %v8659_v30, -inf }
 0x90f   : > { %v8661_v27 = vpop.f32.mrf.mxu1 }
 0x910   : > { %v3374_v29 = vsel %vm1380_vm0, %v8661_v27, -inf }
 0x911   : > { %3381 = vmax.xlane.f32.xlu1 %v3380_v28  ;;  %v8667_v36 = vpop.f32.mrf.mxu1  ;;  %3375 = vmax.xlane.f32.xlu0 %v3374_v29 }
 0x912   : > { %v3389_v26 = vsel %vm1380_vm0, %v8667_v36, -inf }
 0x913   : > { %v8669_v38 = vpop.f32.mrf.mxu1 }
 0x914   : > { %v3383_v13 = vsel %vm1380_vm0, %v8669_v38, -inf }
 0x915   : > { %v8673_v16 = vpop.f32.mrf.mxu1  ;;  %3390 = vmax.xlane.f32.xlu0 %v3389_v26 }
 0x916   : > { %v3392_v45 = vsel %vm1380_vm0, %v8673_v16, -inf }
 0x917   : > { %3393 = vmax.xlane.f32.xlu1 %v3392_v45  ;;  %v8677_v6 = vpop.f32.mrf.mxu1 }
 0x918   : > { %v3386_v34 = vsel %vm1380_vm0, %v8677_v6, -inf }
 0x919   : > { %3384 = vmax.xlane.f32.xlu0 %v3383_v13 }
 0x91b   : > { %3387 = vmax.xlane.f32.xlu1 %v3386_v34 }
 0x97b   : > { %v8683_v7 = vpop.f32.mrf.mxu1 }
 0x97c   : > { %v3401_v9 = vsel %vm1380_vm0, %v8683_v7, -inf }
 0x97d   : > { %v8687_v12 = vpop.f32.mrf.mxu1  ;;  %3402 = vmax.xlane.f32.xlu0 %v3401_v9 }
 0x97e   : > { %v3395_v57 = vsel %vm1380_vm0, %v8687_v12, -inf }
 0x97f   : > { %v8689_v54 = vpop.f32.mrf.mxu1 }
 0x980   : > { %v8691_v8 = vpop.f32.mrf.mxu0  ;;  %v3404_v43 = vsel %vm1380_vm0, %v8689_v54, -inf }
 0x981   : > { %3405 = vmax.xlane.f32.xlu1 %v3404_v43  ;;  %v8695_v20 = vpop.f32.mrf.mxu1  ;;  %v3425_v39 = vsel %vm1380_vm0, %v8691_v8, -inf }
 0x982   : > { %v8699_v63 = vpop.f32.mrf.mxu0  ;;  %3426 = vmax.xlane.f32.xlu0 %v3425_v39  ;;  %v3398_v17 = vsel %vm1380_vm0, %v8695_v20, -inf }
 0x983   : > { %v8701_v50 = vpop.f32.mrf.mxu1  ;;  %v3419_v4 = vsel %vm1380_vm0, %v8699_v63, -inf }
 0x984   : > { %v8703_v56 = vpop.f32.mrf.mxu0  ;;  %v3413_v3 = vsel %vm1380_vm0, %v8701_v50, -inf }
 0x985   : > { %v3428_v10 = vsel %vm1380_vm0, %v8703_v56, -inf  ;;  %v8709_v47 = vpop.f32.mrf.mxu1 }
 0x986   : > { %3429 = vmax.xlane.f32.xlu1 %v3428_v10  ;;  %v8711_v61 = vpop.f32.mrf.mxu0  ;;  %3396 = vmax.xlane.f32.xlu0 %v3395_v57  ;;  %v3407_v25 = vsel %vm1380_vm0, %v8709_v47, -inf }
 0x987   : > { %v8717_v32 = vpop.f32.mrf.mxu1  ;;  %v3422_v59 = vsel %vm1380_vm0, %v8711_v61, -inf }
 0x988   : > { %v8719_v51 = vpop.f32.mrf.mxu0  ;;  %v3416_v0 = vsel %vm1380_vm0, %v8717_v32, -inf }
 0x989   : > { %v8725_v21 = vpop.f32.mrf.mxu1  ;;  %v3437_v14 = vsel %vm1380_vm0, %v8719_v51, -inf }
 0x98a   : > { %3399 = vmax.xlane.f32.xlu1 %v3398_v17  ;;  %3420 = vmax.xlane.f32.xlu0 %v3419_v4  ;;  %v8727_v22 = vpop.f32.mrf.mxu0  ;;  %v3410_v55 = vsel %vm1380_vm0, %v8725_v21, -inf }
 0x98b   : > { %v8733_v37 = vpop.f32.mrf.mxu1  ;;  %v3431_v35 = vsel %vm1380_vm0, %v8727_v22, -inf }
 0x98c   : > { %v8735_v15 = vpop.f32.mrf.mxu0  ;;  %v3449_v52 = vsel %vm1380_vm0, %v8733_v37, -inf }
 0x98d   : > { %v3440_v46 = vsel %vm1380_vm0, %v8735_v15, -inf  ;;  %v8741_v58 = vpop.f32.mrf.mxu1 }
 0x98e   : > { %3423 = vmax.xlane.f32.xlu1 %v3422_v59  ;;  %3414 = vmax.xlane.f32.xlu0 %v3413_v3  ;;  %v8747_v40 = vpop.f32.mrf.mxu0  ;;  %v3443_v2 = vsel %vm1380_vm0, %v8741_v58, -inf }
 0x98f   : > { %v8749_v18 = vpop.f32.mrf.mxu1  ;;  %v3434_v31 = vsel %vm1380_vm0, %v8747_v40, -inf }
 0x990   : > { %v3452_v42 = vsel %vm1380_vm0, %v8749_v18, -inf }
 0x991   : > { %v8755_v53 = vpop.f32.mrf.mxu1 }
 0x992   : > { %3417 = vmax.xlane.f32.xlu1 %v3416_v0  ;;  %3438 = vmax.xlane.f32.xlu0 %v3437_v14  ;;  %v3446_v29 = vsel %vm1380_vm0, %v8755_v53, -inf }
 0x993   : > { %v8761_v28 = vpop.f32.mrf.mxu1 }
 0x994   : > { %v3461_v26 = vsel %vm1380_vm0, %v8761_v28, -inf  ;;  %v3379_v34 = vpop.xlane.xlu0 %3378 }
 0x995   : > { %v8767_v45 = vpop.f32.mrf.mxu1  ;;  %v3469_v39 = vsub.f32 %v8651_v44, %v3379_v34 }
 0x996   : > { %3441 = vmax.xlane.f32.xlu1 %v3440_v46  ;;  %3408 = vmax.xlane.f32.xlu0 %v3407_v25  ;;  %v3455_v13 = vsel %vm1380_vm0, %v8767_v45, -inf  ;;  %v3373_v9 = vpop.xlane.xlu1 %3372 }
 0x997   : > { %v3467_v57 = vsub.f32 %v8655_v33, %v3373_v9  ;;  %v3503_v4 = vmul.f32 1.442695, %v3469_v39 }
 0x999   : > { %v3499_v3 = vmul.f32 1.442695, %v3467_v57  ;;  %6946 = vpow2.f32 %v3503_v4 }
 0x99a   : > { %3411 = vmax.xlane.f32.xlu1 %v3410_v55  ;;  %3432 = vmax.xlane.f32.xlu0 %v3431_v35  ;;  %v3376_v43 = vpop.xlane.xlu0 %3375  ;;  %v3382_v10 = vpop.xlane.xlu1 %3381 }
 0x99b   : > { %v3470_v59 = vsub.f32 %v8659_v30, %v3382_v10  ;;  %v3468_v0 = vsub.f32 %v8661_v27, %v3376_v43  ;;  %6948 = vpow2.f32 %v3499_v3 }
 0x99d   : > { %v3505_v46 = vmul.f32 1.442695, %v3470_v59  ;;  %v3501_v55 = vmul.f32 1.442695, %v3468_v0 }
 0x99e   : > { %3435 = vmax.xlane.f32.xlu1 %v3434_v31  ;;  %3450 = vmax.xlane.f32.xlu0 %v3449_v52  ;;  %v3391_v17 = vpop.xlane.xlu0 %3390 }
 0x99f   : > { %v3473_v25 = vsub.f32 %v8667_v36, %v3391_v17  ;;  %6950 = vpow2.f32 %v3505_v46 }
 0x9a0   : > { %v3394_v14 = vpop.xlane.xlu1 %3393  ;;  %6952 = vpow2.f32 %v3501_v55 }
 0x9a1   : > { %v3474_v44 = vsub.f32 %v8673_v16, %v3394_v14  ;;  %v3511_v35 = vmul.f32 1.442695, %v3473_v25 }
 0x9a2   : > { %3453 = vmax.xlane.f32.xlu1 %v3452_v42  ;;  %3444 = vmax.xlane.f32.xlu0 %v3443_v2  ;;  %v8783_v42 = vpop.f32.mrf.mxu1 }
 0x9a3   : > { %v3513_v30 = vmul.f32 1.442695, %v3474_v44  ;;  %6954 = vpow2.f32 %v3511_v35  ;;  %v3464_v2 = vsel %vm1380_vm0, %v8783_v42, -inf }
 0x9a4   : > { %v3388_v31 = vpop.xlane.xlu1 %3387 }
 0x9a5   : > { %v3472_v27 = vsub.f32 %v8677_v6, %v3388_v31  ;;  %6956 = vpow2.f32 %v3513_v30 }
 0x9a6   : > { %3447 = vmax.xlane.f32.xlu1 %v3446_v29  ;;  %3462 = vmax.xlane.f32.xlu0 %v3461_v26  ;;  %v8787_v16 = vpop.eup %6946  ;;  %v8789_v29 = vpop.f32.mrf.mxu1 }
 0x9a7   : > { %v3509_v36 = vmul.f32 1.442695, %v3472_v27  ;;  %v3458_v26 = vsel %vm1380_vm0, %v8789_v29, -inf  ;;  %v3569_v6 = vsel %vm1380_vm0, %v8787_v16, 0.0 }
 0x9aa   : > { %3456 = vmax.xlane.f32.xlu0 %v3455_v13 }
 0x9b7   : > { %3035 = vrot.lane.b32.xlu1 %v8614_v19, %s7506_s20 }
 0x9c0   : > { %3029 = vrot.lane.b32.xlu0 %v8614_v19, %s7505_s17  ;;  %v3385_v19 = vpop.xlane.xlu0 %3384 }
 0x9c1   : > { %v3471_v33 = vsub.f32 %v8669_v38, %v3385_v19  ;;  %v8791_v38 = vpop.eup %6948 }
 0x9c2   : > { %v8797_v13 = vpop.eup %6950  ;;  %v3563_v43 = vsel %vm1380_vm0, %v8791_v38, 0.0 }
 0x9c3   : > { %v3507_v52 = vmul.f32 1.442695, %v3471_v33  ;;  %v8799_v34 = vpop.eup %6952  ;;  %v3572_v9 = vsel %vm1380_vm0, %v8797_v13, 0.0 }
 0x9c4   : > { %v8805_v39 = vpop.eup %6954  ;;  %v3566_v57 = vsel %vm1380_vm0, %v8799_v34, 0.0 }
 0x9c5   : > { %6958 = vpow2.f32 %v3507_v52  ;;  %v8807_v10 = vpop.eup %6956  ;;  %v3581_v17 = vsel %vm1380_vm0, %v8805_v39, 0.0 }
 0x9c6   : > { %6960 = vpow2.f32 %v3509_v36  ;;  %v3584_v59 = vsel %vm1380_vm0, %v8807_v10, 0.0 }
 0x9d2   : > { %v8813_v4 = vpop.eup %6958 }
 0x9d3   : > { %v3575_v3 = vsel %vm1380_vm0, %v8813_v4, 0.0  ;;  %v8819_v0 = vpop.eup %6960 }
 0x9d4   : > { %v3578_v14 = vsel %vm1380_vm0, %v8819_v0, 0.0 }
 0x9db   : > { %3465 = vmax.xlane.f32.xlu1 %v3464_v2 }
 0x9df   : > { %3459 = vmax.xlane.f32.xlu1 %v3458_v26  ;;  %3570 = vadd.xlane.f32.xlu0 %v3569_v6 }
 0x9e3   : > { %3573 = vadd.xlane.f32.xlu1 %v3572_v9  ;;  %3564 = vadd.xlane.f32.xlu0 %v3563_v43 }
 0x9e7   : > { %3567 = vadd.xlane.f32.xlu1 %v3566_v57  ;;  %3582 = vadd.xlane.f32.xlu0 %v3581_v17 }
 0x9eb   : > { %3585 = vadd.xlane.f32.xlu1 %v3584_v59  ;;  %3576 = vadd.xlane.f32.xlu0 %v3575_v3 }
 0x9ef   : > { %3579 = vadd.xlane.f32.xlu1 %v3578_v14 }
 0xa06   : > { %v3403_v46 = vpop.xlane.xlu0 %3402 }
 0xa07   : > { %v3477_v25 = vsub.f32 %v8683_v7, %v3403_v46 }
 0xa09   : > { %v3519_v19 = vmul.f32 1.442695, %v3477_v25 }
 0xa0a   : > { %v3406_v55 = vpop.xlane.xlu1 %3405 }
 0xa0b   : > { %6962 = vpow2.f32 %v3519_v19  ;;  %v3478_v44 = vsub.f32 %v8689_v54, %v3406_v55  ;;  %v3427_v35 = vpop.xlane.xlu0 %3426 }
 0xa0c   : > { %v3485_v33 = vsub.f32 %v8691_v8, %v3427_v35 }
 0xa0d   : > { %v3521_v31 = vmul.f32 1.442695, %v3478_v44 }
 0xa0e   : > { %v3535_v30 = vmul.f32 1.442695, %v3485_v33 }
 0xa0f   : > { %6964 = vpow2.f32 %v3521_v31  ;;  %v3430_v52 = vpop.xlane.xlu1 %3429  ;;  %v3397_v27 = vpop.xlane.xlu0 %3396 }
 0xa10   : > { %6966 = vpow2.f32 %v3535_v30  ;;  %v3486_v36 = vsub.f32 %v8703_v56, %v3430_v52  ;;  %v3475_v2 = vsub.f32 %v8687_v12, %v3397_v27 }
 0xa12   : > { %v3537_v26 = vmul.f32 1.442695, %v3486_v36  ;;  %v3515_v7 = vmul.f32 1.442695, %v3475_v2 }
 0xa13   : > { %v3400_v6 = vpop.xlane.xlu1 %3399  ;;  %v3421_v9 = vpop.xlane.xlu0 %3420 }
 0xa14   : > { %6968 = vpow2.f32 %v3537_v26  ;;  %v3476_v54 = vsub.f32 %v8695_v20, %v3400_v6  ;;  %v3483_v43 = vsub.f32 %v8699_v63, %v3421_v9 }
 0xa15   : > { %6970 = vpow2.f32 %v3515_v7 }
 0xa16   : > { %v3517_v8 = vmul.f32 1.442695, %v3476_v54  ;;  %v3531_v57 = vmul.f32 1.442695, %v3483_v43 }
 0xa17   : > { %v3424_v17 = vpop.xlane.xlu1 %3423  ;;  %v3415_v59 = vpop.xlane.xlu0 %3414 }
 0xa18   : > { %v8830_v3 = vpop.eup %6962  ;;  %6972 = vpow2.f32 %v3517_v8  ;;  %v3484_v56 = vsub.f32 %v8711_v61, %v3424_v17  ;;  %v3481_v12 = vsub.f32 %v8701_v50, %v3415_v59 }
 0xa19   : > { %6974 = vpow2.f32 %v3531_v57  ;;  %v3593_v14 = vsel %vm1380_vm0, %v8830_v3, 0.0 }
 0xa1a   : > { %v3533_v46 = vmul.f32 1.442695, %v3484_v56  ;;  %v3527_v20 = vmul.f32 1.442695, %v3481_v12  ;;  %3594 = vadd.xlane.f32.xlu0 %v3593_v14 }
 0xa1b   : > { %v3418_v63 = vpop.xlane.xlu1 %3417  ;;  %v3439_v25 = vpop.xlane.xlu0 %3438 }
 0xa1c   : > { %v8836_v19 = vpop.eup %6964  ;;  %6976 = vpow2.f32 %v3533_v46  ;;  %v3489_v55 = vsub.f32 %v8719_v51, %v3439_v25  ;;  %v3482_v2 = vsub.f32 %v8717_v32, %v3418_v63 }
 0xa1d   : > { %v8839_v44 = vpop.eup %6966  ;;  %6978 = vpow2.f32 %v3527_v20  ;;  %v3596_v50 = vsel %vm1380_vm0, %v8836_v19, 0.0 }
 0xa1e   : > { %v3543_v61 = vmul.f32 1.442695, %v3489_v55  ;;  %3597 = vadd.xlane.f32.xlu1 %v3596_v50  ;;  %v3617_v35 = vsel %vm1380_vm0, %v8839_v44, 0.0  ;;  %v3529_v57 = vmul.f32 1.442695, %v3482_v2 }
 0xa1f   : > { %v3442_v33 = vpop.xlane.xlu1 %3441  ;;  %3618 = vadd.xlane.f32.xlu0 %v3617_v35  ;;  %v3409_v31 = vpop.xlane.xlu0 %3408 }
 0xa20   : > { %v3479_v30 = vsub.f32 %v8709_v47, %v3409_v31  ;;  %6980 = vpow2.f32 %v3543_v61  ;;  %v3490_v32 = vsub.f32 %v8735_v15, %v3442_v33 }
 0xa21   : > { %v8846_v52 = vpop.eup %6968 }
 0xa22   : > { %v8848_v51 = vpop.eup %6970  ;;  %v3523_v27 = vmul.f32 1.442695, %v3479_v30  ;;  %v3620_v36 = vsel %vm1380_vm0, %v8846_v52, 0.0  ;;  %v3545_v25 = vmul.f32 1.442695, %v3490_v32 }
 0xa23   : > { %v3412_v26 = vpop.xlane.xlu1 %3411  ;;  %3621 = vadd.xlane.f32.xlu1 %v3620_v36  ;;  %v3587_v7 = vsel %vm1380_vm0, %v8848_v51, 0.0  ;;  %v3433_v6 = vpop.xlane.xlu0 %3432 }
 0xa24   : > { %3588 = vadd.xlane.f32.xlu0 %v3587_v7  ;;  %v3487_v47 = vsub.f32 %v8727_v22, %v3433_v6  ;;  %6982 = vpow2.f32 %v3523_v27  ;;  %v3480_v55 = vsub.f32 %v8725_v21, %v3412_v26 }
 0xa25   : > { %v8856_v9 = vpop.eup %6972 }
 0xa26   : > { %v8858_v54 = vpop.eup %6974  ;;  %v3539_v43 = vmul.f32 1.442695, %v3487_v47  ;;  %v3590_v8 = vsel %vm1380_vm0, %v8856_v9, 0.0  ;;  %v3525_v31 = vmul.f32 1.442695, %v3480_v55 }
 0xa27   : > { %v3436_v17 = vpop.xlane.xlu1 %3435  ;;  %3591 = vadd.xlane.f32.xlu1 %v3590_v8  ;;  %v3611_v59 = vsel %vm1380_vm0, %v8858_v54, 0.0  ;;  %v3451_v56 = vpop.xlane.xlu0 %3450 }
 0xa28   : > { %v3488_v22 = vsub.f32 %v8747_v40, %v3436_v17  ;;  %3612 = vadd.xlane.f32.xlu0 %v3611_v59  ;;  %v3493_v12 = vsub.f32 %v8733_v37, %v3451_v56  ;;  %6984 = vpow2.f32 %v3539_v43 }
 0xa29   : > { %v8867_v14 = vpop.eup %6976  ;;  %6986 = vpow2.f32 %v3529_v57 }
 0xa2a   : > { %v8869_v46 = vpop.eup %6978  ;;  %v3541_v20 = vmul.f32 1.442695, %v3488_v22  ;;  %v3551_v63 = vmul.f32 1.442695, %v3493_v12  ;;  %v3614_v15 = vsel %vm1380_vm0, %v8867_v14, 0.0 }
 0xa2b   : > { %v3454_v50 = vpop.xlane.xlu1 %3453  ;;  %3615 = vadd.xlane.f32.xlu1 %v3614_v15  ;;  %v3605_v40 = vsel %vm1380_vm0, %v8869_v46, 0.0  ;;  %v3445_v37 = vpop.xlane.xlu0 %3444 }
 0xa2c   : > { %6988 = vpow2.f32 %v3541_v20  ;;  %3606 = vadd.xlane.f32.xlu0 %v3605_v40  ;;  %v3491_v61 = vsub.f32 %v8741_v58, %v3445_v37  ;;  %v3494_v30 = vsub.f32 %v8749_v18, %v3454_v50 }
 0xa2d   : > { %v8877_v35 = vpop.eup %6980  ;;  %6990 = vpow2.f32 %v3551_v63 }
 0xa2e   : > { %v3547_v33 = vmul.f32 1.442695, %v3491_v61  ;;  %6992 = vpow2.f32 %v3545_v25  ;;  %v3629_v21 = vsel %vm1380_vm0, %v8877_v35, 0.0  ;;  %v3553_v7 = vmul.f32 1.442695, %v3494_v30 }
 0xa2f   : > { %v3448_v27 = vpop.xlane.xlu1 %3447  ;;  %v3463_v36 = vpop.xlane.xlu0 %3462 }
 0xa30   : > { %3630 = vadd.xlane.f32.xlu0 %v3629_v21  ;;  %v3497_v2 = vsub.f32 %v8761_v28, %v3463_v36  ;;  %6994 = vpow2.f32 %v3547_v33  ;;  %v3492_v6 = vsub.f32 %v8755_v53, %v3448_v27 }
 0xa31   : > { %v8883_v26 = vpop.eup %6982  ;;  %6996 = vpow2.f32 %v3525_v31 }
 0xa32   : > { %v3559_v58 = vmul.f32 1.442695, %v3497_v2  ;;  %v3599_v18 = vsel %vm1380_vm0, %v8883_v26, 0.0  ;;  %v3549_v32 = vmul.f32 1.442695, %v3492_v6 }
 0xa33   : > { %v8886_v47 = vpop.permute.xlu1 %3035  ;;  %v3457_v43 = vpop.xlane.xlu0 %3456 }
 0xa34   : > { %3600 = vadd.xlane.f32.xlu0 %v3599_v18  ;;  %v3495_v8 = vsub.f32 %v8767_v45, %v3457_v43  ;;  %6318 = vmatprep.subr.bf16.mxu1 %v8886_v47  ;;  %6998 = vpow2.f32 %v3559_v58 }
 0xa35   : > { %v8892_v28 = vpop.eup %6984  ;;  %7000 = vpow2.f32 %v3553_v7 }
 0xa36   : > { %v3555_v57 = vmul.f32 1.442695, %v3495_v8  ;;  %v3623_v53 = vsel %vm1380_vm0, %v8892_v28, 0.0  ;;  %v8898_v59 = vpop.eup %6986 }
 0xa37   : > { %v8896_v17 = vpop.permute.xlu0 %3029  ;;  %3624 = vadd.xlane.f32.xlu1 %v3623_v53  ;;  %v3608_v12 = vsel %vm1380_vm0, %v8898_v59, 0.0 }
 0xa38   : > { %6306 = vmatprep.subr.bf16.mxu0 %v8896_v17  ;;  %7002 = vpow2.f32 %v3555_v57 }
 0xa39   : > { %v8901_v56 = vpop.eup %6988  ;;  %7004 = vpow2.f32 %v3549_v32 }
 0xa3a   : > { %v3626_v45 = vsel %vm1380_vm0, %v8901_v56, 0.0  ;;  %v8905_v22 = vpop.eup %6990 }
 0xa3b   : > { %3627 = vadd.xlane.f32.xlu0 %v3626_v45  ;;  %v8909_v20 = vpop.eup %6992  ;;  %3609 = vadd.xlane.f32.xlu1 %v3608_v12  ;;  %v3641_v63 = vsel %vm1380_vm0, %v8905_v22, 0.0 }
 0xa3c   : > { %v3632_v25 = vsel %vm1380_vm0, %v8909_v20, 0.0 }
 0xa3d   : > { %v8913_v15 = vpop.eup %6994 }
 0xa3e   : > { %v8917_v55 = vpop.eup %6996  ;;  %v3635_v50 = vsel %vm1380_vm0, %v8913_v15, 0.0 }
 0xa3f   : > { %3642 = vadd.xlane.f32.xlu0 %v3641_v63  ;;  %3633 = vadd.xlane.f32.xlu1 %v3632_v25  ;;  %v3602_v37 = vsel %vm1380_vm0, %v8917_v55, 0.0 }
 0xa41   : > { %v8921_v40 = vpop.eup %6998 }
 0xa42   : > { %v8925_v61 = vpop.eup %7000  ;;  %v3653_v33 = vsel %vm1380_vm0, %v8921_v40, 0.0 }
 0xa43   : > { %3636 = vadd.xlane.f32.xlu0 %v3635_v50  ;;  %3603 = vadd.xlane.f32.xlu1 %v3602_v37  ;;  %v3644_v30 = vsel %vm1380_vm0, %v8925_v61, 0.0 }
 0xa45   : > { %v8929_v31 = vpop.eup %7002 }
 0xa46   : > { %v8933_v27 = vpop.eup %7004  ;;  %v3647_v21 = vsel %vm1380_vm0, %v8929_v31, 0.0 }
 0xa47   : > { %3654 = vadd.xlane.f32.xlu0 %v3653_v33  ;;  %3645 = vadd.xlane.f32.xlu1 %v3644_v30  ;;  %v3638_v36 = vsel %vm1380_vm0, %v8933_v27, 0.0 }
 0xa4b   : > { %3648 = vadd.xlane.f32.xlu0 %v3647_v21  ;;  %3639 = vadd.xlane.f32.xlu1 %v3638_v36 }
 0xa61   : > { %3033 = vrot.lane.b32.xlu0 %v8619_v23, %s7506_s20 }
 0xa64   : > { %v3466_v2 = vpop.xlane.xlu1 %3465 }
 0xa65   : > { %v3498_v58 = vsub.f32 %v8783_v42, %v3466_v2 }
 0xa67   : > { %v3561_v7 = vmul.f32 1.442695, %v3498_v58 }
 0xa68   : > { %v3460_v6 = vpop.xlane.xlu1 %3459  ;;  %v3571_v18 = vpop.xlane.xlu0 %3570 }
 0xa69   : > { %7006 = vpow2.f32 %v3561_v7  ;;  %v3496_v43 = vsub.f32 %v8789_v29, %v3460_v6 }
 0xa6b   : > { %v3557_v8 = vmul.f32 1.442695, %v3496_v43 }
 0xa6c   : > { %v3574_v57 = vpop.xlane.xlu1 %3573  ;;  %v3565_v32 = vpop.xlane.xlu0 %3564 }
 0xa6d   : > { %7008 = vpow2.f32 %v3557_v8 }
 0xa6e   : > { %7010 = vrcp.f32 %v3574_v57 }
 0xa6f   : > { %7012 = vrcp.f32 %v3565_v32 }
 0xa70   : > { %7014 = vrcp.f32 %v3571_v18  ;;  %v3568_v53 = vpop.xlane.xlu1 %3567  ;;  %v3583_v45 = vpop.xlane.xlu0 %3582 }
 0xa71   : > { %7016 = vrcp.f32 %v3568_v53 }
 0xa74   : > { %v3586_v12 = vpop.xlane.xlu1 %3585  ;;  %v3577_v63 = vpop.xlane.xlu0 %3576 }
 0xa75   : > { %7018 = vrcp.f32 %v3586_v12 }
 0xa76   : > { %v8943_v25 = vpop.eup %7006  ;;  %7020 = vrcp.f32 %v3577_v63 }
 0xa77   : > { %v3656_v42 = vsel %vm1380_vm0, %v8943_v25, 0.0  ;;  %7022 = vrcp.f32 %v3583_v45 }
 0xa78   : > { %v3580_v29 = vpop.xlane.xlu1 %3579  ;;  %3657 = vadd.xlane.f32.xlu1 %v3656_v42 }
 0xa79   : > { %7024 = vrcp.f32 %v3580_v29 }
 0xa7a   : > { %v8947_v50 = vpop.eup %7008 }
 0xa7b   : > { %v7011_v37 = vpop.eup %7010  ;;  %v3650_v33 = vsel %vm1380_vm0, %v8947_v50, 0.0 }
 0xa7c   : > { %v7013_v30 = vpop.eup %7012  ;;  %3651 = vadd.xlane.f32.xlu1 %v3650_v33  ;;  %v3694_v2 = vmul.f32 %v7011_v37, %v8797_v13 }
 0xa7d   : > { %v7015_v21 = vpop.eup %7014  ;;  %v3691_v58 = vmul.f32 %v7013_v30, %v8791_v38 }
 0xa7e   : > { %v7017_v36 = vpop.eup %7016  ;;  %v3693_v6 = vmul.f32 %v7015_v21, %v8787_v16 }
 0xa7f   : > { %v3692_v7 = vmul.f32 %v7017_v36, %v8799_v34 }
 0xa80   : > { %v3724_v43 = vpack.c.bf16 %v3694_v2, %v3693_v6 }
 0xa81   : > { %v3723_v18 = vpack.c.bf16 %v3692_v7, %v3691_v58 }
 0xa82   : > { %v7019_v8 = vpop.eup %7018 }
 0xa83   : > { %6286 = vmatprep.mubr.msk.bf16.mxu0 %vm1380_vm0, %v3723_v18  ;;  %v7021_v57 = vpop.eup %7020  ;;  %v3698_v13 = vmul.f32 %v7019_v8, %v8807_v10 }
 0xa84   : > { %6287 = vmatmul.mubr.msk.bf16.vlgmr.msra.gmra.mxu0 %vm1380_vm0, %v3724_v43  ;;  %v7023_v32 = vpop.eup %7022  ;;  %v3695_v38 = vmul.f32 %v7021_v57, %v8813_v4 }
 0xa85   : > { %6307 = vmatpush3.bf16.msra.mxu0 %v8896_v17  ;;  %v3697_v16 = vmul.f32 %v7023_v32, %v8805_v39 }
 0xa86   : > { %v7025_v53 = vpop.eup %7024 }
 0xa87   : > { %v3696_v34 = vmul.f32 %v7025_v53, %v8819_v0  ;;  %v3726_v12 = vpack.c.bf16 %v3698_v13, %v3697_v16 }
 0xa89   : > { %v3725_v45 = vpack.c.bf16 %v3696_v34, %v3695_v38 }
 0xa8b   : > { %6290 = vmatprep.mubr.msk.bf16.mxu0 %vm1380_vm0, %v3725_v45 }
 0xa8c   : > { %6291 = vmatmul.mubr.msk.bf16.gmra.mxu0 %vm1380_vm0, %v3726_v12 }
 0xa8d   : > { %3027 = vrot.lane.b32.xlu1 %v8619_v23, %s7505_s17 }
 0xaa3   : > { %v3595_v63 = vpop.xlane.xlu0 %3594 }
 0xaa7   : > { %v3598_v17 = vpop.xlane.xlu1 %3597 }
 0xaa8   : > { %v3619_v42 = vpop.xlane.xlu0 %3618 }
 0xaa9   : > { %7026 = vrcp.f32 %v3619_v42 }
 0xaac   : > { %v3622_v10 = vpop.xlane.xlu1 %3621 }
 0xaad   : > { %7028 = vrcp.f32 %v3622_v10  ;;  %v3589_v4 = vpop.xlane.xlu0 %3588 }
 0xaae   : > { %7030 = vrcp.f32 %v3598_v17 }
 0xaaf   : > { %7032 = vrcp.f32 %v3589_v4 }
 0xab0   : > { %7034 = vrcp.f32 %v3595_v63  ;;  %v3592_v39 = vpop.xlane.xlu1 %3591 }
 0xab1   : > { %7036 = vrcp.f32 %v3592_v39  ;;  %v3613_v0 = vpop.xlane.xlu0 %3612 }
 0xab2   : > { %7038 = vrcp.f32 %v3613_v0 }
 0xab4   : > { %v3616_v29 = vpop.xlane.xlu1 %3615 }
 0xab5   : > { %7040 = vrcp.f32 %v3616_v29  ;;  %v3607_v37 = vpop.xlane.xlu0 %3606 }
 0xab6   : > { %v7027_v33 = vpop.eup %7026 }
 0xab7   : > { %v8969_v36 = vmul.f32 %v7027_v33, %v8839_v44 }
 0xab9   : > { %v8966_v23 = vpop.xlane.xlu0 %3630 }
 0xaba   : > { %v7029_v30 = vpop.eup %7028 }
 0xabb   : > { %v7031_v21 = vpop.eup %7030  ;;  %v8972_v2 = vmul.f32 %v7029_v30, %v8846_v52 }
 0xabc   : > { %v7033_v58 = vpop.eup %7032  ;;  %v3702_v43 = vmul.f32 %v7031_v21, %v8836_v19 }
 0xabd   : > { %v7035_v7 = vpop.eup %7034  ;;  %v3732_v6 = vpack.c.bf16 %v8972_v2, %v8969_v36  ;;  %v3699_v8 = vmul.f32 %v7033_v58, %v8848_v51  ;;  %v3601_v44 = vpop.xlane.xlu0 %3600 }
 0xabe   : > { %v7037_v18 = vpop.eup %7036  ;;  %v3701_v53 = vmul.f32 %v7035_v7, %v8830_v3 }
 0xabf   : > { %v3700_v57 = vmul.f32 %v7037_v18, %v8856_v9  ;;  %v7039_v32 = vpop.eup %7038 }
 0xac0   : > { %v3625_v13 = vpop.xlane.xlu1 %3624  ;;  %v3728_v34 = vpack.c.bf16 %v3702_v43, %v3701_v53  ;;  %v3707_v16 = vmul.f32 %v7039_v32, %v8858_v54 }
 0xac1   : > { %v3727_v38 = vpack.c.bf16 %v3700_v57, %v3699_v8 }
 0xac2   : > { %v7041_v52 = vpop.eup %7040 }
 0xac3   : > { %6298 = vmatprep.mubr.msk.bf16.mxu1 %vm1380_vm0, %v3727_v38  ;;  %v3708_v45 = vmul.f32 %v7041_v52, %v8867_v14 }
 0xac4   : > { %6299 = vmatmul.mubr.msk.bf16.vlgmr.msra.gmra.mxu1 %vm1380_vm0, %v3728_v34  ;;  %v3628_v19 = vpop.xlane.xlu0 %3627  ;;  %v3610_v51 = vpop.xlane.xlu1 %3609 }
 0xac5   : > { %6319 = vmatpush3.bf16.msra.mxu1 %v8886_v47  ;;  %v3731_v9 = vpack.c.bf16 %v3708_v45, %v3707_v16  ;;  %7042 = vrcp.f32 %v3610_v51 }
 0xac6   : > { %7044 = vrcp.f32 %v3601_v44 }
 0xac7   : > { %6310 = vmatprep.mubr.msk.bf16.mxu0 %vm1380_vm0, %v3731_v9  ;;  %7046 = vrcp.f32 %v3607_v37 }
 0xac8   : > { %v3643_v3 = vpop.xlane.xlu0 %3642  ;;  %v3634_v12 = vpop.xlane.xlu1 %3633 }
 0xacc   : > { %v3637_v63 = vpop.xlane.xlu0 %3636  ;;  %v3604_v17 = vpop.xlane.xlu1 %3603 }
 0xacd   : > { %7048 = vrcp.f32 %v3604_v17 }
 0xad0   : > { %v3655_v54 = vpop.xlane.xlu0 %3654  ;;  %v3646_v42 = vpop.xlane.xlu1 %3645 }
 0xad1   : > { %7050 = vrcp.f32 %v3646_v42  ;;  %v6709_v42 = vld [vmem:[#allocation13 + $0x20] sm:$0xff]  }
 0xad2   : > { %7052 = vrcp.f32 %v3637_v63  ;;  %v7043_v47 = vpop.eup %7042 }
 0xad3   : > { %7054 = vrcp.f32 %v3643_v3  ;;  %v7045_v39 = vpop.eup %7044  ;;  %v3706_v33 = vmul.f32 %v7043_v47, %v8898_v59 }
 0xad4   : > { %v3649_v14 = vpop.xlane.xlu0 %3648  ;;  %v3640_v10 = vpop.xlane.xlu1 %3639  ;;  %v3703_v37 = vmul.f32 %v7045_v39, %v8883_v26 }
 0xad5   : > { %7056 = vrcp.f32 %v3640_v10  ;;  %v7047_v0 = vpop.eup %7046  ;;  %v6710_v10 = vld [vmem:[#allocation13 + $0x18] sm:$0xff]  }
 0xad6   : > { %v3705_v21 = vmul.f32 %v7047_v0, %v8869_v46  ;;  %7058 = vrcp.f32 %v3628_v19 }
 0xad7   : > { %7060 = vrcp.f32 %v3625_v13 }
 0xad8   : > { %v3034_v4 = vpop.permute.xlu0 %3033  ;;  %v3730_v7 = vpack.c.bf16 %v3706_v33, %v3705_v21  ;;  %7062 = vrcp.f32 %v3634_v12 }
 0xad9   : > { %6320 = vmatprep.subr.bf16.mxu1 %v3034_v4  ;;  %7064 = vrcp.f32 %v8966_v23 }
 0xada   : > { %6321 = vmatpush3.bf16.msra.mxu1 %v3034_v4  ;;  %v7049_v29 = vpop.eup %7048 }
 0xadb   : > { %v3704_v30 = vmul.f32 %v7049_v29, %v8917_v55 }
 0xadd   : > { %v3729_v58 = vpack.c.bf16 %v3704_v30, %v3703_v37 }
 0xade   : > { %v7051_v18 = vpop.eup %7050 }
 0xadf   : > { %6302 = vmatprep.mubr.msk.bf16.mxu1 %vm1380_vm0, %v3729_v58  ;;  %v7053_v43 = vpop.eup %7052  ;;  %v3718_v32 = vmul.f32 %v7051_v18, %v8925_v61  ;;  %v6711_v18 = vld [vmem:[#allocation13 + $0x10] sm:$0xff]  }
 0xae0   : > { %6303 = vmatmul.mubr.msk.bf16.gmra.mxu1 %vm1380_vm0, %v3730_v7  ;;  %v7055_v8 = vpop.eup %7054  ;;  %v3715_v59 = vmul.f32 %v7053_v43, %v8913_v15 }
 0xae1   : > { %v3717_v55 = vmul.f32 %v7055_v8, %v8905_v22 }
 0xae2   : > { %v7057_v57 = vpop.eup %7056 }
 0xae3   : > { %v3716_v26 = vmul.f32 %v7057_v57, %v8933_v27  ;;  %v3736_v46 = vpack.c.bf16 %v3718_v32, %v3717_v55  ;;  %v7059_v61 = vpop.eup %7058  ;;  %v6712_v57 = vld [vmem:[#allocation13 + $0x8] sm:$0xff]   ;;  %v6713_v55 = vld [vmem:[#allocation13] sm:$0xff]  }
 0xae4   : > { %v7061_v27 = vpop.eup %7060  ;;  %v3712_v38 = vmul.f32 %v7059_v61, %v8901_v56 }
 0xae5   : > { %v3735_v53 = vpack.c.bf16 %v3716_v26, %v3715_v59  ;;  %v3711_v52 = vmul.f32 %v7061_v27, %v8892_v28  ;;  %v7063_v34 = vpop.eup %7062 }
 0xae6   : > { %v7065_v23 = vpop.eup %7064  ;;  %v3714_v45 = vmul.f32 %v7063_v34, %v8909_v20  ;;  %v6707_v20 = vld [vmem:[#allocation13 + $0x30] sm:$0xff]  }
 0xae7   : > { %6322 = vmatprep.mubr.msk.bf16.mxu1 %vm1380_vm0, %v3735_v53  ;;  %v3733_v13 = vpack.c.bf16 %v3712_v38, %v3711_v52  ;;  %v3713_v56 = vmul.f32 %v7065_v23, %v8877_v35  ;;  %v6706_v35 = vld [vmem:[#allocation13 + $0x38] sm:$0xff]  }
 0xae8   : > { %6323 = vmatmul.mubr.msk.bf16.vlgmr.msra.gmra.mxu1 %vm1380_vm0, %v3736_v46 }
 0xae9   : > { %v3734_v3 = vpack.c.bf16 %v3714_v45, %v3713_v56 }
 0xb01   : > { %v3658_v44 = vpop.xlane.xlu1 %3657 }
 0xb02   : > { %7066 = vrcp.f32 %v3658_v44 }
 0xb03   : > { %7068 = vrcp.f32 %v3649_v14 }
 0xb04   : > { %7070 = vrcp.f32 %v3655_v54 }
 0xb05   : > { %v3652_v15 = vpop.xlane.xlu1 %3651 }
 0xb06   : > { %7072 = vrcp.f32 %v3652_v15 }
 0xb09   : > { %v3028_v22 = vpop.permute.xlu1 %3027 }
 0xb0a   : > { %6308 = vmatprep.subr.bf16.mxu0 %v3028_v22 }
 0xb0b   : > { %6309 = vmatpush3.bf16.msra.mxu0 %v3028_v22 }
 0xb0c   : > { %6330 = vmatprep.subr.bf16.mxu0 %v6706_v35 }
 0xb0e   : > { %6311 = vmatmul.mubr.msk.bf16.vlgmr.msra.gmra.mxu0 %vm1380_vm0, %v3732_v6 }
 0xb0f   : > { %6314 = vmatprep.mubr.msk.bf16.mxu0 %vm1380_vm0, %v3733_v13  ;;  %v7067_v16 = vpop.eup %7066  ;;  %6331 = vmatpush3.bf16.msra.mxu0 %v6706_v35 }
 0xb10   : > { %v7069_v19 = vpop.eup %7068  ;;  %v3722_v28 = vmul.f32 %v7067_v16, %v8943_v25  ;;  %6332 = vmatprep.subr.bf16.mxu0 %v6707_v20 }
 0xb11   : > { %v7071_v51 = vpop.eup %7070  ;;  %v3719_v12 = vmul.f32 %v7069_v19, %v8929_v31 }
 0xb12   : > { %v3721_v2 = vmul.f32 %v7071_v51, %v8921_v40 }
 0xb13   : > { %v7073_v9 = vpop.eup %7072  ;;  %6333 = vmatpush3.bf16.msra.mxu0 %v6707_v20 }
 0xb14   : > { %v3720_v36 = vmul.f32 %v7073_v9, %v8947_v50  ;;  %v3738_v63 = vpack.c.bf16 %v3722_v28, %v3721_v2  ;;  %v6708_v50 = vld [vmem:[#allocation13 + $0x28] sm:$0xff]  }
 0xb15   : > { %6334 = vmatprep.subr.bf16.mxu0 %v6708_v50 }
 0xb16   : > { %6315 = vmatmul.mubr.msk.bf16.gmra.mxu0 %vm1380_vm0, %v3734_v3  ;;  %v3737_v6 = vpack.c.bf16 %v3720_v36, %v3719_v12 }
 0xb17   : > { %6335 = vmatpush3.bf16.msra.mxu0 %v6708_v50 }
 0xb18   : > { %6326 = vmatprep.mubr.msk.bf16.mxu1 %vm1380_vm0, %v3737_v6  ;;  %6336 = vmatprep.subr.bf16.mxu0 %v6709_v42 }
 0xb19   : > { %6327 = vmatmul.mubr.msk.bf16.gmra.mxu1 %vm1380_vm0, %v3738_v63 }
 0xb1a   : > { %4683 = vmatprep.mubr.bf16.mxu1 %v7503_v62 }
 0xb1b   : > { %6337 = vmatpush3.bf16.msra.mxu0 %v6709_v42 }
 0xb1c   : > { %6338 = vmatprep.subr.bf16.mxu0 %v6710_v10 }
 0xb1f   : > { %6339 = vmatpush3.bf16.msra.mxu0 %v6710_v10 }
 0xb20   : > { %6340 = vmatprep.subr.bf16.mxu0 %v6711_v18 }
 0xb23   : > { %6341 = vmatpush3.bf16.msra.mxu0 %v6711_v18 }
 0xb24   : > { %6342 = vmatprep.subr.bf16.mxu0 %v6712_v57 }
 0xb27   : > { %6343 = vmatpush3.bf16.msra.mxu0 %v6712_v57 }
 0xb28   : > { %6344 = vmatprep.subr.bf16.mxu0 %v6713_v55 }
 0xb2b   : > { %6345 = vmatpush3.bf16.msra.mxu0 %v6713_v55 }
 0xb44   : > { %v9018_v47 = vpop.f32.mrf.mxu0 }
 0xb46   : > { %v9020_v4 = vpop.f32.mrf.mxu0 }
 0xb48   : > { %v9022_v39 = vpop.f32.mrf.mxu0 }
 0xb4a   : > { %v9024_v29 = vpop.f32.mrf.mxu0 }
 0xb4c   : > { %v9026_v37 = vpop.f32.mrf.mxu0 }
 0xb4e   : > { %v9028_v21 = vpop.f32.mrf.mxu0 }
 0xb50   : > { %v9030_v7 = vpop.f32.mrf.mxu0 }
 0xb52   : > { %v9032_v8 = vpop.f32.mrf.mxu0 }
 0xb84   : > { %v6300_v25 = vpop.f32.mrf.mxu1 }
 0xb86   : > { %v3862_v31 = vpop.f32.mrf.mxu1 }
 0xb88   : > { %v6301_v17 = vpop.f32.mrf.mxu1 }
 0xb89   : > { %v6574_v40 = vpack.i.bf16 %v6301_v17, %v6300_v25 }
 0xb8a   : > { %v3865_v54 = vpop.f32.mrf.mxu1 }
 0xb8b   : > { %v6584_v14 = vpack.i.bf16 %v3865_v54, %v3862_v31  ;;  %6575 = vrot.lane.b32.xlu0 %v6574_v40, %s7506_s20 }
 0xb8d   : > { %6585 = vrot.lane.b32.xlu1 %v6584_v14, %s7506_s20 }
 0xba0   : > { %v6304_v0 = vpop.f32.mrf.mxu1 }
 0xba2   : > { %v3878_v33 = vpop.f32.mrf.mxu1 }
 0xba4   : > { %v6305_v30 = vpop.f32.mrf.mxu1 }
 0xba5   : > { %v6609_v16 = vpack.i.bf16 %v6305_v30, %v6304_v0 }
 0xba6   : > { %v3881_v58 = vpop.f32.mrf.mxu1 }
 0xba7   : > { %v6604_v19 = vpack.i.bf16 %v3881_v58, %v3878_v33 }
 0xba8   : > { %v6324_v43 = vpop.f32.mrf.mxu1 }
 0xbaa   : > { %v4016_v32 = vpop.f32.mrf.mxu1 }
 0xbac   : > { %v6325_v53 = vpop.f32.mrf.mxu1 }
 0xbad   : > { %v6599_v38 = vpack.i.bf16 %v6325_v53, %v6324_v43 }
 0xbae   : > { %v4019_v27 = vpop.f32.mrf.mxu1 }
 0xbaf   : > { %v6594_v34 = vpack.i.bf16 %v4019_v27, %v4016_v32 }
 0xbce   : > { %v6312_v59 = vpop.f32.mrf.mxu0 }
 0xbd0   : > { %v3939_v26 = vpop.f32.mrf.mxu0 }
 0xbd2   : > { %v6313_v46 = vpop.f32.mrf.mxu0 }
 0xbd3   : > { %v6579_v44 = vpack.i.bf16 %v6313_v46, %v6312_v59 }
 0xbd4   : > { %v3942_v15 = vpop.f32.mrf.mxu0 }
 0xbd5   : > { %v6589_v61 = vpack.i.bf16 %v3942_v15, %v3939_v26  ;;  %6580 = vrot.lane.b32.xlu0 %v6579_v44, %s7505_s17 }
 0xbd6   : > { %v6316_v22 = vpop.f32.mrf.mxu0 }
 0xbd7   : > { %6590 = vrot.lane.b32.xlu1 %v6589_v61, %s7505_s17 }
 0xbd8   : > { %v3955_v52 = vpop.f32.mrf.mxu0 }
 0xbd9   : > { %v6328_v13 = vpop.f32.mrf.mxu1  ;;  %6600 = vrot.lane.b32.xlu0 %v6599_v38, %s7504_s26 }
 0xbda   : > { %v6317_v23 = vpop.f32.mrf.mxu0 }
 0xbdb   : > { %v4032_v45 = vpop.f32.mrf.mxu1  ;;  %6595 = vrot.lane.b32.xlu1 %v6594_v34, %s7504_s26  ;;  %v6619_v9 = vpack.i.bf16 %v6317_v23, %v6316_v22 }
 0xbdc   : > { %v3958_v51 = vpop.f32.mrf.mxu0 }
 0xbdd   : > { %6610 = vrot.lane.b32.xlu0 %v6609_v16, %s7506_s20  ;;  %v6329_v56 = vpop.f32.mrf.mxu1  ;;  %v6614_v28 = vpack.i.bf16 %v3958_v51, %v3955_v52 }
 0xbde   : > { %v6629_v12 = vpack.i.bf16 %v6329_v56, %v6328_v13 }
 0xbdf   : > { %6605 = vrot.lane.b32.xlu1 %v6604_v19, %s7506_s20  ;;  %v4035_v3 = vpop.f32.mrf.mxu1 }
 0xbe0   : > { %v6624_v36 = vpack.i.bf16 %v4035_v3, %v4032_v45 }
 0xbe1   : > { %6620 = vrot.lane.b32.xlu0 %v6619_v9, %s7505_s17 }
 0xbe3   : > { %6615 = vrot.lane.b32.xlu1 %v6614_v28, %s7505_s17 }
 0xbe5   : > { %6630 = vrot.lane.b32.xlu0 %v6629_v12, %s7504_s26 }
 0xbe7   : > { %6625 = vrot.lane.b32.xlu1 %v6624_v36, %s7504_s26  ;;  %s9525_s26 = sld [smem:[#allocation39_spill]] }
 0xbfd   : > { %v6576_v2 = vpop.permute.xlu0 %6575 }
 0xbfe   : > { %v6578_v35 = vunpack.i.h.bf16 %v6576_v2  ;;  %v6577_v20 = vunpack.i.l.bf16 %v6576_v2 }
 0xbff   : > { %v6586_v6 = vpop.permute.xlu1 %6585 }
 0xc00   : > { %v6588_v25 = vunpack.i.h.bf16 %v6586_v6  ;;  %v6587_v31 = vunpack.i.l.bf16 %v6586_v6  ;;  %v4145_v33 = vsel %vm1380_vm0, %v9018_v47, %v6577_v20  ;;  %v4146_v30 = vsel %vm1380_vm0, %v9022_v39, %v6578_v35 }
 0xc02   : > { %v4143_v58 = vsel %vm1380_vm0, %v9020_v4, %v6587_v31  ;;  %v4144_v18 = vsel %vm1380_vm0, %v9024_v29, %v6588_v25 }
 0xc47   : > { %v6581_v63 = vpop.permute.xlu0 %6580 }
 0xc48   : > { %v6583_v17 = vunpack.i.h.bf16 %v6581_v63  ;;  %v6582_v40 = vunpack.i.l.bf16 %v6581_v63 }
 0xc49   : > { %v6591_v50 = vpop.permute.xlu1 %6590 }
 0xc4a   : > { %v6593_v54 = vunpack.i.h.bf16 %v6591_v50  ;;  %v6592_v42 = vunpack.i.l.bf16 %v6591_v50  ;;  %v4154_v57 = vsel %vm1737_vm1, %v4146_v30, %v6583_v17  ;;  %v4153_v32 = vsel %vm1737_vm1, %v4145_v33, %v6582_v40  ;;  %v5645_v40 = vld [vmem:[%s9443_s8] ss:$0 sm:$0xff] }
 0xc4b   : > { %v6601_v14 = vpop.permute.xlu0 %6600  ;;  %v2656_v30 = vadd.f32 %v8571_v48, %v5645_v40 }
 0xc4c   : > { %v6603_v10 = vunpack.i.h.bf16 %v6601_v14  ;;  %v6602_v0 = vunpack.i.l.bf16 %v6601_v14  ;;  %v4152_v55 = vsel %vm1737_vm1, %v4144_v18, %v6593_v54  ;;  %v4151_v47 = vsel %vm1737_vm1, %v4143_v58, %v6592_v42  ;;  %v5710_v14 = vld [vmem:[%s9447_s12] ss:$0 sm:$0xff] }
 0xc4d   : > { %v6596_v43 = vpop.permute.xlu1 %6595  ;;  %v2645_v54 = vadd.f32 %v5645_v40, %v8569_v5  ;;  %v2648_v58 = vadd.f32 %v5645_v40, %v8573_v49 }
 0xc4e   : > { %v6598_v59 = vunpack.i.h.bf16 %v6596_v43  ;;  %v6597_v26 = vunpack.i.l.bf16 %v6596_v43  ;;  %v4161_v53 = vsel %vm2526_vm2, %v4153_v32, %v6602_v0  ;;  %v4162_v39 = vsel %vm2526_vm2, %v4154_v57, %v6603_v10  ;;  %v7154_v0 = vld [vmem:[%s7852_s9] sm:$0xff] }
 0xc4f   : > { %v6611_v46 = vpop.permute.xlu0 %6610  ;;  %v4168_v61 = vpack.c.bf16 %v4162_v39, %v4161_v53  ;;  %v2675_v33 = vadd.f32 %v7154_v0, %v2645_v54 }
 0xc50   : > { %v4159_v4 = vsel %vm2526_vm2, %v4151_v47, %v6597_v26  ;;  %v4160_v29 = vsel %vm2526_vm2, %v4152_v55, %v6598_v59  ;;  %v6613_v22 = vunpack.i.h.bf16 %v6611_v46  ;;  %v6612_v38 = vunpack.i.l.bf16 %v6611_v46  ;;  %v7155_v26 = vld [vmem:[%s7852_s9 + $0x18] sm:$0xff]  ;;  %v7156_v47 = vld [vmem:[%s7852_s9 + $0x8] sm:$0xff] }
 0xc51   : > { %v6606_v44 = vpop.permute.xlu1 %6605  ;;  %v4167_v15 = vpack.c.bf16 %v4160_v29, %v4159_v4  ;;  %v2653_v59 = vadd.f32 %v8567_v60, %v5645_v40  ;;  %v2678_v55 = vadd.f32 %v7155_v26, %v2656_v30  ;;  %v2676_v53 = vadd.f32 %v7156_v47, %v2648_v58  ;;  %v7157_v4 = vld [vmem:[%s7852_s9 + $0x10] sm:$0xff] }
 0xc52   : > { %v6608_v52 = vunpack.i.h.bf16 %v6606_v44  ;;  %v6607_v34 = vunpack.i.l.bf16 %v6606_v44  ;;  %v4150_v28 = vsel %vm1380_vm0, %v9030_v7, %v6613_v22  ;;  %v4149_v3 = vsel %vm1380_vm0, %v9026_v37, %v6612_v38  ;;  %v7158_v22 = vld [vmem:[%s7852_s9 + $0x20] sm:$0xff] }
 0xc53   : > { %6346 = vmatprep.mubr.bf16.mxu0 %v4167_v15  ;;  %v6621_v27 = vpop.permute.xlu0 %6620  ;;  %v2677_v29 = vadd.f32 %v7157_v4, %v2653_v59  ;;  %v2661_v44 = vadd.f32 %v5645_v40, %v8577_v41  ;;  %v6720_v4 = vld [vmem:[#allocation14 + $0xc0] ss:$16 sps:$4 sm:$0xff]  }
 0xc54   : > { %6347 = vmatmul.mubr.bf16.vlgmr.msra.gmra.mxu0 %v4168_v61  ;;  %v6623_v23 = vunpack.i.h.bf16 %v6621_v27  ;;  %v6622_v16 = vunpack.i.l.bf16 %v6621_v27  ;;  %v4148_v12 = vsel %vm1380_vm0, %v9032_v8, %v6608_v52  ;;  %v4147_v36 = vsel %vm1380_vm0, %v9028_v21, %v6607_v34 }
 0xc55   : > { %v6616_v13 = vpop.permute.xlu1 %6615  ;;  %v2669_v27 = vadd.f32 %v8575_v24, %v5645_v40  ;;  %v2679_v38 = vadd.f32 %v7158_v22, %v2661_v44  ;;  %v2664_v52 = vadd.f32 %v5645_v40, %v8581_v11  ;;  %v6728_v22 = vld [vmem:[#allocation14 + $0xa4] ss:$16 sps:$4 sm:$0xff]  }
 0xc56   : > { %v6618_v45 = vunpack.i.h.bf16 %v6616_v13  ;;  %v6617_v19 = vunpack.i.l.bf16 %v6616_v13  ;;  %v4158_v6 = vsel %vm1737_vm1, %v4150_v28, %v6623_v23  ;;  %v4157_v63 = vsel %vm1737_vm1, %v4149_v3, %v6622_v16 }
 0xc57   : > { %v6631_v51 = vpop.permute.xlu0 %6630 }
 0xc58   : > { %v6633_v56 = vunpack.i.h.bf16 %v6631_v51  ;;  %v6632_v9 = vunpack.i.l.bf16 %v6631_v51  ;;  %v4156_v25 = vsel %vm1737_vm1, %v4148_v12, %v6618_v45  ;;  %v4155_v7 = vsel %vm1737_vm1, %v4147_v36, %v6617_v19  ;;  %v7159_v45 = vld [vmem:[%s7852_s9 + $0x30] sm:$0xff]  ;;  %v7161_v12 = vld [vmem:[%s7852_s9 + $0x38] sm:$0xff] }
 0xc59   : > { %v6626_v2 = vpop.permute.xlu1 %6625  ;;  %v2681_v19 = vadd.f32 %v7159_v45, %v2669_v27  ;;  %v2672_v51 = vadd.f32 %v8579_v1, %v5645_v40  ;;  %v6714_v1 = vld [vmem:[#allocation14 + $0xe0] ss:$16 sps:$4 sm:$0xff]  }
 0xc5a   : > { %v6628_v35 = vunpack.i.h.bf16 %v6626_v2  ;;  %v6627_v20 = vunpack.i.l.bf16 %v6626_v2  ;;  %v4165_v37 = vsel %vm2526_vm2, %v4157_v63, %v6632_v9  ;;  %v4166_v31 = vsel %vm2526_vm2, %v4158_v6, %v6633_v56  ;;  %v7160_v56 = vld [vmem:[%s7852_s9 + $0x28] sm:$0xff]  ;;  %v6716_v6 = vld [vmem:[#allocation14 + $0xe4] ss:$16 sps:$4 sm:$0xff]   ;;  %v6732_v45 = vld [vmem:[#allocation14 + $0x80] ss:$16 sps:$4 sm:$0xff]   ;;  %s7400_s9 = scalar_lea.vmem %s9390_s7, 1024 }
 0xc5b   : > { %v4170_v17 = vpack.c.bf16 %v4166_v31, %v4165_v37  ;;  %v2680_v9 = vadd.f32 %v7160_v56, %v2664_v52  ;;  %v2682_v36 = vadd.f32 %v7161_v12, %v2672_v51  ;;  %v6717_v63 = vld [vmem:[#allocation14 + $0xe8] ss:$16 sps:$4 sm:$0xff]   ;;  %4651 = vmatprep.subr.bf16.mxu1 %v6716_v6  ;;  %v6726_v52 = vld [vmem:[#allocation14 + $0xa0] ss:$16 sps:$4 sm:$0xff]   ;;  %v6740_v51 = vld [vmem:[#allocation14 + $0x64] ss:$16 sps:$4 sm:$0xff]   ;;  %p7401_p12 = scmp.ne.s32.totalorder %s9390_s7, %s7400_s9  ;;  %p7408_p10 = scmp.lt.s32.totalorder %s7406_s22, %s7400_s9 }
 0xc5c   : > { %v4163_v8 = vsel %vm2526_vm2, %v4155_v7, %v6627_v20  ;;  %v4164_v21 = vsel %vm2526_vm2, %v4156_v25, %v6628_v35  ;;  %v6719_v35 = vld [vmem:[#allocation14 + $0xec] ss:$16 sps:$4 sm:$0xff]   ;;  %4652 = vmatpush1.bf16.msra.mxu1 %v6714_v1  ;;  %v6747_v1 = vld [vmem:[#allocation14 + $0x48] ss:$16 sps:$4 sm:$0xff]   ;;  %v6752_v6 = vld [vmem:[#allocation14 + $0x24] ss:$16 sps:$4 sm:$0xff]  }
 0xc5d   : > { %v4169_v50 = vpack.c.bf16 %v4164_v21, %v4163_v8  ;;  %4724 = vmatprep.subr.bf16.mxu0 %v6719_v35  ;;  %v6743_v56 = vld [vmem:[#allocation14 + $0x6c] ss:$16 sps:$4 sm:$0xff]   ;;  %v6750_v35 = vld [vmem:[#allocation14 + $0x20] ss:$16 sps:$4 sm:$0xff]   ;;  %p7402_p1 = pnand %p7401_p12, %p9528_p13  ;;  %p7409_p3 = por %p7408_p10, %p7407_p8 }
 0xc5e   : > { %4725 = vmatpush1.bf16.msra.mxu0 %v6717_v63  ;;  %v6749_v12 = vld [vmem:[#allocation14 + $0x4c] ss:$16 sps:$4 sm:$0xff]  }
 0xc5f   : > { %6350 = vmatprep.mubr.bf16.mxu0 %v4169_v50  ;;  %v6755_v63 = vld [vmem:[#allocation14 + $0x2c] ss:$16 sps:$4 sm:$0xff]   ;;  %p7403_p4 = pneg %p7402_p1 }
 0xc60   : > { %6351 = vmatmul.mubr.bf16.gmra.mxu0 %v4170_v17 }
 0xc61   : > { %4756 = vmatprep.mubr.bf16.mxu0 %v7503_v62  ;;  %p7410_p9 = pnand %p7409_p3, %p7403_p4 }
 0xd14   : > { %v6348_v42 = vpop.f32.mrf.mxu0 }
 0xd15   : > { %v4285_v48 = vadd.f32 %v6348_v42, %v5710_v14 }
 0xd16   : > { %v4276_v10 = vpop.f32.mrf.mxu0 }
 0xd17   : > { %v4277_v18 = vadd.f32 %v5710_v14, %v4276_v10  ;;  %v9101_v15 = vadd.f32 %v4285_v48, %v2677_v29  ;;  %v6723_v29 = vld [vmem:[#allocation14 + $0xc8] ss:$16 sps:$4 sm:$0xff]  }
 0xd18   : > { %v6349_v43 = vpop.f32.mrf.mxu0 }
 0xd19   : > { %v9087_v57 = vadd.f32 %v4277_v18, %v2675_v33  ;;  %v4288_v32 = vadd.f32 %v6349_v43, %v5710_v14 }
 0xd1a   : > { %v4279_v5 = vpop.f32.mrf.mxu0 }
 0xd1b   : > { %v4280_v39 = vadd.f32 %v5710_v14, %v4279_v5  ;;  %4317 = vadd.xlane.f32.xlu1 %v9087_v57  ;;  %v9093_v46 = vadd.f32 %v4288_v32, %v2678_v55 }
 0xd1d   : > { %v9095_v49 = vadd.f32 %v4280_v39, %v2676_v53  ;;  %v6722_v53 = vld [vmem:[#allocation14 + $0xc4] ss:$16 sps:$4 sm:$0xff]   ;;  %v6725_v39 = vld [vmem:[#allocation14 + $0xcc] ss:$16 sps:$4 sm:$0xff]  }
 0xd1e   : > { %4653 = vmatprep.subr.bf16.mxu1 %v6722_v53  ;;  %4726 = vmatprep.subr.bf16.mxu0 %v6725_v39 }
 0xd1f   : > { %4319 = vadd.xlane.f32.xlu0 %v9095_v49  ;;  %4323 = vadd.xlane.f32.xlu1 %v9093_v46 }
 0xd20   : > { %v6352_v60 = vpop.f32.mrf.mxu0  ;;  %4654 = vmatpush1.bf16.msra.mxu1 %v6720_v4  ;;  %4727 = vmatpush1.bf16.msra.mxu0 %v6723_v29 }
 0xd21   : > { %v4301_v13 = vadd.f32 %v6352_v60, %v5710_v14  ;;  %4655 = vmatprep.subr.bf16.mxu1 %v6728_v22 }
 0xd22   : > { %v4292_v61 = vpop.f32.mrf.mxu0 }
 0xd23   : > { %v4293_v34 = vadd.f32 %v5710_v14, %v4292_v61  ;;  %4321 = vadd.xlane.f32.xlu0 %v9101_v15  ;;  %v9113_v28 = vadd.f32 %v4301_v13, %v2681_v19  ;;  %v6734_v13 = vld [vmem:[#allocation14 + $0x84] ss:$16 sps:$4 sm:$0xff]   ;;  %v6735_v19 = vld [vmem:[#allocation14 + $0x88] ss:$16 sps:$4 sm:$0xff]  }
 0xd24   : > { %v6353_v41 = vpop.f32.mrf.mxu0  ;;  %4656 = vmatpush1.bf16.msra.mxu1 %v6726_v52 }
 0xd25   : > { %v9107_v23 = vadd.f32 %v4293_v34, %v2679_v38  ;;  %v4304_v11 = vadd.f32 %v6353_v41, %v5710_v14  ;;  %v6731_v38 = vld [vmem:[#allocation14 + $0xac] ss:$16 sps:$4 sm:$0xff]   ;;  %v6729_v34 = vld [vmem:[#allocation14 + $0xa8] ss:$16 sps:$4 sm:$0xff]   ;;  %4657 = vmatprep.subr.bf16.mxu1 %v6734_v13 }
 0xd26   : > { %v4295_v16 = vpop.f32.mrf.mxu0  ;;  %4728 = vmatprep.subr.bf16.mxu0 %v6731_v38  ;;  %v5719_v38 = vld [vmem:[%s9448_s13] ss:$0 sm:$0xff] }
 0xd27   : > { %v4296_v24 = vadd.f32 %v5710_v14, %v4295_v16  ;;  %4325 = vadd.xlane.f32.xlu0 %v9107_v23  ;;  %v9120_v2 = vadd.f32 %v4304_v11, %v2682_v36  ;;  %4729 = vmatpush1.bf16.msra.mxu0 %v6729_v34  ;;  %v6737_v16 = vld [vmem:[#allocation14 + $0x8c] ss:$16 sps:$4 sm:$0xff]   ;;  %v6746_v11 = vld [vmem:[#allocation14 + $0x44] ss:$16 sps:$4 sm:$0xff]   ;;  %v6744_v36 = vld [vmem:[#allocation14 + $0x40] ss:$16 sps:$4 sm:$0xff]  }
 0xd28   : > { %4730 = vmatprep.subr.bf16.mxu0 %v6737_v16  ;;  %4658 = vmatpush1.bf16.msra.mxu1 %v6732_v45 }
 0xd29   : > { %v9115_v3 = vadd.f32 %v4296_v24, %v2680_v9  ;;  %v6738_v9 = vld [vmem:[#allocation14 + $0x60] ss:$16 sps:$4 sm:$0xff]   ;;  %v6741_v24 = vld [vmem:[#allocation14 + $0x68] ss:$16 sps:$4 sm:$0xff]   ;;  %4659 = vmatprep.subr.bf16.mxu1 %v6740_v51 }
 0xd2b   : > { %4329 = vadd.xlane.f32.xlu0 %v9113_v28  ;;  %4327 = vadd.xlane.f32.xlu1 %v9115_v3 }
 0xd2c   : > { %4731 = vmatpush1.bf16.msra.mxu0 %v6735_v19  ;;  %4660 = vmatpush1.bf16.msra.mxu1 %v6738_v9 }
 0xd2d   : > { %4732 = vmatprep.subr.bf16.mxu0 %v6743_v56  ;;  %4661 = vmatprep.subr.bf16.mxu1 %v6746_v11 }
 0xd2f   : > { %4331 = vadd.xlane.f32.xlu1 %v9120_v2 }
 0xd30   : > { %4733 = vmatpush1.bf16.msra.mxu0 %v6741_v24  ;;  %4662 = vmatpush1.bf16.msra.mxu1 %v6744_v36 }
 0xd31   : > { %4734 = vmatprep.subr.bf16.mxu0 %v6749_v12  ;;  %4663 = vmatprep.subr.bf16.mxu1 %v6752_v6 }
 0xd34   : > { %4735 = vmatpush1.bf16.msra.mxu0 %v6747_v1  ;;  %4664 = vmatpush1.bf16.msra.mxu1 %v6750_v35 }
 0xd35   : > { %4736 = vmatprep.subr.bf16.mxu0 %v6755_v63 }
 0xda4   : > { %v4318_v20 = vpop.xlane.xlu1 %4317 }
 0xda5   : > { %v4333_v25 = vmul.f32 0.0078125, %v4318_v20  ;;  %v6753_v20 = vld [vmem:[#allocation14 + $0x28] ss:$16 sps:$4 sm:$0xff]  }
 0xda6   : > { %4737 = vmatpush1.bf16.msra.mxu0 %v6753_v20 }
 0xda7   : > { %v9124_v7 = vsub.f32 %v9087_v57, %v4333_v25  ;;  %v6758_v25 = vld [vmem:[#allocation14 + $0x4] ss:$16 sps:$4 sm:$0xff]  }
 0xda8   : > { %v4320_v37 = vpop.xlane.xlu0 %4319  ;;  %v4324_v31 = vpop.xlane.xlu1 %4323  ;;  %4665 = vmatprep.subr.bf16.mxu1 %v6758_v25 }
 0xda9   : > { %v4334_v8 = vmul.f32 0.0078125, %v4320_v37  ;;  %v4336_v21 = vmul.f32 0.0078125, %v4324_v31  ;;  %v4349_v50 = vmul.f32 %v9124_v7, %v9124_v7  ;;  %v6756_v37 = vld [vmem:[#allocation14] ss:$16 sps:$4 sm:$0xff]   ;;  %v6759_v31 = vld [vmem:[#allocation14 + $0x8] ss:$16 sps:$4 sm:$0xff]  }
 0xdaa   : > { %4666 = vmatpush1.bf16.msra.mxu1 %v6756_v37 }
 0xdab   : > { %v9129_v17 = vsub.f32 %v9095_v49, %v4334_v8  ;;  %4357 = vadd.xlane.f32.xlu0 %v4349_v50  ;;  %v9132_v54 = vsub.f32 %v9093_v46, %v4336_v21  ;;  %v6761_v8 = vld [vmem:[#allocation14 + $0xc] ss:$16 sps:$4 sm:$0xff]  }
 0xdac   : > { %v4322_v40 = vpop.xlane.xlu0 %4321  ;;  %4738 = vmatprep.subr.bf16.mxu0 %v6761_v8 }
 0xdad   : > { %v4335_v42 = vmul.f32 0.0078125, %v4322_v40  ;;  %v4350_v14 = vmul.f32 %v9129_v17, %v9129_v17  ;;  %v4352_v58 = vmul.f32 %v9132_v54, %v9132_v54  ;;  %4739 = vmatpush1.bf16.msra.mxu0 %v6759_v31 }
 0xdaf   : > { %v9137_v10 = vsub.f32 %v9101_v15, %v4335_v42  ;;  %4359 = vadd.xlane.f32.xlu1 %v4350_v14 }
 0xdb0   : > { %v4326_v0 = vpop.xlane.xlu0 %4325 }
 0xdb1   : > { %v4337_v33 = vmul.f32 0.0078125, %v4326_v0  ;;  %v4351_v30 = vmul.f32 %v9137_v10, %v9137_v10 }
 0xdb3   : > { %v9144_v18 = vsub.f32 %v9107_v23, %v4337_v33  ;;  %4361 = vadd.xlane.f32.xlu0 %v4351_v30  ;;  %4363 = vadd.xlane.f32.xlu1 %v4352_v58 }
 0xdb4   : > { %v4330_v43 = vpop.xlane.xlu0 %4329  ;;  %v4328_v32 = vpop.xlane.xlu1 %4327 }
 0xdb5   : > { %v4339_v5 = vmul.f32 0.0078125, %v4330_v43  ;;  %v4338_v59 = vmul.f32 0.0078125, %v4328_v32  ;;  %v4353_v26 = vmul.f32 %v9144_v18, %v9144_v18 }
 0xdb7   : > { %v9149_v55 = vsub.f32 %v9113_v28, %v4339_v5  ;;  %v9152_v47 = vsub.f32 %v9115_v3, %v4338_v59  ;;  %4365 = vadd.xlane.f32.xlu0 %v4353_v26 }
 0xdb8   : > { %v4332_v48 = vpop.xlane.xlu1 %4331 }
 0xdb9   : > { %v4340_v44 = vmul.f32 0.0078125, %v4332_v48  ;;  %v4355_v60 = vmul.f32 %v9149_v55, %v9149_v55  ;;  %v4354_v61 = vmul.f32 %v9152_v47, %v9152_v47 }
 0xdbb   : > { %v9159_v27 = vsub.f32 %v9120_v2, %v4340_v44  ;;  %4369 = vadd.xlane.f32.xlu0 %v4355_v60  ;;  %4367 = vadd.xlane.f32.xlu1 %v4354_v61 }
 0xdbd   : > { %v4356_v41 = vmul.f32 %v9159_v27, %v9159_v27 }
 0xdbf   : > { %4371 = vadd.xlane.f32.xlu1 %v4356_v41 }
 0xe34   : > { %v4358_v21 = vpop.xlane.xlu0 %4357 }
 0xe35   : > { %v4373_v50 = vmul.f32 0.0078125, %v4358_v21 }
 0xe37   : > { %v4381_v40 = vadd.f32 1e-05, %v4373_v50 }
 0xe38   : > { %v4360_v42 = vpop.xlane.xlu1 %4359 }
 0xe39   : > { %7074 = vrsqrt.f32 %v4381_v40  ;;  %v4374_v14 = vmul.f32 0.0078125, %v4360_v42 }
 0xe3b   : > { %v4382_v0 = vadd.f32 1e-05, %v4374_v14 }
 0xe3c   : > { %v4362_v33 = vpop.xlane.xlu0 %4361  ;;  %v4364_v30 = vpop.xlane.xlu1 %4363 }
 0xe3d   : > { %7076 = vrsqrt.f32 %v4382_v0  ;;  %v4375_v58 = vmul.f32 0.0078125, %v4362_v33  ;;  %v4376_v43 = vmul.f32 0.0078125, %v4364_v30 }
 0xe3f   : > { %v4383_v32 = vadd.f32 1e-05, %v4375_v58  ;;  %v4384_v5 = vadd.f32 1e-05, %v4376_v43  ;;  %v6762_v43 = vld [vmem:[#allocation16 + $0x78] sm:$0xff]  }
 0xe40   : > { %v4366_v59 = vpop.xlane.xlu0 %4365  ;;  %5954 = vmatprep.subr.bf16.mxu1 %v6762_v43 }
 0xe41   : > { %7078 = vrsqrt.f32 %v4383_v32  ;;  %v4377_v26 = vmul.f32 0.0078125, %v4366_v59  ;;  %v6763_v32 = vld [vmem:[#allocation16 + $0xf8] sm:$0xff]   ;;  %v6767_v59 = vld [vmem:[#allocation16 + $0xf0] sm:$0xff]  }
 0xe42   : > { %7080 = vrsqrt.f32 %v4384_v5  ;;  %v6765_v5 = vld [vmem:[#allocation16 + $0xb8] sm:$0xff]   ;;  %5994 = vmatprep.subr.bf16.mxu0 %v6763_v32 }
 0xe43   : > { %v4385_v53 = vadd.f32 1e-05, %v4377_v26  ;;  %v6768_v26 = vld [vmem:[#allocation16 + $0x30] sm:$0xff]  }
 0xe44   : > { %v4370_v39 = vpop.xlane.xlu0 %4369  ;;  %v4368_v48 = vpop.xlane.xlu1 %4367 }
 0xe45   : > { %v4378_v4 = vmul.f32 0.0078125, %v4368_v48  ;;  %7082 = vrsqrt.f32 %v4385_v53  ;;  %v4379_v60 = vmul.f32 0.0078125, %v4370_v39  ;;  %v6769_v53 = vld [vmem:[#allocation16 + $0xb0] sm:$0xff]   ;;  %v6771_v39 = vld [vmem:[#allocation16 + $0xe8] sm:$0xff]  }
 0xe46   : > { %v7075_v29 = vpop.eup %7074  ;;  %v6772_v48 = vld [vmem:[#allocation16 + $0x28] sm:$0xff]  }
 0xe47   : > { %v4397_v44 = vmul.f32 %v7075_v29, %v9124_v7  ;;  %v4386_v61 = vadd.f32 1e-05, %v4378_v4  ;;  %v4387_v13 = vadd.f32 1e-05, %v4379_v60  ;;  %v5720_v7 = vld [vmem:[%s9449_s14] ss:$0 sm:$0xff] }
 0xe48   : > { %v4372_v22 = vpop.xlane.xlu1 %4371  ;;  %v6773_v4 = vld [vmem:[#allocation16 + $0xa8] sm:$0xff]   ;;  %v6774_v29 = vld [vmem:[#allocation16 + $0x60] sm:$0xff]  }
 0xe49   : > { %v4380_v52 = vmul.f32 0.0078125, %v4372_v22  ;;  %7084 = vrsqrt.f32 %v4386_v61  ;;  %v4411_v45 = vmul.f32 %v5719_v38, %v4397_v44  ;;  %v6775_v44 = vld [vmem:[#allocation16 + $0xe0] sm:$0xff]   ;;  %v6778_v22 = vld [vmem:[#allocation16 + $0x58] sm:$0xff]  }
 0xe4a   : > { %v7077_v34 = vpop.eup %7076  ;;  %v6776_v60 = vld [vmem:[#allocation16 + $0x20] sm:$0xff]  }
 0xe4b   : > { %v4398_v41 = vmul.f32 %v7077_v34, %v9129_v17  ;;  %v4388_v16 = vadd.f32 1e-05, %v4380_v52  ;;  %v4425_v9 = vadd.f32 %v5720_v7, %v4411_v45  ;;  %v6777_v61 = vld [vmem:[#allocation16 + $0xa0] sm:$0xff]   ;;  %v6780_v52 = vld [vmem:[#allocation16 + $0x18] sm:$0xff]   ;;  %v6785_v45 = vld [vmem:[#allocation16 + $0x90] sm:$0xff]  }
 0xe4c   : > { %v6781_v34 = vld [vmem:[#allocation16 + $0x98] sm:$0xff]  }
 0xe4d   : > { %7086 = vrsqrt.f32 %v4388_v16  ;;  %v4412_v19 = vmul.f32 %v5719_v38, %v4398_v41  ;;  %v6782_v41 = vld [vmem:[#allocation16 + $0x50] sm:$0xff]  }
 0xe4e   : > { %v7079_v51 = vpop.eup %7078  ;;  %7088 = vrsqrt.f32 %v4387_v13  ;;  %v6783_v13 = vld [vmem:[#allocation16 + $0xd0] sm:$0xff]  }
 0xe4f   : > { %v7081_v56 = vpop.eup %7080  ;;  %v4426_v24 = vadd.f32 %v5720_v7, %v4412_v19  ;;  %v4399_v11 = vmul.f32 %v7079_v51, %v9137_v10  ;;  %v6784_v16 = vld [vmem:[#allocation16 + $0x10] sm:$0xff]   ;;  %v6787_v19 = vld [vmem:[#allocation16 + $0xc8] sm:$0xff]  }
 0xe50   : > { %v4400_v12 = vmul.f32 %v7081_v56, %v9132_v54  ;;  %v6788_v51 = vld [vmem:[#allocation16 + $0x8] sm:$0xff]  }
 0xe51   : > { %v4433_v36 = vpack.c.bf16 %v4426_v24, %v4425_v9  ;;  %v4413_v17 = vmul.f32 %v5719_v38, %v4399_v11  ;;  %v6789_v56 = vld [vmem:[#allocation16 + $0x88] sm:$0xff]   ;;  %v6790_v9 = vld [vmem:[#allocation16 + $0x40] sm:$0xff]  }
 0xe52   : > { %v4414_v1 = vmul.f32 %v5719_v38, %v4400_v12  ;;  %v7083_v6 = vpop.eup %7082  ;;  %v6791_v24 = vld [vmem:[#allocation16 + $0xc0] sm:$0xff]  }
 0xe53   : > { %4684 = vmatmul.mubr.bf16.vlgmr.msra.gmra.mxu1 %v4433_v36  ;;  %4757 = vmatmul.mubr.bf16.vlgmr.msra.gmra.mxu0 %v4433_v36  ;;  %v4427_v63 = vadd.f32 %v5720_v7, %v4413_v17  ;;  %v4401_v25 = vmul.f32 %v7083_v6, %v9144_v18  ;;  %v6792_v11 = vld [vmem:[#allocation16] sm:$0xff]   ;;  %v4471_v36 = vlaneseq }
 0xe54   : > { %4693 = vmatprep.mubr.bf16.mxu1 %v7503_v62  ;;  %4766 = vmatprep.mubr.bf16.mxu0 %v7503_v62  ;;  %v4428_v35 = vadd.f32 %v5720_v7, %v4414_v1  ;;  %v6793_v12 = vld [vmem:[#allocation16 + $0x80] sm:$0xff]  }
 0xe55   : > { %v4415_v8 = vmul.f32 %v5719_v38, %v4401_v25  ;;  %5995 = vmatpush3.bf16.msra.mxu0 %v6765_v5  ;;  %v4472_v17 = vshrl.u32 %v4471_v36, 7  ;;  %v4469_v6 = vld [vmem:[%s9525_s26] sm:$0xf] }
 0xe56   : > { %v7085_v20 = vpop.eup %7084  ;;  %v4434_v10 = vpack.c.bf16 %v4428_v35, %v4427_v63  ;;  %5996 = vmatprep.subr.bf16.mxu0 %v6767_v59 }
 0xe57   : > { %v4402_v37 = vmul.f32 %v7085_v20, %v9152_v47  ;;  %v4429_v42 = vadd.f32 %v5720_v7, %v4415_v8  ;;  %v4473_v1 = vsub.s32 0, %v4472_v17  ;;  %v4481_v63 = vsub.s32 2, %v4472_v17 }
 0xe58   : > { %v4477_v35 = vsub.s32 1, %v4472_v17 }
 0xe59   : > { %v4416_v54 = vmul.f32 %v5719_v38, %v4402_v37  ;;  %5997 = vmatpush3.bf16.msra.mxu0 %v6769_v53  ;;  %v9186_v20 = vrot.slane %v4469_v6, %v4473_v1 }
 0xe5a   : > { %v7087_v31 = vpop.eup %7086  ;;  %5998 = vmatprep.subr.bf16.mxu0 %v6771_v39 }
 0xe5b   : > { %4694 = vmatmul.mubr.bf16.gmra.mxu1 %v4434_v10  ;;  %4767 = vmatmul.mubr.bf16.gmra.mxu0 %v4434_v10  ;;  %v7089_v21 = vpop.eup %7088  ;;  %v4430_v50 = vadd.f32 %v5720_v7, %v4416_v54  ;;  %v4404_v40 = vmul.f32 %v7087_v31, %v9159_v27  ;;  %v6764_v27 = vld [vmem:[#allocation16 + $0x38] sm:$0xff]   ;;  %v4485_v10 = vsub.s32 3, %v4472_v17  ;;  %v9188_v31 = vrot.slane %v4469_v6, %v4481_v63 }
 0xe5c   : > { %4703 = vmatprep.mubr.bf16.mxu1 %v7503_v62  ;;  %4776 = vmatprep.mubr.bf16.mxu0 %v7503_v62  ;;  %v4403_v14 = vmul.f32 %v7089_v21, %v9149_v55  ;;  %v6766_v55 = vld [vmem:[#allocation16 + $0x70] sm:$0xff]   ;;  %v9190_v21 = vrot.slane %v4469_v6, %v4477_v35 }
 0xe5d   : > { %v4435_v18 = vpack.c.bf16 %v4430_v50, %v4429_v42  ;;  %v4418_v0 = vmul.f32 %v5719_v38, %v4404_v40  ;;  %5955 = vmatpush3.bf16.msra.mxu1 %v6764_v27  ;;  %5999 = vmatpush3.bf16.msra.mxu0 %v6773_v4  ;;  %v9193_v40 = vrot.slane %v4469_v6, %v4485_v10 }
 0xe5e   : > { %v4417_v47 = vmul.f32 %v5719_v38, %v4403_v14  ;;  %5956 = vmatprep.subr.bf16.mxu1 %v6766_v55  ;;  %6000 = vmatprep.subr.bf16.mxu0 %v6775_v44  ;;  %v6779_v38 = vld [vmem:[#allocation16 + $0xd8] sm:$0xff]  }
 0xe5f   : > { %v4432_v33 = vadd.f32 %v5720_v7, %v4418_v0 }
 0xe60   : > { %v4431_v30 = vadd.f32 %v5720_v7, %v4417_v47  ;;  %v6786_v7 = vld [vmem:[#allocation16 + $0x48] sm:$0xff]  }
 0xe61   : > { %5957 = vmatpush3.bf16.msra.mxu1 %v6768_v26  ;;  %6001 = vmatpush3.bf16.msra.mxu0 %v6777_v61 }
 0xe62   : > { %v4436_v58 = vpack.c.bf16 %v4432_v33, %v4431_v30  ;;  %6002 = vmatprep.subr.bf16.mxu0 %v6779_v38 }
 0xe63   : > { %4704 = vmatmul.mubr.bf16.gmra.mxu1 %v4435_v18  ;;  %4777 = vmatmul.mubr.bf16.gmra.mxu0 %v4435_v18 }
 0xe64   : > { %4713 = vmatprep.mubr.bf16.mxu1 %v7503_v62  ;;  %4786 = vmatprep.mubr.bf16.mxu0 %v7503_v62  ;;  %v6770_v62 = vld [vmem:[#allocation16 + $0x68] sm:$0xff]  }
 0xe65   : > { %5958 = vmatprep.subr.bf16.mxu1 %v6770_v62  ;;  %6003 = vmatpush3.bf16.msra.mxu0 %v6781_v34 }
 0xe66   : > { %5959 = vmatpush3.bf16.msra.mxu1 %v6772_v48  ;;  %6004 = vmatprep.subr.bf16.mxu0 %v6783_v13 }
 0xe67   : > { %5960 = vmatprep.subr.bf16.mxu1 %v6774_v29 }
 0xe69   : > { %6005 = vmatpush3.bf16.msra.mxu0 %v6785_v45 }
 0xe6a   : > { %5961 = vmatpush3.bf16.msra.mxu1 %v6776_v60  ;;  %6006 = vmatprep.subr.bf16.mxu0 %v6787_v19 }
 0xe6b   : > { %4714 = vmatmul.mubr.bf16.gmra.mxu1 %v4436_v58  ;;  %4787 = vmatmul.mubr.bf16.gmra.mxu0 %v4436_v58 }
 0xe6c   : > { %5962 = vmatprep.subr.bf16.mxu1 %v6778_v22 }
 0xe6d   : > { %6007 = vmatpush3.bf16.msra.mxu0 %v6789_v56 }
 0xe6e   : > { %5963 = vmatpush3.bf16.msra.mxu1 %v6780_v52  ;;  %6008 = vmatprep.subr.bf16.mxu0 %v6791_v24 }
 0xe6f   : > { %5964 = vmatprep.subr.bf16.mxu1 %v6782_v41 }
 0xe71   : > { %6009 = vmatpush3.bf16.msra.mxu0 %v6793_v12 }
 0xe72   : > { %5965 = vmatpush3.bf16.msra.mxu1 %v6784_v16 }
 0xe73   : > { %5966 = vmatprep.subr.bf16.mxu1 %v6786_v7 }
 0xe76   : > { %5967 = vmatpush3.bf16.msra.mxu1 %v6788_v51 }
 0xe77   : > { %5968 = vmatprep.subr.bf16.mxu1 %v6790_v9 }
 0xe7a   : > { %5969 = vmatpush3.bf16.msra.mxu1 %v6792_v11 }
 0xf13   : > { %v4685_v25 = vpop.f32.mrf.mxu1  ;;  %v4758_v37 = vpop.f32.mrf.mxu0 }
 0xf14   : > { %v4686_v50 = vadd.f32 %v4685_v25, %v9186_v20  ;;  %v4759_v18 = vadd.f32 %v4758_v37, %v9188_v31 }
 0xf15   : > { %v4687_v54 = vpop.f32.mrf.mxu1  ;;  %v4760_v8 = vpop.f32.mrf.mxu0 }
 0xf16   : > { %v4688_v30 = vadd.f32 %v4687_v54, %v9190_v21  ;;  %v4829_v58 = vmul.f32 0.70710677, %v4686_v50  ;;  %v4761_v43 = vadd.f32 %v4760_v8, %v9193_v40  ;;  %v4831_v5 = vmul.f32 0.70710677, %v4759_v18 }
 0xf17   : > { %v4689_v42 = vpop.f32.mrf.mxu1  ;;  %v4762_v14 = vpop.f32.mrf.mxu0  ;;  %v9210_v19 = vmul.f32 0.5, %v4686_v50  ;;  %v9213_v24 = vmul.f32 0.5, %v4759_v18 }
 0xf18   : > { %v4690_v0 = vadd.f32 %v4689_v42, %v9186_v20  ;;  %v4763_v59 = vadd.f32 %v4762_v14, %v9188_v31  ;;  %v4830_v62 = vmul.f32 0.70710677, %v4688_v30  ;;  %7090 = verf.f32 %v4829_v58 }
 0xf19   : > { %v4691_v47 = vpop.f32.mrf.mxu1  ;;  %v4764_v33 = vpop.f32.mrf.mxu0  ;;  %v4832_v39 = vmul.f32 0.70710677, %v4761_v43  ;;  %7092 = verf.f32 %v4831_v5  ;;  %v9215_v11 = vmul.f32 0.5, %v4688_v30  ;;  %v9221_v63 = vmul.f32 0.5, %v4761_v43 }
 0xf1a   : > { %v4833_v55 = vmul.f32 0.70710677, %v4690_v0  ;;  %v4692_v48 = vadd.f32 %v4691_v47, %v9190_v21  ;;  %v4765_v44 = vadd.f32 %v4764_v33, %v9193_v40  ;;  %v4835_v60 = vmul.f32 0.70710677, %v4763_v59 }
 0xf1b   : > { %v4695_v32 = vpop.f32.mrf.mxu1  ;;  %v4768_v27 = vpop.f32.mrf.mxu0  ;;  %v4801_v54 = vmul.f32 0.5, %v4690_v0  ;;  %v9227_v42 = vmul.f32 0.5, %v4763_v59 }
 0xf1c   : > { %7094 = verf.f32 %v4833_v55  ;;  %v4834_v38 = vmul.f32 0.70710677, %v4692_v48  ;;  %v4836_v13 = vmul.f32 0.70710677, %v4765_v44  ;;  %v4696_v51 = vadd.f32 %v4695_v32, %v9186_v20 }
 0xf1d   : > { %v4697_v26 = vpop.f32.mrf.mxu1  ;;  %v4770_v53 = vpop.f32.mrf.mxu0  ;;  %7096 = verf.f32 %v4830_v62  ;;  %v4769_v12 = vadd.f32 %v4768_v27, %v9188_v31  ;;  %v9232_v47 = vmul.f32 0.5, %v4692_v48  ;;  %v9237_v58 = vmul.f32 0.5, %v4765_v44 }
 0xf1e   : > { %7098 = verf.f32 %v4832_v39  ;;  %v4698_v52 = vadd.f32 %v4697_v26, %v9190_v21  ;;  %v4771_v16 = vadd.f32 %v4770_v53, %v9193_v40  ;;  %v4837_v8 = vmul.f32 0.70710677, %v4696_v51 }
 0xf1f   : > { %v4699_v4 = vpop.f32.mrf.mxu1  ;;  %v4772_v29 = vpop.f32.mrf.mxu0  ;;  %7100 = verf.f32 %v4835_v60  ;;  %v4839_v14 = vmul.f32 0.70710677, %v4769_v12  ;;  %v9242_v59 = vmul.f32 0.5, %v4696_v51  ;;  %v9244_v26 = vmul.f32 0.5, %v4769_v12 }
 0xf20   : > { %7102 = verf.f32 %v4834_v38  ;;  %v4838_v17 = vmul.f32 0.70710677, %v4698_v52  ;;  %v4700_v1 = vadd.f32 %v4699_v4, %v9186_v20  ;;  %v4840_v35 = vmul.f32 0.70710677, %v4771_v16 }
 0xf21   : > { %v4701_v61 = vpop.f32.mrf.mxu1  ;;  %v4774_v22 = vpop.f32.mrf.mxu0  ;;  %7104 = verf.f32 %v4836_v13  ;;  %v4773_v25 = vadd.f32 %v4772_v29, %v9188_v31  ;;  %v9247_v39 = vmul.f32 0.5, %v4698_v52  ;;  %v9249_v48 = vmul.f32 0.5, %v4771_v16 }
 0xf22   : > { %v9205_v45 = vadd.f32 %v4701_v61, %v9190_v21  ;;  %v9208_v7 = vadd.f32 %v4774_v22, %v9193_v40  ;;  %v4841_v33 = vmul.f32 0.70710677, %v4700_v1  ;;  %v9252_v44 = vmul.f32 0.5, %v4700_v1 }
 0xf23   : > { %v4705_v34 = vpop.f32.mrf.mxu1  ;;  %v4778_v41 = vpop.f32.mrf.mxu0  ;;  %v4843_v43 = vmul.f32 0.70710677, %v4773_v25  ;;  %v9254_v60 = vmul.f32 0.5, %v4773_v25 }
 0xf24   : > { %v4842_v36 = vmul.f32 0.70710677, %v9205_v45  ;;  %v4844_v6 = vmul.f32 0.70710677, %v9208_v7  ;;  %v9225_v50 = vadd.f32 %v4705_v34, %v9186_v20  ;;  %v9240_v32 = vadd.f32 %v4778_v41, %v9188_v31 }
 0xf25   : > { %v4707_v56 = vpop.f32.mrf.mxu1  ;;  %v4780_v9 = vpop.f32.mrf.mxu0 }
 0xf26   : > { %7106 = verf.f32 %v4842_v36  ;;  %v9230_v18 = vadd.f32 %v4707_v56, %v9190_v21  ;;  %v9235_v30 = vadd.f32 %v4780_v9, %v9193_v40  ;;  %v7091_v0 = vpop.eup %7090  ;;  %v4845_v53 = vmul.f32 0.70710677, %v9225_v50 }
 0xf27   : > { %v4709_v37 = vpop.f32.mrf.mxu1  ;;  %v4782_v10 = vpop.f32.mrf.mxu0  ;;  %7108 = verf.f32 %v4844_v6  ;;  %v4893_v38 = vadd.f32 1.0, %v7091_v0  ;;  %v4847_v34 = vmul.f32 0.70710677, %v9240_v32  ;;  %v4810_v6 = vmul.f32 0.5, %v9205_v45 }
 0xf28   : > { %7110 = verf.f32 %v4838_v17  ;;  %v7093_v55 = vpop.eup %7092  ;;  %v4846_v4 = vmul.f32 0.70710677, %v9230_v18  ;;  %v4848_v61 = vmul.f32 0.70710677, %v9235_v30  ;;  %v9259_v52 = vadd.f32 %v4709_v37, %v9186_v20 }
 0xf29   : > { %7112 = verf.f32 %v4840_v35  ;;  %v4711_v27 = vpop.f32.mrf.mxu1  ;;  %v4784_v5 = vpop.f32.mrf.mxu0  ;;  %v9262_v51 = vadd.f32 %v4782_v10, %v9188_v31  ;;  %v4895_v12 = vadd.f32 1.0, %v7093_v55  ;;  %v4812_v35 = vmul.f32 0.5, %v9208_v7 }
 0xf2a   : > { %7114 = verf.f32 %v4837_v8  ;;  %v7095_v62 = vpop.eup %7094  ;;  %v9265_v56 = vadd.f32 %v4711_v27, %v9190_v21  ;;  %v9268_v17 = vadd.f32 %v4784_v5, %v9193_v40  ;;  %v9273_v37 = vmul.f32 %v4893_v38, %v9210_v19 }
 0xf2b   : > { %7116 = verf.f32 %v4839_v14  ;;  %v7097_v29 = vpop.eup %7096  ;;  %v4715_v41 = vpop.f32.mrf.mxu1  ;;  %v4897_v16 = vadd.f32 1.0, %v7095_v62  ;;  %v4849_v10 = vmul.f32 0.70710677, %v9259_v52  ;;  %v4851_v45 = vmul.f32 0.70710677, %v9262_v51 }
 0xf2c   : > { %7118 = verf.f32 %v4841_v33  ;;  %v7099_v22 = vpop.eup %7098  ;;  %v4788_v13 = vpop.f32.mrf.mxu0  ;;  %v4894_v36 = vadd.f32 1.0, %v7097_v29  ;;  %v4850_v8 = vmul.f32 0.70710677, %v9265_v56  ;;  %v4852_v7 = vmul.f32 0.70710677, %v9268_v17 }
 0xf2d   : > { %7120 = verf.f32 %v4843_v43  ;;  %v7101_v9 = vpop.eup %7100  ;;  %v4896_v1 = vadd.f32 1.0, %v7099_v22  ;;  %v4717_v14 = vpop.f32.mrf.mxu1  ;;  %v9277_v43 = vmul.f32 %v4897_v16, %v4801_v54  ;;  %v9282_v55 = vmul.f32 %v4895_v12, %v9213_v24 }
 0xf2e   : > { %7122 = verf.f32 %v4845_v53  ;;  %v7103_v25 = vpop.eup %7102  ;;  %v4790_v33 = vpop.f32.mrf.mxu0  ;;  %v4899_v27 = vadd.f32 1.0, %v7101_v9  ;;  %v9285_v19 = vmul.f32 %v4894_v36, %v9215_v11  ;;  %v9288_v53 = vadd.f32 %v4715_v41, %v9186_v20 }
 0xf2f   : > { %7124 = verf.f32 %v4846_v4  ;;  %v7105_v0 = vpop.eup %7104  ;;  %v4928_v54 = vmul.f32 %v4896_v1, %v9221_v63  ;;  %v4898_v4 = vadd.f32 1.0, %v7103_v25  ;;  %v9292_v29 = vadd.f32 %v4788_v13, %v9188_v31  ;;  %v4719_v38 = vpop.f32.mrf.mxu1 }
 0xf30   : > { %7126 = verf.f32 %v4848_v61  ;;  %v4900_v22 = vadd.f32 1.0, %v7105_v0  ;;  %v9295_v24 = vmul.f32 0.5, %v9230_v18  ;;  %v4853_v11 = vmul.f32 0.70710677, %v9288_v53 }
 0xf31   : > { %7128 = verf.f32 %v4847_v34  ;;  %v4792_v34 = vpop.f32.mrf.mxu0  ;;  %v4957_v16 = vpack.c.bf16 %v9277_v43, %v9273_v37  ;;  %v4931_v63 = vmul.f32 %v4899_v27, %v9227_v42  ;;  %v4855_v13 = vmul.f32 0.70710677, %v9292_v29 }
 0xf32   : > { %7130 = verf.f32 %v4850_v8  ;;  %v9303_v18 = vadd.f32 %v4717_v14, %v9190_v21  ;;  %v9306_v1 = vadd.f32 %v4790_v33, %v9193_v40  ;;  %v9310_v37 = vadd.f32 %v4719_v38, %v9186_v20 }
 0xf33   : > { %v7107_v5 = vpop.eup %7106  ;;  %7132 = verf.f32 %v4852_v7  ;;  %v9313_v42 = vadd.f32 %v4792_v34, %v9188_v31  ;;  %v4932_v43 = vmul.f32 %v4900_v22, %v9237_v58  ;;  %v4794_v33 = vpop.f32.mrf.mxu0 }
 0xf34   : > { %v7109_v62 = vpop.eup %7108  ;;  %7134 = verf.f32 %v4849_v10  ;;  %v4906_v12 = vadd.f32 1.0, %v7107_v5  ;;  %v4930_v10 = vmul.f32 %v4898_v4, %v9232_v47  ;;  %v4854_v14 = vmul.f32 0.70710677, %v9303_v18 }
 0xf35   : > { %v7111_v61 = vpop.eup %7110  ;;  %7136 = verf.f32 %v4851_v45  ;;  %v4908_v36 = vadd.f32 1.0, %v7109_v62  ;;  %v4721_v45 = vpop.f32.mrf.mxu1  ;;  %v4959_v5 = vpack.c.bf16 %v4931_v63, %v9282_v55  ;;  %v4856_v47 = vmul.f32 0.70710677, %v9306_v1 }
 0xf36   : > { %v7113_v41 = vpop.eup %7112  ;;  %v4902_v8 = vadd.f32 1.0, %v7111_v61  ;;  %7138 = verf.f32 %v4853_v11  ;;  %v4857_v20 = vmul.f32 0.70710677, %v9310_v37  ;;  %v4938_v31 = vmul.f32 %v4906_v12, %v4810_v6 }
 0xf37   : > { %v7115_v9 = vpop.eup %7114  ;;  %v4904_v27 = vadd.f32 1.0, %v7113_v41  ;;  %7140 = verf.f32 %v4855_v13  ;;  %v4940_v4 = vmul.f32 %v4908_v36, %v4812_v35  ;;  %v4859_v58 = vmul.f32 0.70710677, %v9313_v42 }
 0xf38   : > { %v7117_v25 = vpop.eup %7116  ;;  %7142 = verf.f32 %v4854_v14  ;;  %v4934_v22 = vmul.f32 %v4902_v8, %v9247_v39  ;;  %v9323_v11 = vadd.f32 %v4721_v45, %v9190_v21  ;;  %v9326_v55 = vadd.f32 %v4794_v33, %v9193_v40 }
 0xf39   : > { %v7119_v0 = vpop.eup %7118  ;;  %7144 = verf.f32 %v4856_v47  ;;  %v4936_v34 = vmul.f32 %v4904_v27, %v9249_v48  ;;  %v4958_v6 = vpack.c.bf16 %v4930_v10, %v9285_v19  ;;  %v4960_v35 = vpack.c.bf16 %v4932_v43, %v4928_v54 }
 0xf3a   : > { %v7121_v7 = vpop.eup %7120  ;;  %7146 = verf.f32 %v4857_v20  ;;  %v4905_v63 = vadd.f32 1.0, %v7119_v0  ;;  %v4858_v39 = vmul.f32 0.70710677, %v9323_v11  ;;  %v4860_v21 = vmul.f32 0.70710677, %v9326_v55 }
 0xf3b   : > { %v7123_v62 = vpop.eup %7122  ;;  %v4907_v13 = vadd.f32 1.0, %v7121_v7  ;;  %7148 = verf.f32 %v4859_v58  ;;  %5268 = vmatprep.mubr.bf16.mxu1 %v4958_v6  ;;  %5333 = vmatprep.mubr.bf16.mxu0 %v4960_v35  ;;  %v4962_v40 = vpack.c.bf16 %v4938_v31, %v4934_v22  ;;  %v4964_v36 = vpack.c.bf16 %v4940_v4, %v4936_v34 }
 0xf3c   : > { %v7125_v61 = vpop.eup %7124  ;;  %v4901_v14 = vadd.f32 1.0, %v7115_v9  ;;  %v4903_v48 = vadd.f32 1.0, %v7117_v25  ;;  %7150 = verf.f32 %v4858_v39  ;;  %5269 = vmatmul.mubr.bf16.vlgmr.msra.gmra.mxu1 %v4957_v16  ;;  %5334 = vmatmul.mubr.bf16.vlgmr.msra.gmra.mxu0 %v4959_v5  ;;  %v4816_v54 = vmul.f32 0.5, %v9235_v30 }
 0xf3d   : > { %v7127_v38 = vpop.eup %7126  ;;  %v4910_v12 = vadd.f32 1.0, %v7125_v61  ;;  %v4818_v10 = vmul.f32 0.5, %v9265_v56  ;;  %7152 = verf.f32 %v4860_v21  ;;  %5276 = vmatprep.mubr.bf16.mxu1 %v4962_v40  ;;  %5341 = vmatprep.mubr.bf16.mxu0 %v4964_v36  ;;  %v4937_v45 = vmul.f32 %v4905_v63, %v9252_v44 }
 0xf3e   : > { %v7129_v41 = vpop.eup %7128  ;;  %v4912_v27 = vadd.f32 1.0, %v7127_v38  ;;  %v4939_v33 = vmul.f32 %v4907_v13, %v9254_v60  ;;  %v4820_v9 = vmul.f32 0.5, %v9268_v17  ;;  %v4933_v30 = vmul.f32 %v4901_v14, %v9242_v59 }
 0xf3f   : > { %v7131_v8 = vpop.eup %7130  ;;  %v4942_v16 = vmul.f32 %v4910_v12, %v9295_v24  ;;  %v4935_v56 = vmul.f32 %v4903_v48, %v9244_v26  ;;  %v4909_v17 = vadd.f32 1.0, %v7123_v62  ;;  %v4817_v34 = vmul.f32 0.5, %v9259_v52 }
 0xf40   : > { %v7133_v19 = vpop.eup %7132  ;;  %v4914_v0 = vadd.f32 1.0, %v7131_v8  ;;  %v4944_v47 = vmul.f32 %v4912_v27, %v4816_v54  ;;  %v4961_v61 = vpack.c.bf16 %v4937_v45, %v4933_v30  ;;  %v4911_v24 = vadd.f32 1.0, %v7129_v41 }
 0xf41   : > { %v7135_v43 = vpop.eup %7134  ;;  %v4916_v25 = vadd.f32 1.0, %v7133_v19  ;;  %v4963_v22 = vpack.c.bf16 %v4939_v33, %v4935_v56  ;;  %v4819_v35 = vmul.f32 0.5, %v9262_v51  ;;  %v4813_v26 = vmul.f32 0.5, %v9225_v50 }
 0xf42   : > { %v7137_v7 = vpop.eup %7136  ;;  %v4946_v5 = vmul.f32 %v4914_v0, %v4818_v10  ;;  %v4913_v31 = vadd.f32 1.0, %v7135_v43  ;;  %v4815_v39 = vmul.f32 0.5, %v9240_v32  ;;  %v4822_v52 = vmul.f32 0.5, %v9303_v18 }
 0xf43   : > { %v4948_v20 = vmul.f32 %v4916_v25, %v4820_v9  ;;  %v7139_v58 = vpop.eup %7138  ;;  %v4915_v44 = vadd.f32 1.0, %v7137_v7  ;;  %v4941_v62 = vmul.f32 %v4909_v17, %v4813_v26  ;;  %v4824_v8 = vmul.f32 0.5, %v9306_v1 }
 0xf44   : > { %v4966_v4 = vpack.c.bf16 %v4946_v5, %v4942_v16  ;;  %v7141_v38 = vpop.eup %7140  ;;  %5277 = vmatmul.mubr.bf16.gmra.mxu1 %v4961_v61  ;;  %5342 = vmatmul.mubr.bf16.gmra.mxu0 %v4963_v22  ;;  %v4945_v63 = vmul.f32 %v4913_v31, %v4817_v34  ;;  %v4943_v40 = vmul.f32 %v4911_v24, %v4815_v39  ;;  %v4826_v50 = vmul.f32 0.5, %v9323_v11 }
 0xf45   : > { %v4968_v60 = vpack.c.bf16 %v4948_v20, %v4944_v47  ;;  %v7143_v6 = vpop.eup %7142  ;;  %v4947_v12 = vmul.f32 %v4915_v44, %v4819_v35  ;;  %v4825_v32 = vmul.f32 0.5, %v9310_v37  ;;  %v4827_v0 = vmul.f32 0.5, %v9313_v42 }
 0xf46   : > { %v7145_v59 = vpop.eup %7144  ;;  %5284 = vmatprep.mubr.bf16.mxu1 %v4966_v4  ;;  %v4918_v41 = vadd.f32 1.0, %v7143_v6  ;;  %v4965_v51 = vpack.c.bf16 %v4945_v63, %v4941_v62  ;;  %v4828_v43 = vmul.f32 0.5, %v9326_v55  ;;  %v4917_v45 = vadd.f32 1.0, %v7139_v58 }
 0xf47   : > { %5349 = vmatprep.mubr.bf16.mxu0 %v4968_v60  ;;  %v7147_v13 = vpop.eup %7146  ;;  %v4920_v14 = vadd.f32 1.0, %v7145_v59  ;;  %v4967_v27 = vpack.c.bf16 %v4947_v12, %v4943_v40  ;;  %v4919_v33 = vadd.f32 1.0, %v7141_v38  ;;  %v4821_v1 = vmul.f32 0.5, %v9288_v53  ;;  %v9355_v53 = vld [vmem:[%s9526_s3] ss:$0 sm:$0xff] }
 0xf48   : > { %v7149_v21 = vpop.eup %7148  ;;  %v4921_v19 = vadd.f32 1.0, %v7147_v13  ;;  %v4950_v9 = vmul.f32 %v4918_v41, %v4822_v52  ;;  %v4823_v16 = vmul.f32 0.5, %v9292_v29 }
 0xf49   : > { %v7151_v36 = vpop.eup %7150  ;;  %v4923_v54 = vadd.f32 1.0, %v7149_v21  ;;  %v4952_v11 = vmul.f32 %v4920_v14, %v4824_v8  ;;  %v4949_v42 = vmul.f32 %v4917_v45, %v4821_v1 }
 0xf4a   : > { %v7153_v48 = vpop.eup %7152  ;;  %v4922_v10 = vadd.f32 1.0, %v7151_v36  ;;  %v4953_v5 = vmul.f32 %v4921_v19, %v4825_v32  ;;  %v4951_v47 = vmul.f32 %v4919_v33, %v4823_v16 }
 0xf4b   : > { %v4924_v18 = vadd.f32 1.0, %v7153_v48  ;;  %v4955_v30 = vmul.f32 %v4923_v54, %v4827_v0 }
 0xf4c   : > { %v4954_v25 = vmul.f32 %v4922_v10, %v4826_v50  ;;  %5285 = vmatmul.mubr.bf16.gmra.mxu1 %v4965_v51  ;;  %5350 = vmatmul.mubr.bf16.gmra.mxu0 %v4967_v27  ;;  %v4969_v55 = vpack.c.bf16 %v4953_v5, %v4949_v42 }
 0xf4d   : > { %v4956_v7 = vmul.f32 %v4924_v18, %v4828_v43  ;;  %v4971_v20 = vpack.c.bf16 %v4955_v30, %v4951_v47 }
 0xf4e   : > { %v4970_v37 = vpack.c.bf16 %v4954_v25, %v4950_v9 }
 0xf4f   : > { %v4972_v56 = vpack.c.bf16 %v4956_v7, %v4952_v11 }
 0xf50   : > { %5292 = vmatprep.mubr.bf16.mxu1 %v4970_v37 }
 0xf51   : > { %5357 = vmatprep.mubr.bf16.mxu0 %v4972_v56 }
 0xf54   : > { %5293 = vmatmul.mubr.bf16.gmra.mxu1 %v4969_v55  ;;  %5358 = vmatmul.mubr.bf16.gmra.mxu0 %v4971_v20 }
 0xffc   : > { %v5970_v31 = vpop.f32.mrf.mxu1  ;;  %v6010_v4 = vpop.f32.mrf.mxu0 }
 0xffe   : > { %v5971_v29 = vpop.f32.mrf.mxu1  ;;  %v6011_v58 = vpop.f32.mrf.mxu0 }
 0xfff   : > { %v5972_v61 = vadd.f32 %v5971_v29, %v5970_v31  ;;  %v6012_v38 = vadd.f32 %v6011_v58, %v6010_v4 }
0x1000   : > { %v5973_v44 = vpop.f32.mrf.mxu1  ;;  %v6013_v22 = vpop.f32.mrf.mxu0 }
0x1001   : > { %v5271_v60 = vadd.f32 %v5972_v61, %v9355_v53 }
0x1002   : > { %v5974_v17 = vpop.f32.mrf.mxu1  ;;  %v6014_v34 = vpop.f32.mrf.mxu0 }
0x1003   : > { %v5336_v6 = vadd.f32 %v6012_v38, %v5271_v60  ;;  %v5975_v24 = vadd.f32 %v5974_v17, %v5973_v44  ;;  %v6015_v13 = vadd.f32 %v6014_v34, %v6013_v22 }
0x1004   : > { %v5976_v35 = vpop.f32.mrf.mxu1  ;;  %v6016_v59 = vpop.f32.mrf.mxu0 }
0x1005   : > { %v5366_v26 = vadd.f32 %v5336_v6, %v9087_v57  ;;  %v5274_v63 = vadd.f32 %v5975_v24, %v9355_v53 }
0x1006   : > { %v5977_v39 = vpop.f32.mrf.mxu1  ;;  %v6017_v12 = vpop.f32.mrf.mxu0 }
0x1007   : > { %5374 = vst [vmem:[%s9362_s10] sm:$0xff] %v5366_v26  ;;  %v5339_v21 = vadd.f32 %v6015_v13, %v5274_v63  ;;  %v5978_v62 = vadd.f32 %v5977_v39, %v5976_v35  ;;  %v6018_v36 = vadd.f32 %v6017_v12, %v6016_v59 }
0x1008   : > { %v5979_v40 = vpop.f32.mrf.mxu1  ;;  %v6019_v52 = vpop.f32.mrf.mxu0 }
0x1009   : > { %v5367_v41 = vadd.f32 %v5339_v21, %v9095_v49  ;;  %v5279_v57 = vadd.f32 %v5978_v62, %v9355_v53 }
0x100a   : > { %v5980_v51 = vpop.f32.mrf.mxu1  ;;  %v6020_v8 = vpop.f32.mrf.mxu0 }
0x100b   : > { %5375 = vst [vmem:[%s9362_s10 + $0x8] sm:$0xff] %v5367_v41  ;;  %v5344_v14 = vadd.f32 %v6018_v36, %v5279_v57  ;;  %v5981_v50 = vadd.f32 %v5980_v51, %v5979_v40  ;;  %v6021_v10 = vadd.f32 %v6020_v8, %v6019_v52 }
0x100c   : > { %v5982_v48 = vpop.f32.mrf.mxu1  ;;  %v6022_v27 = vpop.f32.mrf.mxu0 }
0x100d   : > { %v5368_v19 = vadd.f32 %v5344_v14, %v9101_v15  ;;  %v5282_v54 = vadd.f32 %v5981_v50, %v9355_v53 }
0x100e   : > { %v5983_v32 = vpop.f32.mrf.mxu1  ;;  %v6023_v0 = vpop.f32.mrf.mxu0 }
0x100f   : > { %5376 = vst [vmem:[%s9362_s10 + $0x10] sm:$0xff] %v5368_v19  ;;  %v5347_v49 = vadd.f32 %v6021_v10, %v5282_v54  ;;  %v5984_v43 = vadd.f32 %v5983_v32, %v5982_v48  ;;  %v6024_v25 = vadd.f32 %v6023_v0, %v6022_v27 }
0x1010   : > { %v5985_v18 = vpop.f32.mrf.mxu1  ;;  %v6025_v45 = vpop.f32.mrf.mxu0 }
0x1011   : > { %v5369_v33 = vadd.f32 %v5347_v49, %v9093_v46  ;;  %v5287_v9 = vadd.f32 %v5984_v43, %v9355_v53 }
0x1012   : > { %v5986_v1 = vpop.f32.mrf.mxu1  ;;  %v6026_v11 = vpop.f32.mrf.mxu0 }
0x1013   : > { %5377 = vst [vmem:[%s9362_s10 + $0x18] sm:$0xff] %v5369_v33  ;;  %v5352_v15 = vadd.f32 %v6024_v25, %v5287_v9  ;;  %v5987_v7 = vadd.f32 %v5986_v1, %v5985_v18  ;;  %v6027_v56 = vadd.f32 %v6026_v11, %v6025_v45 }
0x1014   : > { %v5988_v16 = vpop.f32.mrf.mxu1  ;;  %v6028_v5 = vpop.f32.mrf.mxu0 }
0x1015   : > { %v5370_v30 = vadd.f32 %v5352_v15, %v9107_v23  ;;  %v5290_v37 = vadd.f32 %v5987_v7, %v9355_v53 }
0x1016   : > { %v5989_v42 = vpop.f32.mrf.mxu1  ;;  %v6029_v47 = vpop.f32.mrf.mxu0 }
0x1017   : > { %5378 = vst [vmem:[%s9362_s10 + $0x20] sm:$0xff] %v5370_v30  ;;  %v5355_v46 = vadd.f32 %v6027_v56, %v5290_v37  ;;  %v5990_v55 = vadd.f32 %v5989_v42, %v5988_v16  ;;  %v6030_v58 = vadd.f32 %v6029_v47, %v6028_v5 }
0x1018   : > { %v5991_v20 = vpop.f32.mrf.mxu1  ;;  %v6031_v31 = vpop.f32.mrf.mxu0 }
0x1019   : > { %v5371_v4 = vadd.f32 %v5355_v46, %v9115_v3  ;;  %v5295_v29 = vadd.f32 %v5990_v55, %v9355_v53 }
0x101a   : > { %v5992_v23 = vpop.f32.mrf.mxu1  ;;  %v6032_v61 = vpop.f32.mrf.mxu0 }
0x101b   : > { %5379 = vst [vmem:[%s9362_s10 + $0x28] sm:$0xff] %v5371_v4  ;;  %v5360_v44 = vadd.f32 %v6030_v58, %v5295_v29  ;;  %v5993_v22 = vadd.f32 %v5992_v23, %v5991_v20  ;;  %v6033_v17 = vadd.f32 %v6032_v61, %v6031_v31 }
0x101d   : > { %v5372_v60 = vadd.f32 %v5360_v44, %v9113_v28  ;;  %v5298_v38 = vadd.f32 %v5993_v22, %v9355_v53 }
0x101f   : > { %5380 = vst [vmem:[%s9362_s10 + $0x30] sm:$0xff] %v5372_v60  ;;  %v5363_v3 = vadd.f32 %v6033_v17, %v5298_v38 }
0x1021   : > { %v5373_v34 = vadd.f32 %v5363_v3, %v9120_v2 }
0x1023   : > { %5381 = vst [vmem:[%s9362_s10 + $0x38] sm:$0xff] %v5373_v34 }
0x1024   : > { %7413 = shalt.err (!%p7410_p9)
}
0x1025   : > { %s7414_s25 = scalar_lea.hbm %s9388_s1, 1024  ;;  %s7418_s26 = scalar_lea.hbm %s9527_s6, 2048 }
0x1026   : > { %p7415_p6 = scmp.ne.s32.totalorder %s9388_s1, %s7414_s25  ;;  %p7419_p2 = scmp.lt.s32.totalorder %s9388_s1, %s9527_s6 }
0x1027   : > { %p7420_p5 = scmp.lt.s32.totalorder %s7418_s26, %s7414_s25 }
0x1028   : > { %p7416_p11 = pnand %p7415_p6, %p9528_p13 }
0x1029   : > { %p7421_p7 = por %p7420_p5, %p7419_p2 }
0x102a   : > { %p7417_p0 = pneg %p7416_p11 }
0x102c   : > { %p7422_p12 = pnand %p7421_p7, %p7417_p0 }
0x102e   : > { %7425 = shalt.err (!%p7422_p12)
}
0x102f   : > { %s7508_s3 = smov 128   ;;  %s7509_s10 = smov 8  }
0x1030   : > { %6410 = dma.vmem_to_hbm [thread:$0]  (%p9528_p13), %s9390_s7, 1024, %s9388_s1, %s5383_s29, %s7508_s3, %s7508_s3, %s7509_s10  }
0x1031 PF: > { %s9529_s11 = sld [smem:[#allocation28_spill]]  ;;  %s5411_s23 = sand.u32 1, %s7472_s0  }
0x1032   : > { %p9531_p4 = scmp.ge.s32.totalorder %s7484_s21, 2  ;;  %s5412_s28 = scalar_lea.sflag [#allocation4], %s5411_s23 }
0x1037   : > { %p9530_p1 = scmp.ne.s32.totalorder %s9529_s11, 0 }
0x1039   : > { %p6442_p8 = pnand %p9531_p4, %p9530_p1 }
0x103b   : > { %p6443_p10 = pneg %p6442_p8 }
0x103d   : > { %7467 = dma.done.wait (%p6443_p10), %s5412_s28, 1024  }
0x103e   : > { %7469 = vsyncadd (%p6443_p10), %s5412_s28, 4294966272  ;;  %s9532_s21 = sld [smem:[#allocation26_spill]]  ;;  %s9535_s0 = smov %s7476_s30 }
0x103f   : > { %s9533_s9 = sld [smem:[#allocation25_spill]] }
0x1040   : > { %s9534_s20 = sld [smem:[#allocation27_spill]] }
0x1044   : > { %p38_p3 = scmp.ge.s32.totalorder %s9532_s21, 4  }
0x1045   : > { %s9536_s30 = smov %s9533_s9 }
0x1046   :  { %40 = sbr.rel (!%p38_p3) target bundleno = 25 (0x19), region = 182 }
0x104b   :  { %5417 = vsyncpa [#allocation3], 1 }
0x104c   :  { %5419 = vsyncpa [#allocation3 + $0x1], 1 }
0x104d   :  { %5420 = vsyncpa [#allocation6], 1 }
0x104e   :  { %5422 = vsyncpa [#allocation6 + $0x1], 1 }
0x104f   :  { %5423 = vsyncpa [#allocation9], 1 }
0x1050   :  { %5424 = vsyncpa [#allocation12], 1 }
0x1051   :  { %5425 = vsyncpa [#allocation15], 1 }
0x1052   :  { %5426 = vsyncpa [#allocation4], 1 }
0x1053   :  { %5428 = vsyncpa [#allocation4 + $0x1], 1 }

</bundles_post_ra>
